<compile_context>
chip_gen: v7x
topology: tpu7x:2x2x1
jax: 0.10.0
libtpu: 0.0.40
codegen_flags: <defaults>
</compile_context>

<pallas_src>
import jax
import jax.numpy as jnp
from jax.experimental import pallas as pl
from jax.experimental.pallas import tpu as pltpu

# ---------------- model config (small, consistent with the module) ------------
B = 2                 # batch_size
N = 8                 # num_nodes
NODE_DIM = 2          # config['node_dim']
H = 32                # config['hidden_dim']
H2 = H // 2
L = 2                 # config['num_layers']
VOC_EDGES_IN = 3      # config['voc_edges_in']
NUM_EDGE_CAT = 2      # config['num_edge_cat_features']
AGG = "mean"          # config['aggregation']
BN_EPS = 1e-5
NH = N * H            # lane-dense minor dimension (256 = 2 * 128)


# ---------------------- layout helpers (layout-safe) --------------------------
def _split_lanes(a, n, h):
    """(..., n*h) -> (..., n, h) via static lane slices + stack."""
    return jnp.stack([a[..., i * h:(i + 1) * h] for i in range(n)], axis=-2)


def _merge_lanes(a):
    """(..., n, h) -> (..., n*h) via lane-axis concatenation."""
    n = a.shape[-2]
    return jnp.concatenate([a[..., i, :] for i in range(n)], axis=-1)


def _tile_lanes(a, n):
    """(..., h) -> (..., n*h): repeat the per-channel vector n times along lanes."""
    return jnp.concatenate([a] * n, axis=-1)


# ----------------------------- Pallas kernel ----------------------------------
def gcn_stack_kernel(
    x0_ref,            # (B, N*H)     lane-dense node features
    e0_ref,            # (B, N, N*H)  lane-dense edge features
    Wue_ref, bue_ref,  # (L, H, H), (L, 1, H)     EdgeFeatures linear U_e
    Wxc_ref, bxc_ref,  # (L, H, 3H), (L, 1, 3H)   fused [V_e | U_n | V_n]
    ge_ref, be_ref,    # (L, 1, H)  BN affine for e
    gn_ref, bn_ref,    # (L, 1, H)  BN affine for x
    x_out_ref,         # (B, N*H)
    e_out_ref,         # (B, N, N*H)
):
    x2 = x0_ref[...]          # (B, N*H)      carried lane-dense node state
    e2 = e0_ref[...]          # (B, N, N*H)   carried lane-dense edge state

    for l in range(L):        # L is small & static -> unrolled in-kernel loop
        # ------ (..., H) views only where the H-contraction requires them -----
        x_flat = _split_lanes(x2, N, H).reshape(B * N, H)            # (16, 32)
        e_flat = _split_lanes(e2, N, H).reshape(B * N * N, H)        # (128, 32)

        # Edge linear U_e and the fused node-side linear [V_e | U_n | V_n].
        Ue = jnp.dot(e_flat, Wue_ref[l],
                     preferred_element_type=jnp.float32) + bue_ref[l]    # (128, 32)
        xs = jnp.dot(x_flat, Wxc_ref[l],
                     preferred_element_type=jnp.float32) + bxc_ref[l]    # (16, 96)
        Vex = xs[:, 0 * H:1 * H].reshape(B, N, H)
        Ux = xs[:, 1 * H:2 * H].reshape(B, N, H)
        Vx = xs[:, 2 * H:3 * H].reshape(B, N, H)

        # ------ gating + gated aggregation (needs the (B, N, N, H) view) ------
        e_tmp4 = (Ue.reshape(B, N, N, H)
                  + Vex[:, :, None, :]              # V_e x_i
                  + Vex[:, None, :, :])             # V_e x_j
        gate = jax.nn.sigmoid(e_tmp4)                                    # (B,N,N,H)
        num = jnp.sum(gate * Vx[:, None, :, :], axis=2)                  # (B,N,H)
        if AGG == "mean":
            den = 1e-20 + jnp.sum(gate, axis=2)
            # approx=True would push the divide onto the idle EUP slot; kept
            # exact here so the 1e-3 reference tolerance is comfortably met.
            x_tmp = Ux + num * pl.reciprocal(den, approx=False)
        else:  # "sum"
            x_tmp = Ux + num

        # ------ BatchNorm: single-pass batch stats (biased variance) ----------
        e_tmp2d = e_tmp4.reshape(B * N * N, H)
        inv_ne = 1.0 / float(B * N * N)
        mean_e = jnp.sum(e_tmp2d, axis=0, keepdims=True) * inv_ne            # (1,H)
        msq_e = jnp.sum(e_tmp2d * e_tmp2d, axis=0, keepdims=True) * inv_ne
        var_e = msq_e - mean_e * mean_e
        scale_e = ge_ref[l] * jax.lax.rsqrt(var_e + BN_EPS)                  # (1,H)
        shift_e = be_ref[l] - mean_e * scale_e

        x_tmp2d = x_tmp.reshape(B * N, H)
        inv_nx = 1.0 / float(B * N)
        mean_x = jnp.sum(x_tmp2d, axis=0, keepdims=True) * inv_nx            # (1,H)
        msq_x = jnp.sum(x_tmp2d * x_tmp2d, axis=0, keepdims=True) * inv_nx
        var_x = msq_x - mean_x * mean_x
        scale_x = gn_ref[l] * jax.lax.rsqrt(var_x + BN_EPS)                  # (1,H)
        shift_x = bn_ref[l] - mean_x * scale_x

        # ------ BN apply + ReLU + residual, all lane-dense (256 lanes) --------
        e_tmp_ld = _merge_lanes(e_tmp4)                                  # (B,N,N*H)
        scale_e_ld = _tile_lanes(scale_e, N).reshape(1, 1, NH)
        shift_e_ld = _tile_lanes(shift_e, N).reshape(1, 1, NH)
        e2 = e2 + jnp.maximum(e_tmp_ld * scale_e_ld + shift_e_ld, 0.0)

        x_tmp_ld = _merge_lanes(x_tmp)                                   # (B, N*H)
        scale_x_ld = _tile_lanes(scale_x, N)                             # (1, N*H)
        shift_x_ld = _tile_lanes(shift_x, N)
        x2 = x2 + jnp.maximum(x_tmp_ld * scale_x_ld + shift_x_ld, 0.0)

    # Lane-dense (multiple-of-128) output stores -> unmasked vst.
    x_out_ref[...] = x2
    e_out_ref[...] = e2


def run_gcn_layers(x0, e0, p):
    """Run the whole L-layer ResidualGatedGCN stack in one Pallas kernel call."""
    x0_ld = x0.reshape(B, NH)              # lane-dense kernel I/O layouts
    e0_ld = e0.reshape(B, N, NH)
    vmem = pl.BlockSpec(memory_space=pltpu.MemorySpace.VMEM)
    x_ld, e_ld = pl.pallas_call(
        gcn_stack_kernel,
        out_shape=(
            jax.ShapeDtypeStruct((B, NH), jnp.float32),
            jax.ShapeDtypeStruct((B, N, NH), jnp.float32),
        ),
        in_specs=[vmem] * 10,
        out_specs=(vmem, vmem),
    )(
        x0_ld, e0_ld,
        p["We_U"], p["be_U"],
        p["Wx_cat"], p["bx_cat"],
        p["g_e"], p["b_e"], p["g_n"], p["b_n"],
    )
    return x_ld.reshape(B, N, H), e_ld.reshape(B, N, N, H)


# ------------------------------ JAX glue ---------------------------------------
def init_params(key):
    ks = jax.random.split(key, 12)
    nrm = lambda k, s: (0.1 * jax.random.normal(k, s)).astype(jnp.float32)
    p = {
        # embeddings
        "W_coord": nrm(ks[0], (NODE_DIM, H)),            # Linear(node_dim, H, bias=False)
        "W_eval": nrm(ks[1], (1, H2)),                   # Linear(1, H//2, bias=False)
        "emb_tables": nrm(ks[2], (NUM_EDGE_CAT, VOC_EDGES_IN, H2)),
        # per-layer GCN params, stacked over layers
        "We_U": nrm(ks[3], (L, H, H)), "be_U": nrm(ks[4], (L, 1, H)),
        "We_V": nrm(ks[5], (L, H, H)), "be_V": nrm(ks[6], (L, 1, H)),
        "Wn_U": nrm(ks[7], (L, H, H)), "bn_U": nrm(ks[8], (L, 1, H)),
        "Wn_V": nrm(ks[9], (L, H, H)), "bn_V": nrm(ks[10], (L, 1, H)),
        "g_e": jnp.ones((L, 1, H), jnp.float32), "b_e": jnp.zeros((L, 1, H), jnp.float32),
        "g_n": jnp.ones((L, 1, H), jnp.float32), "b_n": jnp.zeros((L, 1, H), jnp.float32),
    }
    # Fused x-side weights [V_e | U_n | V_n] built at parameter-setup time so the
    # kernel does a single (H, 3H) matmul on x instead of three (H, H) ones.
    p["Wx_cat"] = jnp.concatenate([p["We_V"], p["Wn_U"], p["Wn_V"]], axis=-1)   # (L,H,3H)
    p["bx_cat"] = jnp.concatenate([p["be_V"], p["bn_U"], p["bn_V"]], axis=-1)   # (L,1,3H)
    return p


def embed(p, x_edges, x_edges_values, x_nodes_coord):
    """Input embeddings (parameter-setup-scale glue; kept in plain JAX)."""
    x = x_nodes_coord.astype(jnp.float32) @ p["W_coord"]                     # (B, N, H)
    # Linear(1, H/2): x_edges_values.unsqueeze(3) @ W  == outer product
    e_vals = x_edges_values.astype(jnp.float32)[..., None] * p["W_eval"][0]  # (B, N, N, H/2)
    # TODO(synk): nn.Embedding integer gather has no clean Pallas equivalent; done with jnp.take here.
    e_tags = jnp.zeros((B, N, N, H2), jnp.float32)
    for c in range(NUM_EDGE_CAT):
        e_tags = e_tags + jnp.take(p["emb_tables"][c], x_edges[..., c], axis=0)
    e = jnp.concatenate([e_vals, e_tags], axis=-1)                           # (B, N, N, H)
    return x, e


@jax.jit
def model_forward(p, x_edges, x_edges_values, x_nodes_coord):
    x0, e0 = embed(p, x_edges, x_edges_values, x_nodes_coord)
    return run_gcn_layers(x0, e0, p)


# --------------------------- pure-JAX reference ---------------------------------
def ref_forward(p, x_edges, x_edges_values, x_nodes_coord):
    x, e = embed(p, x_edges, x_edges_values, x_nodes_coord)
    for l in range(L):
        x_in, e_in = x, e
        Ue = e_in @ p["We_U"][l] + p["be_U"][l, 0]
        Vex = x_in @ p["We_V"][l] + p["be_V"][l, 0]
        e_tmp = Ue + Vex[:, :, None, :] + Vex[:, None, :, :]
        gate = jax.nn.sigmoid(e_tmp)
        Ux = x_in @ p["Wn_U"][l] + p["bn_U"][l, 0]
        Vx = x_in @ p["Wn_V"][l] + p["bn_V"][l, 0]
        num = jnp.sum(gate * Vx[:, None, :, :], axis=2)
        if AGG == "mean":
            x_tmp = Ux + num / (1e-20 + jnp.sum(gate, axis=2))
        else:
            x_tmp = Ux + num
        em = jnp.mean(e_tmp, axis=(0, 1, 2), keepdims=True)
        ev = jnp.mean((e_tmp - em) ** 2, axis=(0, 1, 2), keepdims=True)
        e_bn = (e_tmp - em) * jax.lax.rsqrt(ev + BN_EPS) * p["g_e"][l, 0] + p["b_e"][l, 0]
        xm = jnp.mean(x_tmp, axis=(0, 1), keepdims=True)
        xv = jnp.mean((x_tmp - xm) ** 2, axis=(0, 1), keepdims=True)
        x_bn = (x_tmp - xm) * jax.lax.rsqrt(xv + BN_EPS) * p["g_n"][l, 0] + p["b_n"][l, 0]
        x = x_in + jnp.maximum(x_bn, 0.0)
        e = e_in + jnp.maximum(e_bn, 0.0)
    return x, e


# --------------------------------- main ------------------------------------------
if __name__ == "__main__":
    key = jax.random.PRNGKey(0)
    kp, k1, k2, k3 = jax.random.split(key, 4)
    params = init_params(kp)

    x_edges = jax.random.randint(k1, (B, N, N, NUM_EDGE_CAT), 0, VOC_EDGES_IN)
    x_edges_values = jax.random.uniform(k2, (B, N, N), dtype=jnp.float32)
    x_nodes_coord = jax.random.uniform(k3, (B, N, NODE_DIM), dtype=jnp.float32)

    x_out, e_out = model_forward(params, x_edges, x_edges_values, x_nodes_coord)
    jax.block_until_ready((x_out, e_out))

    x_ref, e_ref = ref_forward(params, x_edges, x_edges_values, x_nodes_coord)
    assert x_out.shape == (B, N, H) and e_out.shape == (B, N, N, H)
    assert jnp.allclose(x_out, x_ref, rtol=1e-3, atol=1e-3)
    assert jnp.allclose(e_out, e_ref, rtol=1e-3, atol=1e-3)

    print("KERNEL_OK")
</pallas_src>

<mosaic_0001>
module attributes {stable_mosaic.version = 11 : i64} {
  func.func @gcn_stack_kernel(%arg0: memref<2x256xf32, #tpu.memory_space<vmem>>, %arg1: memref<2x8x256xf32, #tpu.memory_space<vmem>>, %arg2: memref<2x32x32xf32, #tpu.memory_space<vmem>>, %arg3: memref<2x1x32xf32, #tpu.memory_space<vmem>>, %arg4: memref<2x32x96xf32, #tpu.memory_space<vmem>>, %arg5: memref<2x1x96xf32, #tpu.memory_space<vmem>>, %arg6: memref<2x1x32xf32, #tpu.memory_space<vmem>>, %arg7: memref<2x1x32xf32, #tpu.memory_space<vmem>>, %arg8: memref<2x1x32xf32, #tpu.memory_space<vmem>>, %arg9: memref<2x1x32xf32, #tpu.memory_space<vmem>>, %arg10: memref<2x256xf32, #tpu.memory_space<vmem>>, %arg11: memref<2x8x256xf32, #tpu.memory_space<vmem>>) attributes {dimension_semantics = [], scalar_prefetch = 0 : i64, scratch_operands = 0 : i64, tpu.core_type = #tpu.core_type<tc>} {
    %c0 = arith.constant 0 : index
    %c0_0 = arith.constant 0 : index
    %0 = vector.load %arg0[%c0, %c0_0] : memref<2x256xf32, #tpu.memory_space<vmem>>, vector<2x256xf32>
    %c0_1 = arith.constant 0 : index
    %c0_2 = arith.constant 0 : index
    %c0_3 = arith.constant 0 : index
    %1 = vector.load %arg1[%c0_1, %c0_2, %c0_3] : memref<2x8x256xf32, #tpu.memory_space<vmem>>, vector<2x8x256xf32>
    %2 = vector.extract_strided_slice %0 {offsets = [0, 0], sizes = [2, 32], strides = [1, 1]} : vector<2x256xf32> to vector<2x32xf32>
    %3 = vector.extract_strided_slice %0 {offsets = [0, 32], sizes = [2, 32], strides = [1, 1]} : vector<2x256xf32> to vector<2x32xf32>
    %4 = vector.extract_strided_slice %0 {offsets = [0, 64], sizes = [2, 32], strides = [1, 1]} : vector<2x256xf32> to vector<2x32xf32>
    %5 = vector.extract_strided_slice %0 {offsets = [0, 96], sizes = [2, 32], strides = [1, 1]} : vector<2x256xf32> to vector<2x32xf32>
    %6 = vector.extract_strided_slice %0 {offsets = [0, 128], sizes = [2, 32], strides = [1, 1]} : vector<2x256xf32> to vector<2x32xf32>
    %7 = vector.extract_strided_slice %0 {offsets = [0, 160], sizes = [2, 32], strides = [1, 1]} : vector<2x256xf32> to vector<2x32xf32>
    %8 = vector.extract_strided_slice %0 {offsets = [0, 192], sizes = [2, 32], strides = [1, 1]} : vector<2x256xf32> to vector<2x32xf32>
    %9 = vector.extract_strided_slice %0 {offsets = [0, 224], sizes = [2, 32], strides = [1, 1]} : vector<2x256xf32> to vector<2x32xf32>
    %10 = vector.shape_cast %2 : vector<2x32xf32> to vector<2x1x32xf32>
    %11 = vector.shape_cast %3 : vector<2x32xf32> to vector<2x1x32xf32>
    %12 = vector.shape_cast %4 : vector<2x32xf32> to vector<2x1x32xf32>
    %13 = vector.shape_cast %5 : vector<2x32xf32> to vector<2x1x32xf32>
    %14 = vector.shape_cast %6 : vector<2x32xf32> to vector<2x1x32xf32>
    %15 = vector.shape_cast %7 : vector<2x32xf32> to vector<2x1x32xf32>
    %16 = vector.shape_cast %8 : vector<2x32xf32> to vector<2x1x32xf32>
    %17 = vector.shape_cast %9 : vector<2x32xf32> to vector<2x1x32xf32>
    %18 = tpu.concatenate %10, %11, %12, %13, %14, %15, %16, %17 in 1 : vector<2x1x32xf32>, vector<2x1x32xf32>, vector<2x1x32xf32>, vector<2x1x32xf32>, vector<2x1x32xf32>, vector<2x1x32xf32>, vector<2x1x32xf32>, vector<2x1x32xf32> -> vector<2x8x32xf32>
    %19 = vector.shape_cast %18 : vector<2x8x32xf32> to vector<16x32xf32>
    %20 = vector.extract_strided_slice %1 {offsets = [0, 0, 0], sizes = [2, 8, 32], strides = [1, 1, 1]} : vector<2x8x256xf32> to vector<2x8x32xf32>
    %21 = vector.extract_strided_slice %1 {offsets = [0, 0, 32], sizes = [2, 8, 32], strides = [1, 1, 1]} : vector<2x8x256xf32> to vector<2x8x32xf32>
    %22 = vector.extract_strided_slice %1 {offsets = [0, 0, 64], sizes = [2, 8, 32], strides = [1, 1, 1]} : vector<2x8x256xf32> to vector<2x8x32xf32>
    %23 = vector.extract_strided_slice %1 {offsets = [0, 0, 96], sizes = [2, 8, 32], strides = [1, 1, 1]} : vector<2x8x256xf32> to vector<2x8x32xf32>
    %24 = vector.extract_strided_slice %1 {offsets = [0, 0, 128], sizes = [2, 8, 32], strides = [1, 1, 1]} : vector<2x8x256xf32> to vector<2x8x32xf32>
    %25 = vector.extract_strided_slice %1 {offsets = [0, 0, 160], sizes = [2, 8, 32], strides = [1, 1, 1]} : vector<2x8x256xf32> to vector<2x8x32xf32>
    %26 = vector.extract_strided_slice %1 {offsets = [0, 0, 192], sizes = [2, 8, 32], strides = [1, 1, 1]} : vector<2x8x256xf32> to vector<2x8x32xf32>
    %27 = vector.extract_strided_slice %1 {offsets = [0, 0, 224], sizes = [2, 8, 32], strides = [1, 1, 1]} : vector<2x8x256xf32> to vector<2x8x32xf32>
    %28 = vector.shape_cast %20 : vector<2x8x32xf32> to vector<2x8x1x32xf32>
    %29 = vector.shape_cast %21 : vector<2x8x32xf32> to vector<2x8x1x32xf32>
    %30 = vector.shape_cast %22 : vector<2x8x32xf32> to vector<2x8x1x32xf32>
    %31 = vector.shape_cast %23 : vector<2x8x32xf32> to vector<2x8x1x32xf32>
    %32 = vector.shape_cast %24 : vector<2x8x32xf32> to vector<2x8x1x32xf32>
    %33 = vector.shape_cast %25 : vector<2x8x32xf32> to vector<2x8x1x32xf32>
    %34 = vector.shape_cast %26 : vector<2x8x32xf32> to vector<2x8x1x32xf32>
    %35 = vector.shape_cast %27 : vector<2x8x32xf32> to vector<2x8x1x32xf32>
    %36 = tpu.concatenate %28, %29, %30, %31, %32, %33, %34, %35 in 2 : vector<2x8x1x32xf32>, vector<2x8x1x32xf32>, vector<2x8x1x32xf32>, vector<2x8x1x32xf32>, vector<2x8x1x32xf32>, vector<2x8x1x32xf32>, vector<2x8x1x32xf32>, vector<2x8x1x32xf32> -> vector<2x8x8x32xf32>
    %37 = vector.shape_cast %36 : vector<2x8x8x32xf32> to vector<128x32xf32>
    %c0_4 = arith.constant 0 : index
    %c0_5 = arith.constant 0 : index
    %c0_6 = arith.constant 0 : index
    %38 = vector.load %arg2[%c0_4, %c0_5, %c0_6] : memref<2x32x32xf32, #tpu.memory_space<vmem>>, vector<1x32x32xf32>
    %39 = vector.shape_cast %38 : vector<1x32x32xf32> to vector<32x32xf32>
    %cst = arith.constant dense<0.000000e+00> : vector<128x32xf32>
    %40 = tpu.matmul %37, %39, %cst {dimension_numbers = #tpu.dot_dimension_numbers<[1], [0], [0], [1], [0, 0, 1, 1], [], []>} : vector<128x32xf32>, vector<32x32xf32>, vector<128x32xf32> -> vector<128x32xf32>
    %c0_7 = arith.constant 0 : index
    %c0_8 = arith.constant 0 : index
    %c0_9 = arith.constant 0 : index
    %41 = vector.load %arg3[%c0_7, %c0_8, %c0_9] : memref<2x1x32xf32, #tpu.memory_space<vmem>>, vector<1x1x32xf32>
    %42 = vector.shape_cast %41 : vector<1x1x32xf32> to vector<1x32xf32>
    %43 = vector.broadcast %42 : vector<1x32xf32> to vector<128x32xf32>
    %44 = arith.addf %40, %43 : vector<128x32xf32>
    %c0_10 = arith.constant 0 : index
    %c0_11 = arith.constant 0 : index
    %c0_12 = arith.constant 0 : index
    %45 = vector.load %arg4[%c0_10, %c0_11, %c0_12] : memref<2x32x96xf32, #tpu.memory_space<vmem>>, vector<1x32x96xf32>
    %46 = vector.shape_cast %45 : vector<1x32x96xf32> to vector<32x96xf32>
    %cst_13 = arith.constant dense<0.000000e+00> : vector<16x96xf32>
    %47 = tpu.matmul %19, %46, %cst_13 {dimension_numbers = #tpu.dot_dimension_numbers<[1], [0], [0], [1], [0, 0, 1, 1], [], []>} : vector<16x32xf32>, vector<32x96xf32>, vector<16x96xf32> -> vector<16x96xf32>
    %c0_14 = arith.constant 0 : index
    %c0_15 = arith.constant 0 : index
    %c0_16 = arith.constant 0 : index
    %48 = vector.load %arg5[%c0_14, %c0_15, %c0_16] : memref<2x1x96xf32, #tpu.memory_space<vmem>>, vector<1x1x96xf32>
    %49 = vector.shape_cast %48 : vector<1x1x96xf32> to vector<1x96xf32>
    %50 = vector.broadcast %49 : vector<1x96xf32> to vector<16x96xf32>
    %51 = arith.addf %47, %50 : vector<16x96xf32>
    %52 = vector.extract_strided_slice %51 {offsets = [0, 0], sizes = [16, 32], strides = [1, 1]} : vector<16x96xf32> to vector<16x32xf32>
    %53 = vector.shape_cast %52 : vector<16x32xf32> to vector<2x8x32xf32>
    %54 = vector.extract_strided_slice %51 {offsets = [0, 32], sizes = [16, 32], strides = [1, 1]} : vector<16x96xf32> to vector<16x32xf32>
    %55 = vector.shape_cast %54 : vector<16x32xf32> to vector<2x8x32xf32>
    %56 = vector.extract_strided_slice %51 {offsets = [0, 64], sizes = [16, 32], strides = [1, 1]} : vector<16x96xf32> to vector<16x32xf32>
    %57 = vector.shape_cast %56 : vector<16x32xf32> to vector<2x8x32xf32>
    %58 = vector.shape_cast %44 : vector<128x32xf32> to vector<2x8x8x32xf32>
    %59 = vector.shape_cast %53 : vector<2x8x32xf32> to vector<2x8x1x32xf32>
    %60 = vector.broadcast %59 : vector<2x8x1x32xf32> to vector<2x8x8x32xf32>
    %61 = arith.addf %58, %60 : vector<2x8x8x32xf32>
    %62 = vector.shape_cast %53 : vector<2x8x32xf32> to vector<2x1x8x32xf32>
    %63 = vector.broadcast %62 : vector<2x1x8x32xf32> to vector<2x8x8x32xf32>
    %64 = arith.addf %61, %63 : vector<2x8x8x32xf32>
    %65 = arith.negf %64 : vector<2x8x8x32xf32>
    %66 = math.exp %65 : vector<2x8x8x32xf32>
    %cst_17 = arith.constant 1.000000e+00 : f32
    %67 = vector.broadcast %cst_17 : f32 to vector<2x8x8x32xf32>
    %68 = arith.addf %67, %66 : vector<2x8x8x32xf32>
    %69 = arith.divf %67, %68 : vector<2x8x8x32xf32>
    %70 = vector.shape_cast %57 : vector<2x8x32xf32> to vector<2x1x8x32xf32>
    %71 = vector.broadcast %70 : vector<2x1x8x32xf32> to vector<2x8x8x32xf32>
    %72 = arith.mulf %69, %71 : vector<2x8x8x32xf32>
    %cst_18 = arith.constant dense<0.000000e+00> : vector<2x8x32xf32>
    %73 = vector.multi_reduction <add>, %72, %cst_18 [2] : vector<2x8x8x32xf32> to vector<2x8x32xf32>
    %cst_19 = arith.constant dense<0.000000e+00> : vector<2x8x32xf32>
    %74 = vector.multi_reduction <add>, %69, %cst_19 [2] : vector<2x8x8x32xf32> to vector<2x8x32xf32>
    %cst_20 = arith.constant 9.99999968E-21 : f32
    %75 = vector.broadcast %cst_20 : f32 to vector<2x8x32xf32>
    %76 = arith.addf %75, %74 : vector<2x8x32xf32>
    %77 = tpu.reciprocal %76 : vector<2x8x32xf32> -> vector<2x8x32xf32>
    %78 = arith.mulf %73, %77 : vector<2x8x32xf32>
    %79 = arith.addf %55, %78 : vector<2x8x32xf32>
    %80 = vector.shape_cast %64 : vector<2x8x8x32xf32> to vector<128x32xf32>
    %cst_21 = arith.constant dense<0.000000e+00> : vector<32xf32>
    %81 = vector.multi_reduction <add>, %80, %cst_21 [0] : vector<128x32xf32> to vector<32xf32>
    %82 = vector.shape_cast %81 : vector<32xf32> to vector<1x32xf32>
    %cst_22 = arith.constant 7.812500e-03 : f32
    %83 = vector.broadcast %cst_22 : f32 to vector<1x32xf32>
    %84 = arith.mulf %82, %83 : vector<1x32xf32>
    %85 = arith.mulf %80, %80 : vector<128x32xf32>
    %cst_23 = arith.constant dense<0.000000e+00> : vector<32xf32>
    %86 = vector.multi_reduction <add>, %85, %cst_23 [0] : vector<128x32xf32> to vector<32xf32>
    %87 = vector.shape_cast %86 : vector<32xf32> to vector<1x32xf32>
    %cst_24 = arith.constant 7.812500e-03 : f32
    %88 = vector.broadcast %cst_24 : f32 to vector<1x32xf32>
    %89 = arith.mulf %87, %88 : vector<1x32xf32>
    %90 = arith.mulf %84, %84 : vector<1x32xf32>
    %91 = arith.subf %89, %90 : vector<1x32xf32>
    %c0_25 = arith.constant 0 : index
    %c0_26 = arith.constant 0 : index
    %c0_27 = arith.constant 0 : index
    %92 = vector.load %arg6[%c0_25, %c0_26, %c0_27] : memref<2x1x32xf32, #tpu.memory_space<vmem>>, vector<1x1x32xf32>
    %93 = vector.shape_cast %92 : vector<1x1x32xf32> to vector<1x32xf32>
    %cst_28 = arith.constant 9.99999974E-6 : f32
    %94 = vector.broadcast %cst_28 : f32 to vector<1x32xf32>
    %95 = arith.addf %91, %94 : vector<1x32xf32>
    %96 = math.rsqrt %95 : vector<1x32xf32>
    %97 = arith.mulf %93, %96 : vector<1x32xf32>
    %c0_29 = arith.constant 0 : index
    %c0_30 = arith.constant 0 : index
    %c0_31 = arith.constant 0 : index
    %98 = vector.load %arg7[%c0_29, %c0_30, %c0_31] : memref<2x1x32xf32, #tpu.memory_space<vmem>>, vector<1x1x32xf32>
    %99 = vector.shape_cast %98 : vector<1x1x32xf32> to vector<1x32xf32>
    %100 = arith.mulf %84, %97 : vector<1x32xf32>
    %101 = arith.subf %99, %100 : vector<1x32xf32>
    %102 = vector.shape_cast %79 : vector<2x8x32xf32> to vector<16x32xf32>
    %cst_32 = arith.constant dense<0.000000e+00> : vector<32xf32>
    %103 = vector.multi_reduction <add>, %102, %cst_32 [0] : vector<16x32xf32> to vector<32xf32>
    %104 = vector.shape_cast %103 : vector<32xf32> to vector<1x32xf32>
    %cst_33 = arith.constant 6.250000e-02 : f32
    %105 = vector.broadcast %cst_33 : f32 to vector<1x32xf32>
    %106 = arith.mulf %104, %105 : vector<1x32xf32>
    %107 = arith.mulf %102, %102 : vector<16x32xf32>
    %cst_34 = arith.constant dense<0.000000e+00> : vector<32xf32>
    %108 = vector.multi_reduction <add>, %107, %cst_34 [0] : vector<16x32xf32> to vector<32xf32>
    %109 = vector.shape_cast %108 : vector<32xf32> to vector<1x32xf32>
    %cst_35 = arith.constant 6.250000e-02 : f32
    %110 = vector.broadcast %cst_35 : f32 to vector<1x32xf32>
    %111 = arith.mulf %109, %110 : vector<1x32xf32>
    %112 = arith.mulf %106, %106 : vector<1x32xf32>
    %113 = arith.subf %111, %112 : vector<1x32xf32>
    %c0_36 = arith.constant 0 : index
    %c0_37 = arith.constant 0 : index
    %c0_38 = arith.constant 0 : index
    %114 = vector.load %arg8[%c0_36, %c0_37, %c0_38] : memref<2x1x32xf32, #tpu.memory_space<vmem>>, vector<1x1x32xf32>
    %115 = vector.shape_cast %114 : vector<1x1x32xf32> to vector<1x32xf32>
    %cst_39 = arith.constant 9.99999974E-6 : f32
    %116 = vector.broadcast %cst_39 : f32 to vector<1x32xf32>
    %117 = arith.addf %113, %116 : vector<1x32xf32>
    %118 = math.rsqrt %117 : vector<1x32xf32>
    %119 = arith.mulf %115, %118 : vector<1x32xf32>
    %c0_40 = arith.constant 0 : index
    %c0_41 = arith.constant 0 : index
    %c0_42 = arith.constant 0 : index
    %120 = vector.load %arg9[%c0_40, %c0_41, %c0_42] : memref<2x1x32xf32, #tpu.memory_space<vmem>>, vector<1x1x32xf32>
    %121 = vector.shape_cast %120 : vector<1x1x32xf32> to vector<1x32xf32>
    %122 = arith.mulf %106, %119 : vector<1x32xf32>
    %123 = arith.subf %121, %122 : vector<1x32xf32>
    %124 = vector.extract_strided_slice %64 {offsets = [0, 0, 0, 0], sizes = [2, 8, 1, 32], strides = [1, 1, 1, 1]} : vector<2x8x8x32xf32> to vector<2x8x1x32xf32>
    %125 = vector.shape_cast %124 : vector<2x8x1x32xf32> to vector<2x8x32xf32>
    %126 = vector.extract_strided_slice %64 {offsets = [0, 0, 1, 0], sizes = [2, 8, 1, 32], strides = [1, 1, 1, 1]} : vector<2x8x8x32xf32> to vector<2x8x1x32xf32>
    %127 = vector.shape_cast %126 : vector<2x8x1x32xf32> to vector<2x8x32xf32>
    %128 = vector.extract_strided_slice %64 {offsets = [0, 0, 2, 0], sizes = [2, 8, 1, 32], strides = [1, 1, 1, 1]} : vector<2x8x8x32xf32> to vector<2x8x1x32xf32>
    %129 = vector.shape_cast %128 : vector<2x8x1x32xf32> to vector<2x8x32xf32>
    %130 = vector.extract_strided_slice %64 {offsets = [0, 0, 3, 0], sizes = [2, 8, 1, 32], strides = [1, 1, 1, 1]} : vector<2x8x8x32xf32> to vector<2x8x1x32xf32>
    %131 = vector.shape_cast %130 : vector<2x8x1x32xf32> to vector<2x8x32xf32>
    %132 = vector.extract_strided_slice %64 {offsets = [0, 0, 4, 0], sizes = [2, 8, 1, 32], strides = [1, 1, 1, 1]} : vector<2x8x8x32xf32> to vector<2x8x1x32xf32>
    %133 = vector.shape_cast %132 : vector<2x8x1x32xf32> to vector<2x8x32xf32>
    %134 = vector.extract_strided_slice %64 {offsets = [0, 0, 5, 0], sizes = [2, 8, 1, 32], strides = [1, 1, 1, 1]} : vector<2x8x8x32xf32> to vector<2x8x1x32xf32>
    %135 = vector.shape_cast %134 : vector<2x8x1x32xf32> to vector<2x8x32xf32>
    %136 = vector.extract_strided_slice %64 {offsets = [0, 0, 6, 0], sizes = [2, 8, 1, 32], strides = [1, 1, 1, 1]} : vector<2x8x8x32xf32> to vector<2x8x1x32xf32>
    %137 = vector.shape_cast %136 : vector<2x8x1x32xf32> to vector<2x8x32xf32>
    %138 = vector.extract_strided_slice %64 {offsets = [0, 0, 7, 0], sizes = [2, 8, 1, 32], strides = [1, 1, 1, 1]} : vector<2x8x8x32xf32> to vector<2x8x1x32xf32>
    %139 = vector.shape_cast %138 : vector<2x8x1x32xf32> to vector<2x8x32xf32>
    %140 = tpu.concatenate %125, %127, %129, %131, %133, %135, %137, %139 in 2 : vector<2x8x32xf32>, vector<2x8x32xf32>, vector<2x8x32xf32>, vector<2x8x32xf32>, vector<2x8x32xf32>, vector<2x8x32xf32>, vector<2x8x32xf32>, vector<2x8x32xf32> -> vector<2x8x256xf32>
    %141 = tpu.concatenate %97, %97, %97, %97, %97, %97, %97, %97 in 1 : vector<1x32xf32>, vector<1x32xf32>, vector<1x32xf32>, vector<1x32xf32>, vector<1x32xf32>, vector<1x32xf32>, vector<1x32xf32>, vector<1x32xf32> -> vector<1x256xf32>
    %142 = vector.shape_cast %141 : vector<1x256xf32> to vector<1x1x256xf32>
    %143 = tpu.concatenate %101, %101, %101, %101, %101, %101, %101, %101 in 1 : vector<1x32xf32>, vector<1x32xf32>, vector<1x32xf32>, vector<1x32xf32>, vector<1x32xf32>, vector<1x32xf32>, vector<1x32xf32>, vector<1x32xf32> -> vector<1x256xf32>
    %144 = vector.shape_cast %143 : vector<1x256xf32> to vector<1x1x256xf32>
    %145 = vector.broadcast %142 : vector<1x1x256xf32> to vector<2x8x256xf32>
    %146 = arith.mulf %140, %145 : vector<2x8x256xf32>
    %147 = vector.broadcast %144 : vector<1x1x256xf32> to vector<2x8x256xf32>
    %148 = arith.addf %146, %147 : vector<2x8x256xf32>
    %cst_43 = arith.constant 0.000000e+00 : f32
    %149 = vector.broadcast %cst_43 : f32 to vector<2x8x256xf32>
    %150 = arith.maximumf %148, %149 : vector<2x8x256xf32>
    %151 = arith.addf %1, %150 : vector<2x8x256xf32>
    %152 = vector.extract_strided_slice %79 {offsets = [0, 0, 0], sizes = [2, 1, 32], strides = [1, 1, 1]} : vector<2x8x32xf32> to vector<2x1x32xf32>
    %153 = vector.shape_cast %152 : vector<2x1x32xf32> to vector<2x32xf32>
    %154 = vector.extract_strided_slice %79 {offsets = [0, 1, 0], sizes = [2, 1, 32], strides = [1, 1, 1]} : vector<2x8x32xf32> to vector<2x1x32xf32>
    %155 = vector.shape_cast %154 : vector<2x1x32xf32> to vector<2x32xf32>
    %156 = vector.extract_strided_slice %79 {offsets = [0, 2, 0], sizes = [2, 1, 32], strides = [1, 1, 1]} : vector<2x8x32xf32> to vector<2x1x32xf32>
    %157 = vector.shape_cast %156 : vector<2x1x32xf32> to vector<2x32xf32>
    %158 = vector.extract_strided_slice %79 {offsets = [0, 3, 0], sizes = [2, 1, 32], strides = [1, 1, 1]} : vector<2x8x32xf32> to vector<2x1x32xf32>
    %159 = vector.shape_cast %158 : vector<2x1x32xf32> to vector<2x32xf32>
    %160 = vector.extract_strided_slice %79 {offsets = [0, 4, 0], sizes = [2, 1, 32], strides = [1, 1, 1]} : vector<2x8x32xf32> to vector<2x1x32xf32>
    %161 = vector.shape_cast %160 : vector<2x1x32xf32> to vector<2x32xf32>
    %162 = vector.extract_strided_slice %79 {offsets = [0, 5, 0], sizes = [2, 1, 32], strides = [1, 1, 1]} : vector<2x8x32xf32> to vector<2x1x32xf32>
    %163 = vector.shape_cast %162 : vector<2x1x32xf32> to vector<2x32xf32>
    %164 = vector.extract_strided_slice %79 {offsets = [0, 6, 0], sizes = [2, 1, 32], strides = [1, 1, 1]} : vector<2x8x32xf32> to vector<2x1x32xf32>
    %165 = vector.shape_cast %164 : vector<2x1x32xf32> to vector<2x32xf32>
    %166 = vector.extract_strided_slice %79 {offsets = [0, 7, 0], sizes = [2, 1, 32], strides = [1, 1, 1]} : vector<2x8x32xf32> to vector<2x1x32xf32>
    %167 = vector.shape_cast %166 : vector<2x1x32xf32> to vector<2x32xf32>
    %168 = tpu.concatenate %153, %155, %157, %159, %161, %163, %165, %167 in 1 : vector<2x32xf32>, vector<2x32xf32>, vector<2x32xf32>, vector<2x32xf32>, vector<2x32xf32>, vector<2x32xf32>, vector<2x32xf32>, vector<2x32xf32> -> vector<2x256xf32>
    %169 = tpu.concatenate %119, %119, %119, %119, %119, %119, %119, %119 in 1 : vector<1x32xf32>, vector<1x32xf32>, vector<1x32xf32>, vector<1x32xf32>, vector<1x32xf32>, vector<1x32xf32>, vector<1x32xf32>, vector<1x32xf32> -> vector<1x256xf32>
    %170 = tpu.concatenate %123, %123, %123, %123, %123, %123, %123, %123 in 1 : vector<1x32xf32>, vector<1x32xf32>, vector<1x32xf32>, vector<1x32xf32>, vector<1x32xf32>, vector<1x32xf32>, vector<1x32xf32>, vector<1x32xf32> -> vector<1x256xf32>
    %171 = vector.broadcast %169 : vector<1x256xf32> to vector<2x256xf32>
    %172 = arith.mulf %168, %171 : vector<2x256xf32>
    %173 = vector.broadcast %170 : vector<1x256xf32> to vector<2x256xf32>
    %174 = arith.addf %172, %173 : vector<2x256xf32>
    %cst_44 = arith.constant 0.000000e+00 : f32
    %175 = vector.broadcast %cst_44 : f32 to vector<2x256xf32>
    %176 = arith.maximumf %174, %175 : vector<2x256xf32>
    %177 = arith.addf %0, %176 : vector<2x256xf32>
    %178 = vector.extract_strided_slice %177 {offsets = [0, 0], sizes = [2, 32], strides = [1, 1]} : vector<2x256xf32> to vector<2x32xf32>
    %179 = vector.extract_strided_slice %177 {offsets = [0, 32], sizes = [2, 32], strides = [1, 1]} : vector<2x256xf32> to vector<2x32xf32>
    %180 = vector.extract_strided_slice %177 {offsets = [0, 64], sizes = [2, 32], strides = [1, 1]} : vector<2x256xf32> to vector<2x32xf32>
    %181 = vector.extract_strided_slice %177 {offsets = [0, 96], sizes = [2, 32], strides = [1, 1]} : vector<2x256xf32> to vector<2x32xf32>
    %182 = vector.extract_strided_slice %177 {offsets = [0, 128], sizes = [2, 32], strides = [1, 1]} : vector<2x256xf32> to vector<2x32xf32>
    %183 = vector.extract_strided_slice %177 {offsets = [0, 160], sizes = [2, 32], strides = [1, 1]} : vector<2x256xf32> to vector<2x32xf32>
    %184 = vector.extract_strided_slice %177 {offsets = [0, 192], sizes = [2, 32], strides = [1, 1]} : vector<2x256xf32> to vector<2x32xf32>
    %185 = vector.extract_strided_slice %177 {offsets = [0, 224], sizes = [2, 32], strides = [1, 1]} : vector<2x256xf32> to vector<2x32xf32>
    %186 = vector.shape_cast %178 : vector<2x32xf32> to vector<2x1x32xf32>
    %187 = vector.shape_cast %179 : vector<2x32xf32> to vector<2x1x32xf32>
    %188 = vector.shape_cast %180 : vector<2x32xf32> to vector<2x1x32xf32>
    %189 = vector.shape_cast %181 : vector<2x32xf32> to vector<2x1x32xf32>
    %190 = vector.shape_cast %182 : vector<2x32xf32> to vector<2x1x32xf32>
    %191 = vector.shape_cast %183 : vector<2x32xf32> to vector<2x1x32xf32>
    %192 = vector.shape_cast %184 : vector<2x32xf32> to vector<2x1x32xf32>
    %193 = vector.shape_cast %185 : vector<2x32xf32> to vector<2x1x32xf32>
    %194 = tpu.concatenate %186, %187, %188, %189, %190, %191, %192, %193 in 1 : vector<2x1x32xf32>, vector<2x1x32xf32>, vector<2x1x32xf32>, vector<2x1x32xf32>, vector<2x1x32xf32>, vector<2x1x32xf32>, vector<2x1x32xf32>, vector<2x1x32xf32> -> vector<2x8x32xf32>
    %195 = vector.shape_cast %194 : vector<2x8x32xf32> to vector<16x32xf32>
    %196 = vector.extract_strided_slice %151 {offsets = [0, 0, 0], sizes = [2, 8, 32], strides = [1, 1, 1]} : vector<2x8x256xf32> to vector<2x8x32xf32>
    %197 = vector.extract_strided_slice %151 {offsets = [0, 0, 32], sizes = [2, 8, 32], strides = [1, 1, 1]} : vector<2x8x256xf32> to vector<2x8x32xf32>
    %198 = vector.extract_strided_slice %151 {offsets = [0, 0, 64], sizes = [2, 8, 32], strides = [1, 1, 1]} : vector<2x8x256xf32> to vector<2x8x32xf32>
    %199 = vector.extract_strided_slice %151 {offsets = [0, 0, 96], sizes = [2, 8, 32], strides = [1, 1, 1]} : vector<2x8x256xf32> to vector<2x8x32xf32>
    %200 = vector.extract_strided_slice %151 {offsets = [0, 0, 128], sizes = [2, 8, 32], strides = [1, 1, 1]} : vector<2x8x256xf32> to vector<2x8x32xf32>
    %201 = vector.extract_strided_slice %151 {offsets = [0, 0, 160], sizes = [2, 8, 32], strides = [1, 1, 1]} : vector<2x8x256xf32> to vector<2x8x32xf32>
    %202 = vector.extract_strided_slice %151 {offsets = [0, 0, 192], sizes = [2, 8, 32], strides = [1, 1, 1]} : vector<2x8x256xf32> to vector<2x8x32xf32>
    %203 = vector.extract_strided_slice %151 {offsets = [0, 0, 224], sizes = [2, 8, 32], strides = [1, 1, 1]} : vector<2x8x256xf32> to vector<2x8x32xf32>
    %204 = vector.shape_cast %196 : vector<2x8x32xf32> to vector<2x8x1x32xf32>
    %205 = vector.shape_cast %197 : vector<2x8x32xf32> to vector<2x8x1x32xf32>
    %206 = vector.shape_cast %198 : vector<2x8x32xf32> to vector<2x8x1x32xf32>
    %207 = vector.shape_cast %199 : vector<2x8x32xf32> to vector<2x8x1x32xf32>
    %208 = vector.shape_cast %200 : vector<2x8x32xf32> to vector<2x8x1x32xf32>
    %209 = vector.shape_cast %201 : vector<2x8x32xf32> to vector<2x8x1x32xf32>
    %210 = vector.shape_cast %202 : vector<2x8x32xf32> to vector<2x8x1x32xf32>
    %211 = vector.shape_cast %203 : vector<2x8x32xf32> to vector<2x8x1x32xf32>
    %212 = tpu.concatenate %204, %205, %206, %207, %208, %209, %210, %211 in 2 : vector<2x8x1x32xf32>, vector<2x8x1x32xf32>, vector<2x8x1x32xf32>, vector<2x8x1x32xf32>, vector<2x8x1x32xf32>, vector<2x8x1x32xf32>, vector<2x8x1x32xf32>, vector<2x8x1x32xf32> -> vector<2x8x8x32xf32>
    %213 = vector.shape_cast %212 : vector<2x8x8x32xf32> to vector<128x32xf32>
    %c1 = arith.constant 1 : index
    %c0_45 = arith.constant 0 : index
    %c0_46 = arith.constant 0 : index
    %214 = vector.load %arg2[%c1, %c0_45, %c0_46] : memref<2x32x32xf32, #tpu.memory_space<vmem>>, vector<1x32x32xf32>
    %215 = vector.shape_cast %214 : vector<1x32x32xf32> to vector<32x32xf32>
    %cst_47 = arith.constant dense<0.000000e+00> : vector<128x32xf32>
    %216 = tpu.matmul %213, %215, %cst_47 {dimension_numbers = #tpu.dot_dimension_numbers<[1], [0], [0], [1], [0, 0, 1, 1], [], []>} : vector<128x32xf32>, vector<32x32xf32>, vector<128x32xf32> -> vector<128x32xf32>
    %c1_48 = arith.constant 1 : index
    %c0_49 = arith.constant 0 : index
    %c0_50 = arith.constant 0 : index
    %217 = vector.load %arg3[%c1_48, %c0_49, %c0_50] : memref<2x1x32xf32, #tpu.memory_space<vmem>>, vector<1x1x32xf32>
    %218 = vector.shape_cast %217 : vector<1x1x32xf32> to vector<1x32xf32>
    %219 = vector.broadcast %218 : vector<1x32xf32> to vector<128x32xf32>
    %220 = arith.addf %216, %219 : vector<128x32xf32>
    %c1_51 = arith.constant 1 : index
    %c0_52 = arith.constant 0 : index
    %c0_53 = arith.constant 0 : index
    %221 = vector.load %arg4[%c1_51, %c0_52, %c0_53] : memref<2x32x96xf32, #tpu.memory_space<vmem>>, vector<1x32x96xf32>
    %222 = vector.shape_cast %221 : vector<1x32x96xf32> to vector<32x96xf32>
    %cst_54 = arith.constant dense<0.000000e+00> : vector<16x96xf32>
    %223 = tpu.matmul %195, %222, %cst_54 {dimension_numbers = #tpu.dot_dimension_numbers<[1], [0], [0], [1], [0, 0, 1, 1], [], []>} : vector<16x32xf32>, vector<32x96xf32>, vector<16x96xf32> -> vector<16x96xf32>
    %c1_55 = arith.constant 1 : index
    %c0_56 = arith.constant 0 : index
    %c0_57 = arith.constant 0 : index
    %224 = vector.load %arg5[%c1_55, %c0_56, %c0_57] : memref<2x1x96xf32, #tpu.memory_space<vmem>>, vector<1x1x96xf32>
    %225 = vector.shape_cast %224 : vector<1x1x96xf32> to vector<1x96xf32>
    %226 = vector.broadcast %225 : vector<1x96xf32> to vector<16x96xf32>
    %227 = arith.addf %223, %226 : vector<16x96xf32>
    %228 = vector.extract_strided_slice %227 {offsets = [0, 0], sizes = [16, 32], strides = [1, 1]} : vector<16x96xf32> to vector<16x32xf32>
    %229 = vector.shape_cast %228 : vector<16x32xf32> to vector<2x8x32xf32>
    %230 = vector.extract_strided_slice %227 {offsets = [0, 32], sizes = [16, 32], strides = [1, 1]} : vector<16x96xf32> to vector<16x32xf32>
    %231 = vector.shape_cast %230 : vector<16x32xf32> to vector<2x8x32xf32>
    %232 = vector.extract_strided_slice %227 {offsets = [0, 64], sizes = [16, 32], strides = [1, 1]} : vector<16x96xf32> to vector<16x32xf32>
    %233 = vector.shape_cast %232 : vector<16x32xf32> to vector<2x8x32xf32>
    %234 = vector.shape_cast %220 : vector<128x32xf32> to vector<2x8x8x32xf32>
    %235 = vector.shape_cast %229 : vector<2x8x32xf32> to vector<2x8x1x32xf32>
    %236 = vector.broadcast %235 : vector<2x8x1x32xf32> to vector<2x8x8x32xf32>
    %237 = arith.addf %234, %236 : vector<2x8x8x32xf32>
    %238 = vector.shape_cast %229 : vector<2x8x32xf32> to vector<2x1x8x32xf32>
    %239 = vector.broadcast %238 : vector<2x1x8x32xf32> to vector<2x8x8x32xf32>
    %240 = arith.addf %237, %239 : vector<2x8x8x32xf32>
    %241 = arith.negf %240 : vector<2x8x8x32xf32>
    %242 = math.exp %241 : vector<2x8x8x32xf32>
    %cst_58 = arith.constant 1.000000e+00 : f32
    %243 = vector.broadcast %cst_58 : f32 to vector<2x8x8x32xf32>
    %244 = arith.addf %243, %242 : vector<2x8x8x32xf32>
    %245 = arith.divf %243, %244 : vector<2x8x8x32xf32>
    %246 = vector.shape_cast %233 : vector<2x8x32xf32> to vector<2x1x8x32xf32>
    %247 = vector.broadcast %246 : vector<2x1x8x32xf32> to vector<2x8x8x32xf32>
    %248 = arith.mulf %245, %247 : vector<2x8x8x32xf32>
    %cst_59 = arith.constant dense<0.000000e+00> : vector<2x8x32xf32>
    %249 = vector.multi_reduction <add>, %248, %cst_59 [2] : vector<2x8x8x32xf32> to vector<2x8x32xf32>
    %cst_60 = arith.constant dense<0.000000e+00> : vector<2x8x32xf32>
    %250 = vector.multi_reduction <add>, %245, %cst_60 [2] : vector<2x8x8x32xf32> to vector<2x8x32xf32>
    %cst_61 = arith.constant 9.99999968E-21 : f32
    %251 = vector.broadcast %cst_61 : f32 to vector<2x8x32xf32>
    %252 = arith.addf %251, %250 : vector<2x8x32xf32>
    %253 = tpu.reciprocal %252 : vector<2x8x32xf32> -> vector<2x8x32xf32>
    %254 = arith.mulf %249, %253 : vector<2x8x32xf32>
    %255 = arith.addf %231, %254 : vector<2x8x32xf32>
    %256 = vector.shape_cast %240 : vector<2x8x8x32xf32> to vector<128x32xf32>
    %cst_62 = arith.constant dense<0.000000e+00> : vector<32xf32>
    %257 = vector.multi_reduction <add>, %256, %cst_62 [0] : vector<128x32xf32> to vector<32xf32>
    %258 = vector.shape_cast %257 : vector<32xf32> to vector<1x32xf32>
    %cst_63 = arith.constant 7.812500e-03 : f32
    %259 = vector.broadcast %cst_63 : f32 to vector<1x32xf32>
    %260 = arith.mulf %258, %259 : vector<1x32xf32>
    %261 = arith.mulf %256, %256 : vector<128x32xf32>
    %cst_64 = arith.constant dense<0.000000e+00> : vector<32xf32>
    %262 = vector.multi_reduction <add>, %261, %cst_64 [0] : vector<128x32xf32> to vector<32xf32>
    %263 = vector.shape_cast %262 : vector<32xf32> to vector<1x32xf32>
    %cst_65 = arith.constant 7.812500e-03 : f32
    %264 = vector.broadcast %cst_65 : f32 to vector<1x32xf32>
    %265 = arith.mulf %263, %264 : vector<1x32xf32>
    %266 = arith.mulf %260, %260 : vector<1x32xf32>
    %267 = arith.subf %265, %266 : vector<1x32xf32>
    %c1_66 = arith.constant 1 : index
    %c0_67 = arith.constant 0 : index
    %c0_68 = arith.constant 0 : index
    %268 = vector.load %arg6[%c1_66, %c0_67, %c0_68] : memref<2x1x32xf32, #tpu.memory_space<vmem>>, vector<1x1x32xf32>
    %269 = vector.shape_cast %268 : vector<1x1x32xf32> to vector<1x32xf32>
    %cst_69 = arith.constant 9.99999974E-6 : f32
    %270 = vector.broadcast %cst_69 : f32 to vector<1x32xf32>
    %271 = arith.addf %267, %270 : vector<1x32xf32>
    %272 = math.rsqrt %271 : vector<1x32xf32>
    %273 = arith.mulf %269, %272 : vector<1x32xf32>
    %c1_70 = arith.constant 1 : index
    %c0_71 = arith.constant 0 : index
    %c0_72 = arith.constant 0 : index
    %274 = vector.load %arg7[%c1_70, %c0_71, %c0_72] : memref<2x1x32xf32, #tpu.memory_space<vmem>>, vector<1x1x32xf32>
    %275 = vector.shape_cast %274 : vector<1x1x32xf32> to vector<1x32xf32>
    %276 = arith.mulf %260, %273 : vector<1x32xf32>
    %277 = arith.subf %275, %276 : vector<1x32xf32>
    %278 = vector.shape_cast %255 : vector<2x8x32xf32> to vector<16x32xf32>
    %cst_73 = arith.constant dense<0.000000e+00> : vector<32xf32>
    %279 = vector.multi_reduction <add>, %278, %cst_73 [0] : vector<16x32xf32> to vector<32xf32>
    %280 = vector.shape_cast %279 : vector<32xf32> to vector<1x32xf32>
    %cst_74 = arith.constant 6.250000e-02 : f32
    %281 = vector.broadcast %cst_74 : f32 to vector<1x32xf32>
    %282 = arith.mulf %280, %281 : vector<1x32xf32>
    %283 = arith.mulf %278, %278 : vector<16x32xf32>
    %cst_75 = arith.constant dense<0.000000e+00> : vector<32xf32>
    %284 = vector.multi_reduction <add>, %283, %cst_75 [0] : vector<16x32xf32> to vector<32xf32>
    %285 = vector.shape_cast %284 : vector<32xf32> to vector<1x32xf32>
    %cst_76 = arith.constant 6.250000e-02 : f32
    %286 = vector.broadcast %cst_76 : f32 to vector<1x32xf32>
    %287 = arith.mulf %285, %286 : vector<1x32xf32>
    %288 = arith.mulf %282, %282 : vector<1x32xf32>
    %289 = arith.subf %287, %288 : vector<1x32xf32>
    %c1_77 = arith.constant 1 : index
    %c0_78 = arith.constant 0 : index
    %c0_79 = arith.constant 0 : index
    %290 = vector.load %arg8[%c1_77, %c0_78, %c0_79] : memref<2x1x32xf32, #tpu.memory_space<vmem>>, vector<1x1x32xf32>
    %291 = vector.shape_cast %290 : vector<1x1x32xf32> to vector<1x32xf32>
    %cst_80 = arith.constant 9.99999974E-6 : f32
    %292 = vector.broadcast %cst_80 : f32 to vector<1x32xf32>
    %293 = arith.addf %289, %292 : vector<1x32xf32>
    %294 = math.rsqrt %293 : vector<1x32xf32>
    %295 = arith.mulf %291, %294 : vector<1x32xf32>
    %c1_81 = arith.constant 1 : index
    %c0_82 = arith.constant 0 : index
    %c0_83 = arith.constant 0 : index
    %296 = vector.load %arg9[%c1_81, %c0_82, %c0_83] : memref<2x1x32xf32, #tpu.memory_space<vmem>>, vector<1x1x32xf32>
    %297 = vector.shape_cast %296 : vector<1x1x32xf32> to vector<1x32xf32>
    %298 = arith.mulf %282, %295 : vector<1x32xf32>
    %299 = arith.subf %297, %298 : vector<1x32xf32>
    %300 = vector.extract_strided_slice %240 {offsets = [0, 0, 0, 0], sizes = [2, 8, 1, 32], strides = [1, 1, 1, 1]} : vector<2x8x8x32xf32> to vector<2x8x1x32xf32>
    %301 = vector.shape_cast %300 : vector<2x8x1x32xf32> to vector<2x8x32xf32>
    %302 = vector.extract_strided_slice %240 {offsets = [0, 0, 1, 0], sizes = [2, 8, 1, 32], strides = [1, 1, 1, 1]} : vector<2x8x8x32xf32> to vector<2x8x1x32xf32>
    %303 = vector.shape_cast %302 : vector<2x8x1x32xf32> to vector<2x8x32xf32>
    %304 = vector.extract_strided_slice %240 {offsets = [0, 0, 2, 0], sizes = [2, 8, 1, 32], strides = [1, 1, 1, 1]} : vector<2x8x8x32xf32> to vector<2x8x1x32xf32>
    %305 = vector.shape_cast %304 : vector<2x8x1x32xf32> to vector<2x8x32xf32>
    %306 = vector.extract_strided_slice %240 {offsets = [0, 0, 3, 0], sizes = [2, 8, 1, 32], strides = [1, 1, 1, 1]} : vector<2x8x8x32xf32> to vector<2x8x1x32xf32>
    %307 = vector.shape_cast %306 : vector<2x8x1x32xf32> to vector<2x8x32xf32>
    %308 = vector.extract_strided_slice %240 {offsets = [0, 0, 4, 0], sizes = [2, 8, 1, 32], strides = [1, 1, 1, 1]} : vector<2x8x8x32xf32> to vector<2x8x1x32xf32>
    %309 = vector.shape_cast %308 : vector<2x8x1x32xf32> to vector<2x8x32xf32>
    %310 = vector.extract_strided_slice %240 {offsets = [0, 0, 5, 0], sizes = [2, 8, 1, 32], strides = [1, 1, 1, 1]} : vector<2x8x8x32xf32> to vector<2x8x1x32xf32>
    %311 = vector.shape_cast %310 : vector<2x8x1x32xf32> to vector<2x8x32xf32>
    %312 = vector.extract_strided_slice %240 {offsets = [0, 0, 6, 0], sizes = [2, 8, 1, 32], strides = [1, 1, 1, 1]} : vector<2x8x8x32xf32> to vector<2x8x1x32xf32>
    %313 = vector.shape_cast %312 : vector<2x8x1x32xf32> to vector<2x8x32xf32>
    %314 = vector.extract_strided_slice %240 {offsets = [0, 0, 7, 0], sizes = [2, 8, 1, 32], strides = [1, 1, 1, 1]} : vector<2x8x8x32xf32> to vector<2x8x1x32xf32>
    %315 = vector.shape_cast %314 : vector<2x8x1x32xf32> to vector<2x8x32xf32>
    %316 = tpu.concatenate %301, %303, %305, %307, %309, %311, %313, %315 in 2 : vector<2x8x32xf32>, vector<2x8x32xf32>, vector<2x8x32xf32>, vector<2x8x32xf32>, vector<2x8x32xf32>, vector<2x8x32xf32>, vector<2x8x32xf32>, vector<2x8x32xf32> -> vector<2x8x256xf32>
    %317 = tpu.concatenate %273, %273, %273, %273, %273, %273, %273, %273 in 1 : vector<1x32xf32>, vector<1x32xf32>, vector<1x32xf32>, vector<1x32xf32>, vector<1x32xf32>, vector<1x32xf32>, vector<1x32xf32>, vector<1x32xf32> -> vector<1x256xf32>
    %318 = vector.shape_cast %317 : vector<1x256xf32> to vector<1x1x256xf32>
    %319 = tpu.concatenate %277, %277, %277, %277, %277, %277, %277, %277 in 1 : vector<1x32xf32>, vector<1x32xf32>, vector<1x32xf32>, vector<1x32xf32>, vector<1x32xf32>, vector<1x32xf32>, vector<1x32xf32>, vector<1x32xf32> -> vector<1x256xf32>
    %320 = vector.shape_cast %319 : vector<1x256xf32> to vector<1x1x256xf32>
    %321 = vector.broadcast %318 : vector<1x1x256xf32> to vector<2x8x256xf32>
    %322 = arith.mulf %316, %321 : vector<2x8x256xf32>
    %323 = vector.broadcast %320 : vector<1x1x256xf32> to vector<2x8x256xf32>
    %324 = arith.addf %322, %323 : vector<2x8x256xf32>
    %cst_84 = arith.constant 0.000000e+00 : f32
    %325 = vector.broadcast %cst_84 : f32 to vector<2x8x256xf32>
    %326 = arith.maximumf %324, %325 : vector<2x8x256xf32>
    %327 = arith.addf %151, %326 : vector<2x8x256xf32>
    %328 = vector.extract_strided_slice %255 {offsets = [0, 0, 0], sizes = [2, 1, 32], strides = [1, 1, 1]} : vector<2x8x32xf32> to vector<2x1x32xf32>
    %329 = vector.shape_cast %328 : vector<2x1x32xf32> to vector<2x32xf32>
    %330 = vector.extract_strided_slice %255 {offsets = [0, 1, 0], sizes = [2, 1, 32], strides = [1, 1, 1]} : vector<2x8x32xf32> to vector<2x1x32xf32>
    %331 = vector.shape_cast %330 : vector<2x1x32xf32> to vector<2x32xf32>
    %332 = vector.extract_strided_slice %255 {offsets = [0, 2, 0], sizes = [2, 1, 32], strides = [1, 1, 1]} : vector<2x8x32xf32> to vector<2x1x32xf32>
    %333 = vector.shape_cast %332 : vector<2x1x32xf32> to vector<2x32xf32>
    %334 = vector.extract_strided_slice %255 {offsets = [0, 3, 0], sizes = [2, 1, 32], strides = [1, 1, 1]} : vector<2x8x32xf32> to vector<2x1x32xf32>
    %335 = vector.shape_cast %334 : vector<2x1x32xf32> to vector<2x32xf32>
    %336 = vector.extract_strided_slice %255 {offsets = [0, 4, 0], sizes = [2, 1, 32], strides = [1, 1, 1]} : vector<2x8x32xf32> to vector<2x1x32xf32>
    %337 = vector.shape_cast %336 : vector<2x1x32xf32> to vector<2x32xf32>
    %338 = vector.extract_strided_slice %255 {offsets = [0, 5, 0], sizes = [2, 1, 32], strides = [1, 1, 1]} : vector<2x8x32xf32> to vector<2x1x32xf32>
    %339 = vector.shape_cast %338 : vector<2x1x32xf32> to vector<2x32xf32>
    %340 = vector.extract_strided_slice %255 {offsets = [0, 6, 0], sizes = [2, 1, 32], strides = [1, 1, 1]} : vector<2x8x32xf32> to vector<2x1x32xf32>
    %341 = vector.shape_cast %340 : vector<2x1x32xf32> to vector<2x32xf32>
    %342 = vector.extract_strided_slice %255 {offsets = [0, 7, 0], sizes = [2, 1, 32], strides = [1, 1, 1]} : vector<2x8x32xf32> to vector<2x1x32xf32>
    %343 = vector.shape_cast %342 : vector<2x1x32xf32> to vector<2x32xf32>
    %344 = tpu.concatenate %329, %331, %333, %335, %337, %339, %341, %343 in 1 : vector<2x32xf32>, vector<2x32xf32>, vector<2x32xf32>, vector<2x32xf32>, vector<2x32xf32>, vector<2x32xf32>, vector<2x32xf32>, vector<2x32xf32> -> vector<2x256xf32>
    %345 = tpu.concatenate %295, %295, %295, %295, %295, %295, %295, %295 in 1 : vector<1x32xf32>, vector<1x32xf32>, vector<1x32xf32>, vector<1x32xf32>, vector<1x32xf32>, vector<1x32xf32>, vector<1x32xf32>, vector<1x32xf32> -> vector<1x256xf32>
    %346 = tpu.concatenate %299, %299, %299, %299, %299, %299, %299, %299 in 1 : vector<1x32xf32>, vector<1x32xf32>, vector<1x32xf32>, vector<1x32xf32>, vector<1x32xf32>, vector<1x32xf32>, vector<1x32xf32>, vector<1x32xf32> -> vector<1x256xf32>
    %347 = vector.broadcast %345 : vector<1x256xf32> to vector<2x256xf32>
    %348 = arith.mulf %344, %347 : vector<2x256xf32>
    %349 = vector.broadcast %346 : vector<1x256xf32> to vector<2x256xf32>
    %350 = arith.addf %348, %349 : vector<2x256xf32>
    %cst_85 = arith.constant 0.000000e+00 : f32
    %351 = vector.broadcast %cst_85 : f32 to vector<2x256xf32>
    %352 = arith.maximumf %350, %351 : vector<2x256xf32>
    %353 = arith.addf %177, %352 : vector<2x256xf32>
    %c0_86 = arith.constant 0 : index
    %c0_87 = arith.constant 0 : index
    %354 = vector.load %arg10[%c0_86, %c0_87] : memref<2x256xf32, #tpu.memory_space<vmem>>, vector<2x256xf32>
    tpu.vector_store %arg10[%c0_86, %c0_87], %353 {strides = array<i32>} : memref<2x256xf32, #tpu.memory_space<vmem>>, vector<2x256xf32>,
    %c0_88 = arith.constant 0 : index
    %c0_89 = arith.constant 0 : index
    %c0_90 = arith.constant 0 : index
    %355 = vector.load %arg11[%c0_88, %c0_89, %c0_90] : memref<2x8x256xf32, #tpu.memory_space<vmem>>, vector<2x8x256xf32>
    tpu.vector_store %arg11[%c0_88, %c0_89, %c0_90], %327 {strides = array<i32>} : memref<2x8x256xf32, #tpu.memory_space<vmem>>, vector<2x8x256xf32>,
    return
  }
}

</mosaic_0001>

<bundles_post_ra>
// kernel: model_forward.1
= control target key start
LH: loop header
LB: loop body
LE: loop exit
PB: predicated region body
PF: predicated region fallthrough
CT: control target
= control target key end

     0   :  { %v46_v0 = vlaneseq  ;;  %v5423_v1 = vmov 1966171168   ;;  %s5424_s21 = smov 64   ;;  %s5425_s22 = smov 96   ;;  %vm139_vm0 = vcmask 1040384   ;;  %vm142_vm1 = vcmask 1041408   ;;  %s8685_s1 = inlined_call_operand.vmem [shape: f32[2,8,256], index: 1, kind: input, shape index: {}]   ;;  %s8686_s0 = inlined_call_operand.vmem [shape: f32[2,256], index: 0, kind: input, shape index: {}]   ;;  %s8687_s2 = inlined_call_operand.vmem [shape: f32[2,32,32], index: 2, kind: input, shape index: {}]   ;;  %s8688_s4 = inlined_call_operand.vmem [shape: f32[2,32,96], index: 4, kind: input, shape index: {}]   ;;  %s8689_s5 = inlined_call_operand.vmem [shape: f32[2,1,96], index: 5, kind: input, shape index: {}]   ;;  %s8690_s3 = inlined_call_operand.vmem [shape: f32[2,1,32], index: 3, kind: input, shape index: {}]   ;;  %s8691_s6 = inlined_call_operand.vmem [shape: f32[2,1,32], index: 6, kind: input, shape index: {}]   ;;  %s8692_s7 = inlined_call_operand.vmem [shape: f32[2,1,32], index: 7, kind: input, shape index: {}]   ;;  %s8693_s8 = inlined_call_operand.vmem [shape: f32[2,1,32], index: 8, kind: input, shape index: {}]   ;;  %s8694_s9 = inlined_call_operand.vmem [shape: f32[2,1,32], index: 9, kind: input, shape index: {}]   ;;  %s8695_s10 = inlined_call_operand.vmem [shape: f32[2,256], index: 10, kind: output, shape index: {0}]   ;;  %s8696_s11 = inlined_call_operand.vmem [shape: f32[2,8,256], index: 11, kind: output, shape index: {1}]  }
   0x1   :  { %v44_v2 = vunpack.c.l.s4 %v5423_v1  ;;  %v5493_v5 = vld [vmem:[%s8685_s1] sm:$0xff]  ;;  %v5498_v6 = vld [vmem:[%s8685_s1 + $0x8] sm:$0xff]  ;;  %s5426_s23 = smov 32   ;;  %v922_v30 = vld [vmem:[%s8687_s2 + $0x10] sm:$0xff]  ;;  %vm145_vm2 = vcmask 1042432   ;;  %vm148_vm3 = vcmask 1043456  }
   0x2   :  { %v5488_v3 = vshrl.u32 %v46_v0, 7  ;;  %v5554_v24 = vld.sshfl [vmem:[%s8686_s0] sm:$0x33 pattern:$0x75316420]  ;;  %v921_v28 = vld [vmem:[%s8687_s2 + $0x8] sm:$0xff]  ;;  %v162_v35 = vcombine.high %v5493_v5, %v5493_v5  ;;  %v278_v52 = vcombine.high %v5498_v6, %v5498_v6 }
   0x3   :  { %v45_v4 = vunpack.c.0.s8 %v44_v2  ;;  %v920_v27 = vld [vmem:[%s8687_s2] sm:$0xff]  ;;  %v923_v31 = vld [vmem:[%s8687_s2 + $0x18] sm:$0xff]  ;;  %v5591_v33 = vcombine.high %v5554_v24, %v5554_v24  ;;  %v1126_v37 = vld [vmem:[%s8688_s4 + $0x8] sm:$0xff]  ;;  %vm151_vm4 = vcmask 1044480   ;;  %vm154_vm5 = vcmask 1045504  }
   0x4   :  { %8743 = vst [vmem:[#allocation2_spill] sm:$0xff] %v5488_v3  ;;  %v5504_v8 = vsub.s32 0, %v5488_v3  ;;  %v5175_v29 = vpack.c.bf16 %v921_v28, %v920_v27  ;;  %v5179_v32 = vpack.c.bf16 %v923_v31, %v922_v30  ;;  %v1125_v36 = vld [vmem:[%s8688_s4] sm:$0xff]  ;;  %v1127_v40 = vld [vmem:[%s8688_s4 + $0x10] sm:$0xff]  ;;  %v1128_v41 = vld [vmem:[%s8688_s4 + $0x18] sm:$0xff]  ;;  %vm157_vm6 = vcmask 1046528  }
   0x5   :  { %v5501_v7 = vsub.s32 %v45_v4, %v5488_v3  ;;  %v5183_v38 = vpack.c.bf16 %v1126_v37, %v1125_v36  ;;  %v5187_v42 = vpack.c.bf16 %v1128_v41, %v1127_v40  ;;  %v5701_v63 = vld [vmem:[%s8685_s1 + $0x10] sm:$0xff]  ;;  %vm931_vm7 = vcmask 261120  }
   0x6   :  { %8745 = vst [vmem:[#allocation4_spill] sm:$0xff] %v5504_v8  ;;  %v76_v26 = vrot.slane %v5554_v24, %v5504_v8  ;;  %5176 = vmatprep.subr.bf16.mxu0 %v5175_v29  ;;  %v80_v34 = vrot.slane %v5591_v33, %v5504_v8  ;;  %vm1835_vm8 = vcmask 1041409   ;;  %vm1837_vm9 = vcmask 1042434  }
   0x7   :  { %8744 = vst [vmem:[#allocation3_spill] sm:$0xff] %v5501_v7  ;;  %v169_v9 = vrot.slane %v5493_v5, %v5501_v7  ;;  %v285_v10 = vrot.slane %v5498_v6, %v5501_v7  ;;  %5178 = vmatpush3.bf16.msra.mxu0 %v5175_v29  ;;  %v176_v39 = vrot.slane %v162_v35, %v5501_v7  ;;  %vm1839_vm10 = vcmask 1043459  }
   0x8   :  { %5180 = vmatprep.subr.bf16.mxu0 %v5179_v32  ;;  %5184 = vmatprep.subr.bf16.mxu1 %v5183_v38  ;;  %v292_v53 = vrot.slane %v278_v52, %v5501_v7  ;;  %v218_v0 = vrot.slane %v5701_v63, %v5501_v7  ;;  %vm1841_vm11 = vcmask 1044484   ;;  %vm1843_vm12 = vcmask 1045509  }
   0x9   :  { %v5511_v11 = vrot.slane %v169_v9, %v5501_v7  ;;  %v5514_v12 = vrot.slane %v285_v10, %v5501_v7  ;;  %v177_v13 = vcombine.high %v169_v9, %v169_v9  ;;  %v293_v21 = vcombine.high %v285_v10, %v285_v10  ;;  %5186 = vmatpush3.bf16.msra.mxu1 %v5183_v38 }
   0xa   :  { %v5626_v44 = vrot.slane %v176_v39, %v5501_v7  ;;  %5188 = vmatprep.subr.bf16.mxu1 %v5187_v42  ;;  %v178_v47 = vcombine.high %v176_v39, %v176_v39  ;;  %v308_v54 = vrot.slane %v292_v53, %v5501_v7  ;;  %v294_v56 = vcombine.high %v292_v53, %v292_v53 }
   0xb   :  { %v379_v14 = vrot.slane %v5511_v11, %v5504_v8  ;;  %v5522_v15 = vrot.slane %v5514_v12, %v5504_v8  ;;  %v5525_v16 = vrot.slane %v177_v13, %v5501_v7  ;;  %v5534_v18 = vcombine.high %v5511_v11, %v5511_v11  ;;  %5182 = vmatpush3.bf16.msra.mxu0 %v5179_v32 }
   0xc   :  { %v5549_v23 = vrot.slane %v293_v21, %v5501_v7  ;;  %v323_v43 = vcombine.high %v5514_v12, %v5514_v12  ;;  %v395_v46 = vrot.slane %v5626_v44, %v5504_v8  ;;  %v5639_v48 = vrot.slane %v178_v47, %v5501_v7 }
   0xd   :  { %488 = vrot.lane.b32.xlu1 %v379_v14, %s5424_s21  ;;  %440 = vrot.lane.b32.xlu0 %v379_v14, %s5425_s22  ;;  %v383_v17 = vrot.slane %v5525_v16, %v5504_v8  ;;  %v387_v19 = vrot.slane %v5534_v18, %v5504_v8  ;;  %v5542_v20 = vcombine.high %v5525_v16, %v5525_v16  ;;  %vm1845_vm13 = vcmask 1046534  }
   0xe   :  { %v5560_v25 = vrot.slane %v5549_v23, %v5504_v8  ;;  %5190 = vmatpush3.bf16.msra.mxu1 %v5187_v42  ;;  %v5631_v45 = vrot.slane %v323_v43, %v5504_v8  ;;  %v399_v49 = vrot.slane %v5639_v48, %v5504_v8  ;;  %v325_v50 = vcombine.high %v5549_v23, %v5549_v23 }
   0xf   :  { %v391_v22 = vrot.slane %v5542_v20, %v5504_v8  ;;  %v5669_v55 = vcombine.high %v5626_v44, %v5626_v44  ;;  %v5675_v57 = vrot.slane %v308_v54, %v5504_v8  ;;  %v5681_v59 = vcombine.high %v5639_v48, %v5639_v48 }
  0x10   :  { %v5651_v51 = vrot.slane %v325_v50, %v5504_v8  ;;  %v322_v61 = vrot.slane %v294_v56, %v5501_v7  ;;  %v324_v1 = vcombine.high %v308_v54, %v308_v54  ;;  %v5712_v2 = vrot.slane %v218_v0, %v5501_v7 }
  0x11   :  { %664 = vrot.lane.b32.xlu1 %v5522_v15, %s5425_s22  ;;  %536 = vrot.lane.b32.xlu0 %v379_v14, %s5426_s23  ;;  %v403_v58 = vrot.slane %v5669_v55, %v5504_v8  ;;  %v407_v60 = vrot.slane %v5681_v59, %v5504_v8  ;;  %v226_v4 = vcombine.high %v218_v0, %v218_v0  ;;  %vm8702_vm14 = vcmask 1047559  }
  0x12   :  { %v5692_v62 = vrot.slane %v322_v61, %v5504_v8  ;;  %v5718_v5 = vrot.slane %v324_v1, %v5504_v8  ;;  %v411_v6 = vrot.slane %v5712_v2, %v5504_v8  ;;  %v326_v12 = vcombine.high %v322_v61, %v322_v61 }
  0x13   :  { %v5723_v9 = vrot.slane %v226_v4, %v5501_v7  ;;  %v5750_v28 = vcombine.high %v5712_v2, %v5712_v2  ;;  %vm8701_vm15 = vcmask 523520  }
  0x14   :  { %v5733_v13 = vrot.slane %v326_v12, %v5504_v8 }
  0x15   :  { %490 = vrot.lane.b32.xlu1 %v383_v17, %s5424_s21  ;;  %442 = vrot.lane.b32.xlu0 %v383_v17, %s5425_s22  ;;  %v415_v10 = vrot.slane %v5723_v9, %v5504_v8  ;;  %v419_v32 = vrot.slane %v5750_v28, %v5504_v8  ;;  %v5769_v35 = vcombine.high %v5723_v9, %v5723_v9 }
  0x17   :  { %v423_v39 = vrot.slane %v5769_v35, %v5504_v8 }
  0x19   :  { %538 = vrot.lane.b32.xlu1 %v383_v17, %s5426_s23  ;;  %444 = vrot.lane.b32.xlu0 %v387_v19, %s5425_s22 }
  0x1d   :  { %492 = vrot.lane.b32.xlu1 %v387_v19, %s5424_s21  ;;  %446 = vrot.lane.b32.xlu0 %v391_v22, %s5425_s22 }
  0x21   :  { %712 = vrot.lane.b32.xlu1 %v5522_v15, %s5424_s21  ;;  %666 = vrot.lane.b32.xlu0 %v5560_v25, %s5425_s22 }
  0x25   :  { %55 = vrot.lane.b32.xlu0 %v5554_v24, %s5425_s22  ;;  %81 = vrot.lane.b32.xlu1 %v76_v26, %s5425_s22 }
  0x29   :  { %494 = vrot.lane.b32.xlu0 %v391_v22, %s5424_s21  ;;  %540 = vrot.lane.b32.xlu1 %v387_v19, %s5426_s23  ;;  %v5742_v19 = vld [vmem:[%s8685_s1 + $0x18] sm:$0xff] }
  0x2a   :  { %v334_v23 = vrot.slane %v5742_v19, %v5501_v7 }
  0x2c   :  { %v350_v29 = vrot.slane %v334_v23, %v5501_v7  ;;  %v342_v36 = vcombine.high %v334_v23, %v334_v23 }
  0x2d   :  { %714 = vrot.lane.b32.xlu0 %v5560_v25, %s5424_s21  ;;  %760 = vrot.lane.b32.xlu1 %v5522_v15, %s5426_s23 }
  0x2e   :  { %v5781_v40 = vrot.slane %v342_v36, %v5501_v7  ;;  %v372_v1 = vcombine.high %v350_v29, %v350_v29 }
  0x30   :  { %v374_v36 = vcombine.high %v5781_v40, %v5781_v40 }
  0x31   :  { %61 = vrot.lane.b32.xlu1 %v5554_v24, %s5424_s21  ;;  %57 = vrot.lane.b32.xlu0 %v5591_v33, %s5425_s22 }
  0x35   :  { %87 = vrot.lane.b32.xlu1 %v76_v26, %s5424_s21  ;;  %83 = vrot.lane.b32.xlu0 %v80_v34, %s5425_s22 }
  0x39   :  { %762 = vrot.lane.b32.xlu1 %v5560_v25, %s5426_s23  ;;  %542 = vrot.lane.b32.xlu0 %v391_v22, %s5426_s23 }
  0x3d   :  { %67 = vrot.lane.b32.xlu1 %v5554_v24, %s5426_s23  ;;  %63 = vrot.lane.b32.xlu0 %v5591_v33, %s5424_s21 }
  0x41   :  { %93 = vrot.lane.b32.xlu1 %v76_v26, %s5426_s23  ;;  %89 = vrot.lane.b32.xlu0 %v80_v34, %s5424_s21 }
  0x45   :  { %668 = vrot.lane.b32.xlu1 %v5631_v45, %s5425_s22  ;;  %448 = vrot.lane.b32.xlu0 %v395_v46, %s5425_s22 }
  0x49   :  { %95 = vrot.lane.b32.xlu1 %v80_v34, %s5426_s23  ;;  %69 = vrot.lane.b32.xlu0 %v5591_v33, %s5426_s23  ;;  %v5765_v34 = vrot.slane %v350_v29, %v5504_v8 }
  0x4d   :  { %496 = vrot.lane.b32.xlu1 %v395_v46, %s5424_s21  ;;  %450 = vrot.lane.b32.xlu0 %v399_v49, %s5425_s22 }
  0x51   :  { %716 = vrot.lane.b32.xlu1 %v5631_v45, %s5424_s21  ;;  %670 = vrot.lane.b32.xlu0 %v5651_v51, %s5425_s22 }
  0x55   :  { %544 = vrot.lane.b32.xlu1 %v395_v46, %s5426_s23  ;;  %498 = vrot.lane.b32.xlu0 %v399_v49, %s5424_s21  ;;  %v5789_v46 = vrot.slane %v5781_v40, %v5504_v8 }
  0x59   :  { %764 = vrot.lane.b32.xlu1 %v5631_v45, %s5426_s23  ;;  %718 = vrot.lane.b32.xlu0 %v5651_v51, %s5424_s21 }
  0x5d   :  { %766 = vrot.lane.b32.xlu1 %v5651_v51, %s5426_s23  ;;  %546 = vrot.lane.b32.xlu0 %v399_v49, %s5426_s23 }
  0x61   :  { %672 = vrot.lane.b32.xlu1 %v5675_v57, %s5425_s22  ;;  %452 = vrot.lane.b32.xlu0 %v403_v58, %s5425_s22 }
  0x65   :  { %500 = vrot.lane.b32.xlu1 %v403_v58, %s5424_s21  ;;  %454 = vrot.lane.b32.xlu0 %v407_v60, %s5425_s22 }
  0x69   :  { %720 = vrot.lane.b32.xlu1 %v5675_v57, %s5424_s21  ;;  %674 = vrot.lane.b32.xlu0 %v5692_v62, %s5425_s22 }
  0x6d   :  { %548 = vrot.lane.b32.xlu1 %v403_v58, %s5426_s23  ;;  %502 = vrot.lane.b32.xlu0 %v407_v60, %s5424_s21 }
  0x71   :  { %768 = vrot.lane.b32.xlu1 %v5675_v57, %s5426_s23  ;;  %722 = vrot.lane.b32.xlu0 %v5692_v62, %s5424_s21 }
  0x75   :  { %770 = vrot.lane.b32.xlu1 %v5692_v62, %s5426_s23  ;;  %550 = vrot.lane.b32.xlu0 %v407_v60, %s5426_s23 }
  0x79   :  { %676 = vrot.lane.b32.xlu1 %v5718_v5, %s5425_s22  ;;  %456 = vrot.lane.b32.xlu0 %v411_v6, %s5425_s22 }
  0x7d   :  { %504 = vrot.lane.b32.xlu1 %v411_v6, %s5424_s21  ;;  %458 = vrot.lane.b32.xlu0 %v415_v10, %s5425_s22 }
  0x7f   :  { %v489_v14 = vpop.permute.xlu1 %488  ;;  %v441_v17 = vpop.permute.xlu0 %440 }
  0x80   :  { %v808_v43 = vsel %vm139_vm0, %v5511_v11, %v441_v17  ;;  %v211_v11 = vcombine.high %v5701_v63, %v5701_v63 }
  0x81   :  { %724 = vrot.lane.b32.xlu1 %v5718_v5, %s5424_s21  ;;  %678 = vrot.lane.b32.xlu0 %v5733_v13, %s5425_s22  ;;  %v824_v47 = vsel %vm142_vm1, %v808_v43, %v489_v14 }
  0x82   :  { %v225_v60 = vrot.slane %v211_v11, %v5501_v7 }
  0x83   :  { %v665_v21 = vpop.permute.xlu1 %664  ;;  %v537_v22 = vpop.permute.xlu0 %536 }
  0x84   :  { %v840_v52 = vsel %vm145_vm2, %v824_v47, %v537_v22  ;;  %v5857_v47 = vrot.slane %v374_v36, %v5504_v8 }
  0x85   :  { %552 = vrot.lane.b32.xlu1 %v411_v6, %s5426_s23  ;;  %506 = vrot.lane.b32.xlu0 %v415_v10, %s5424_s21  ;;  %v856_v53 = vsel %vm148_vm3, %v840_v52, %v5522_v15  ;;  %v5821_v6 = vrot.slane %v225_v60, %v5501_v7 }
  0x86   :  { %v872_v58 = vsel %vm151_vm4, %v856_v53, %v665_v21  ;;  %v5829_v21 = vrot.slane %v372_v1, %v5504_v8 }
  0x87   :  { %v491_v26 = vpop.permute.xlu1 %490  ;;  %v443_v27 = vpop.permute.xlu0 %442  ;;  %v427_v22 = vrot.slane %v5821_v6, %v5504_v8 }
  0x88   :  { %v809_v4 = vsel %vm139_vm0, %v5525_v16, %v443_v27 }
  0x89   :  { %772 = vrot.lane.b32.xlu1 %v5718_v5, %s5426_s23  ;;  %726 = vrot.lane.b32.xlu0 %v5733_v13, %s5424_s21  ;;  %v825_v17 = vsel %vm142_vm1, %v809_v4, %v491_v26 }
  0x8b   :  { %v539_v30 = vpop.permute.xlu1 %538  ;;  %v5757_v31 = vpop.permute.xlu0 %444 }
  0x8c   :  { %v841_v16 = vsel %vm145_vm2, %v825_v17, %v539_v30 }
  0x8d   :  { %774 = vrot.lane.b32.xlu1 %v5733_v13, %s5426_s23  ;;  %554 = vrot.lane.b32.xlu0 %v415_v10, %s5426_s23  ;;  %v227_v10 = vcombine.high %v225_v60, %v225_v60  ;;  %v857_v26 = vsel %vm148_vm3, %v841_v16, %v5560_v25  ;;  %v327_v60 = vcombine.high %v5742_v19, %v5742_v19 }
  0x8f   :  { %v5771_v37 = vpop.permute.xlu1 %492  ;;  %v5773_v38 = vpop.permute.xlu0 %446  ;;  %v5836_v23 = vrot.slane %v227_v10, %v5501_v7  ;;  %v341_v19 = vrot.slane %v327_v60, %v5501_v7 }
  0x91   :  { %680 = vrot.lane.b32.xlu1 %v5765_v34, %s5425_s22  ;;  %460 = vrot.lane.b32.xlu0 %v419_v32, %s5425_s22  ;;  %v431_v30 = vrot.slane %v5836_v23, %v5504_v8 }
  0x93   :  { %v713_v41 = vpop.permute.xlu1 %712  ;;  %v667_v42 = vpop.permute.xlu0 %666 }
  0x94   :  { %v888_v61 = vsel %vm154_vm5, %v872_v58, %v713_v41 }
  0x95   :  { %508 = vrot.lane.b32.xlu1 %v419_v32, %s5424_s21  ;;  %462 = vrot.lane.b32.xlu0 %v423_v39, %s5425_s22 }
  0x97   :  { %v5792_v49 = vpop.permute.xlu0 %55  ;;  %v82_v50 = vpop.permute.xlu1 %81 }
  0x98   :  { %v59_v11 = vrot.slane %v5792_v49, 1 }
  0x99   :  { %728 = vrot.lane.b32.xlu1 %v5765_v34, %s5424_s21  ;;  %682 = vrot.lane.b32.xlu0 %v5789_v46, %s5425_s22 }
  0x9a   :  { %v112_v1 = vrot.slane %v59_v11, %v5504_v8 }
  0x9b   :  { %v5803_v54 = vpop.permute.xlu0 %494  ;;  %v5805_v56 = vpop.permute.xlu1 %540 }
  0x9d   :  { %556 = vrot.lane.b32.xlu1 %v419_v32, %s5426_s23  ;;  %510 = vrot.lane.b32.xlu0 %v423_v39, %s5424_s21  ;;  %v873_v32 = vsel %vm151_vm4, %v857_v26, %v667_v42  ;;  %v53_v42 = vrot.slane %v5554_v24, 1 }
  0x9f   :  { %v715_v63 = vpop.permute.xlu0 %714  ;;  %v761_v15 = vpop.permute.xlu1 %760  ;;  %v102_v58 = vrot.slane %v53_v42, %v5504_v8 }
  0xa0   :  { %v904_v0 = vsel %vm157_vm6, %v888_v61, %v761_v15  ;;  %v140_v61 = vsel %vm139_vm0, %v5554_v24, %v82_v50  ;;  %v54_v24 = vrot.slane %v5591_v33, 1 }
  0xa1   :  { %5097 = vmatprep.mubr.msk.f32.mxu0 %vm931_vm7, %v904_v0  ;;  %776 = vrot.lane.b32.xlu1 %v5765_v34, %s5426_s23 }
  0xa2   :  { %730 = vrot.lane.b32.xlu0 %v5789_v46, %s5424_s21 }
  0xa3   :  { %v62_v12 = vpop.permute.xlu1 %61  ;;  %v5823_v14 = vpop.permute.xlu0 %57 }
  0xa4   :  { %v65_v53 = vrot.slane %v62_v12, 1 }
  0xa5   :  { %778 = vrot.lane.b32.xlu1 %v5789_v46, %s5426_s23 }
  0xa6   :  { %558 = vrot.lane.b32.xlu0 %v423_v39, %s5426_s23  ;;  %v889_v39 = vsel %vm154_vm5, %v873_v32, %v715_v63  ;;  %v122_v10 = vrot.slane %v65_v53, %v5504_v8  ;;  %v60_v32 = vrot.slane %v5823_v14, 1 }
  0xa7   :  { %v88_v27 = vpop.permute.xlu1 %87  ;;  %v84_v29 = vpop.permute.xlu0 %83 }
  0xa8   :  { %v143_v15 = vsel %vm142_vm1, %v140_v61, %v88_v27  ;;  %v141_v14 = vsel %vm139_vm0, %v5591_v33, %v84_v29  ;;  %v116_v11 = vrot.slane %v60_v32, %v5504_v8 }
  0xa9   :  { %684 = vrot.lane.b32.xlu1 %v5829_v21, %s5425_s22 }
  0xaa   :  { %464 = vrot.lane.b32.xlu0 %v427_v22, %s5425_s22 }
  0xab   :  { %v763_v41 = vpop.permute.xlu1 %762  ;;  %v5849_v43 = vpop.permute.xlu0 %542 }
  0xac   :  { %v905_v25 = vsel %vm157_vm6, %v889_v39, %v763_v41  ;;  %v106_v39 = vrot.slane %v54_v24, %v5504_v8  ;;  %v5890_v41 = vrot.slane %v341_v19, %v5501_v7 }
  0xad   :  { %5098 = vmatmul.mubr.msk.f32.vlgmr.msra.gmra.mrb[0].mxu0 %vm931_vm7, %v905_v25  ;;  %512 = vrot.lane.b32.xlu1 %v427_v22, %s5424_s21  ;;  %v5894_v25 = vcombine.high %v5821_v6, %v5821_v6 }
  0xae   :  { %466 = vrot.lane.b32.xlu0 %v431_v30, %s5425_s22  ;;  %v5909_v33 = vrot.slane %v5890_v41, %v5504_v8 }
  0xaf   :  { %v68_v52 = vpop.permute.xlu1 %67  ;;  %v64_v40 = vpop.permute.xlu0 %63  ;;  %v435_v29 = vrot.slane %v5894_v25, %v5504_v8 }
  0xb0   :  { %v71_v63 = vrot.slane %v68_v52, 1 }
  0xb1   :  { %732 = vrot.lane.b32.xlu1 %v5829_v21, %s5424_s21 }
  0xb2   :  { %686 = vrot.lane.b32.xlu0 %v5857_v47, %s5425_s22  ;;  %v132_v50 = vrot.slane %v71_v63, %v5504_v8 }
  0xb3   :  { %v94_v0 = vpop.permute.xlu1 %93  ;;  %v90_v49 = vpop.permute.xlu0 %89 }
  0xb4   :  { %v146_v4 = vsel %vm145_vm2, %v143_v15, %v94_v0  ;;  %v144_v42 = vsel %vm142_vm1, %v141_v14, %v90_v49  ;;  %v5918_v0 = vcombine.high %v5836_v23, %v5836_v23  ;;  %v343_v49 = vcombine.high %v341_v19, %v341_v19 }
  0xb5   :  { %v149_v12 = vsel %vm148_vm3, %v146_v4, %v102_v58  ;;  %560 = vrot.lane.b32.xlu1 %v427_v22, %s5426_s23  ;;  %v66_v22 = vrot.slane %v64_v40, 1  ;;  %v811_v14 = vsel %vm139_vm0, %v5542_v20, %v5773_v38 }
  0xb6   :  { %514 = vrot.lane.b32.xlu0 %v431_v30, %s5424_s21  ;;  %v152_v17 = vsel %vm151_vm4, %v149_v12, %v112_v1  ;;  %v371_v24 = vrot.slane %v343_v49, %v5501_v7 }
  0xb7   :  { %v669_v16 = vpop.permute.xlu1 %668  ;;  %v5880_v27 = vpop.permute.xlu0 %448  ;;  %v155_v26 = vsel %vm154_vm5, %v152_v17, %v122_v10  ;;  %v126_v60 = vrot.slane %v66_v22, %v5504_v8  ;;  %v810_v17 = vsel %vm139_vm0, %v5534_v18, %v5757_v31  ;;  %v827_v18 = vsel %vm142_vm1, %v811_v14, %v5803_v54 }
  0xb8   :  { %v158_v36 = vsel %vm157_vm6, %v155_v26, %v132_v50  ;;  %v826_v26 = vsel %vm142_vm1, %v810_v17, %v5771_v37  ;;  %v843_v37 = vsel %vm145_vm2, %v827_v18, %v5849_v43 }
  0xb9   :  { %5129 = vmatprep.mubr.msk.f32.mxu1 %vm931_vm7, %v158_v36  ;;  %780 = vrot.lane.b32.xlu1 %v5829_v21, %s5426_s23  ;;  %v842_v32 = vsel %vm145_vm2, %v826_v26, %v5805_v56  ;;  %v5941_v36 = vrot.slane %v371_v24, %v5504_v8 }
  0xba   :  { %734 = vrot.lane.b32.xlu0 %v5857_v47, %s5424_s21  ;;  %v858_v31 = vsel %vm148_vm3, %v842_v32, %v5631_v45  ;;  %v859_v45 = vsel %vm148_vm3, %v843_v37, %v5651_v51  ;;  %v375_v51 = vcombine.high %v371_v24, %v371_v24 }
  0xbb   :  { %v96_v52 = vpop.permute.xlu1 %95  ;;  %v70_v40 = vpop.permute.xlu0 %69  ;;  %v874_v56 = vsel %vm151_vm4, %v858_v31, %v669_v16 }
  0xbc   :  { %v147_v53 = vsel %vm145_vm2, %v144_v42, %v96_v52  ;;  %v72_v58 = vrot.slane %v70_v40, 1 }
  0xbd   :  { %v150_v61 = vsel %vm148_vm3, %v147_v53, %v106_v39  ;;  %782 = vrot.lane.b32.xlu1 %v5857_v47, %s5426_s23  ;;  %v373_v53 = vcombine.high %v5890_v41, %v5890_v41 }
  0xbe   :  { %v153_v63 = vsel %vm151_vm4, %v150_v61, %v116_v11  ;;  %v136_v15 = vrot.slane %v72_v58, %v5504_v8  ;;  %562 = vrot.lane.b32.xlu0 %v431_v30, %s5426_s23  ;;  %v439_v30 = vrot.slane %v5918_v0, %v5504_v8  ;;  %v5977_v61 = vrot.slane %v375_v51, %v5504_v8 }
  0xbf   :  { %v497_v1 = vpop.permute.xlu1 %496  ;;  %v5920_v4 = vpop.permute.xlu0 %450  ;;  %v156_v10 = vsel %vm154_vm5, %v153_v63, %v126_v60 }
  0xc0   :  { %v159_v12 = vsel %vm157_vm6, %v156_v10, %v136_v15  ;;  %v812_v10 = vsel %vm139_vm0, %v5626_v44, %v5880_v27 }
  0xc1   :  { %688 = vrot.lane.b32.xlu1 %v5909_v33, %s5425_s22  ;;  %5130 = vmatmul.mubr.msk.f32.vlgmr.msra.gmra.mrb[0].mxu1 %vm931_vm7, %v159_v12  ;;  %v828_v12 = vsel %vm142_vm1, %v812_v10, %v497_v1 }
  0xc2   :  { %468 = vrot.lane.b32.xlu0 %v435_v29, %s5425_s22 }
  0xc3   :  { %v717_v19 = vpop.permute.xlu1 %716  ;;  %v671_v50 = vpop.permute.xlu0 %670 }
  0xc4   :  { %v890_v42 = vsel %vm154_vm5, %v874_v56, %v717_v19  ;;  %v875_v43 = vsel %vm151_vm4, %v859_v45, %v671_v50  ;;  %v813_v50 = vsel %vm139_vm0, %v5639_v48, %v5920_v4 }
  0xc5   :  { %516 = vrot.lane.b32.xlu1 %v435_v29, %s5424_s21 }
  0xc6   :  { %470 = vrot.lane.b32.xlu0 %v439_v30, %s5425_s22 }
  0xc7   :  { %v545_v22 = vpop.permute.xlu1 %544  ;;  %v499_v39 = vpop.permute.xlu0 %498 }
  0xc8   :  { %v829_v17 = vsel %vm142_vm1, %v813_v50, %v499_v39 }
  0xc9   :  { %736 = vrot.lane.b32.xlu1 %v5909_v33, %s5424_s21 }
  0xca   :  { %690 = vrot.lane.b32.xlu0 %v5941_v36, %s5425_s22 }
  0xcb   :  { %v765_v20 = vpop.permute.xlu1 %764  ;;  %v719_v38 = vpop.permute.xlu0 %718 }
  0xcc   :  { %v906_v54 = vsel %vm157_vm6, %v890_v42, %v765_v20  ;;  %v891_v16 = vsel %vm154_vm5, %v875_v43, %v719_v38 }
  0xcd   :  { %564 = vrot.lane.b32.xlu1 %v435_v29, %s5426_s23  ;;  %5100 = vmatprep.mubr.msk.f32.mxu0 %vm931_vm7, %v906_v54  ;;  %v5981_v29 = vrot.slane %v373_v53, %v5504_v8 }
  0xce   :  { %518 = vrot.lane.b32.xlu0 %v439_v30, %s5424_s21 }
  0xcf   :  { %v767_v52 = vpop.permute.xlu1 %766  ;;  %v547_v40 = vpop.permute.xlu0 %546 }
  0xd0   :  { %v907_v11 = vsel %vm157_vm6, %v891_v16, %v767_v52  ;;  %v845_v27 = vsel %vm145_vm2, %v829_v17, %v547_v40 }
  0xd1   :  { %784 = vrot.lane.b32.xlu1 %v5909_v33, %s5426_s23  ;;  %5101 = vmatmul.mubr.msk.f32.gmra.mrb[2].mxu0 %vm931_vm7, %v907_v11  ;;  %v861_v4 = vsel %vm148_vm3, %v845_v27, %v5692_v62 }
  0xd2   :  { %738 = vrot.lane.b32.xlu0 %v5941_v36, %s5424_s21 }
  0xd3   :  { %v673_v58 = vpop.permute.xlu1 %672  ;;  %v453_v60 = vpop.permute.xlu0 %452 }
  0xd4   :  { %v814_v62 = vsel %vm139_vm0, %v5669_v55, %v453_v60 }
  0xd5   :  { %786 = vrot.lane.b32.xlu1 %v5941_v36, %s5426_s23 }
  0xd6   :  { %566 = vrot.lane.b32.xlu0 %v439_v30, %s5426_s23  ;;  %v844_v30 = vsel %vm145_vm2, %v828_v12, %v545_v22 }
  0xd7   :  { %v501_v63 = vpop.permute.xlu1 %500  ;;  %v455_v15 = vpop.permute.xlu0 %454  ;;  %v860_v44 = vsel %vm148_vm3, %v844_v30, %v5675_v57 }
  0xd8   :  { %v876_v1 = vsel %vm151_vm4, %v860_v44, %v673_v58  ;;  %v830_v45 = vsel %vm142_vm1, %v814_v62, %v501_v63  ;;  %v815_v40 = vsel %vm139_vm0, %v5681_v59, %v455_v15 }
  0xd9   :  { %694 = vrot.lane.b32.xlu1 %v5977_v61, %s5425_s22 }
  0xda   :  { %692 = vrot.lane.b32.xlu0 %v5981_v29, %s5425_s22 }
  0xdb   :  { %v721_v41 = vpop.permute.xlu1 %720  ;;  %v675_v49 = vpop.permute.xlu0 %674 }
  0xdc   :  { %v892_v26 = vsel %vm154_vm5, %v876_v1, %v721_v41  ;;  %v877_v57 = vsel %vm151_vm4, %v861_v4, %v675_v49 }
  0xdd   :  { %742 = vrot.lane.b32.xlu1 %v5977_v61, %s5424_s21 }
  0xde   :  { %740 = vrot.lane.b32.xlu0 %v5981_v29, %s5424_s21 }
  0xdf   :  { %v549_v24 = vpop.permute.xlu1 %548  ;;  %v503_v19 = vpop.permute.xlu0 %502 }
  0xe0   :  { %v846_v43 = vsel %vm145_vm2, %v830_v45, %v549_v24  ;;  %v831_v11 = vsel %vm142_vm1, %v815_v40, %v503_v19 }
  0xe1   :  { %790 = vrot.lane.b32.xlu1 %v5977_v61, %s5426_s23  ;;  %v862_v51 = vsel %vm148_vm3, %v846_v43, %v5718_v5 }
  0xe2   :  { %788 = vrot.lane.b32.xlu0 %v5981_v29, %s5426_s23 }
  0xe3   :  { %v769_v32 = vpop.permute.xlu1 %768  ;;  %v723_v22 = vpop.permute.xlu0 %722 }
  0xe4   :  { %v908_v48 = vsel %vm157_vm6, %v892_v26, %v769_v32  ;;  %v893_v39 = vsel %vm154_vm5, %v877_v57, %v723_v22 }
  0xe5   :  { %5103 = vmatprep.mubr.msk.f32.mxu0 %vm931_vm7, %v908_v48 }
  0xe7   :  { %v771_v14 = vpop.permute.xlu1 %770  ;;  %v551_v18 = vpop.permute.xlu0 %550 }
  0xe8   :  { %v909_v31 = vsel %vm157_vm6, %v893_v39, %v771_v14  ;;  %v847_v53 = vsel %vm145_vm2, %v831_v11, %v551_v18 }
  0xe9   :  { %5104 = vmatmul.mubr.msk.f32.gmra.mrb[4].mxu0 %vm931_vm7, %v909_v31  ;;  %v863_v49 = vsel %vm148_vm3, %v847_v53, %v5733_v13 }
  0xeb   :  { %v677_v37 = vpop.permute.xlu1 %676  ;;  %v457_v56 = vpop.permute.xlu0 %456 }
  0xec   :  { %v878_v58 = vsel %vm151_vm4, %v862_v51, %v677_v37  ;;  %v816_v13 = vsel %vm139_vm0, %v5712_v2, %v457_v56 }
  0xef   :  { %v505_v42 = vpop.permute.xlu1 %504  ;;  %v459_v20 = vpop.permute.xlu0 %458 }
  0xf0   :  { %v832_v27 = vsel %vm142_vm1, %v816_v13, %v505_v42  ;;  %v817_v22 = vsel %vm139_vm0, %v5723_v9, %v459_v20 }
  0xf3   :  { %v725_v38 = vpop.permute.xlu1 %724  ;;  %v679_v54 = vpop.permute.xlu0 %678 }
  0xf4   :  { %v894_v55 = vsel %vm154_vm5, %v878_v58, %v725_v38  ;;  %v879_v59 = vsel %vm151_vm4, %v863_v49, %v679_v54 }
  0xf7   :  { %v553_v16 = vpop.permute.xlu1 %552  ;;  %v507_v52 = vpop.permute.xlu0 %506 }
  0xf8   :  { %v848_v1 = vsel %vm145_vm2, %v832_v27, %v553_v16  ;;  %v833_v48 = vsel %vm142_vm1, %v817_v22, %v507_v52 }
  0xf9   :  { %v864_v4 = vsel %vm148_vm3, %v848_v1, %v5765_v34 }
  0xfb   :  { %v773_v60 = vpop.permute.xlu1 %772  ;;  %v727_v63 = vpop.permute.xlu0 %726 }
  0xfc   :  { %v910_v41 = vsel %vm157_vm6, %v894_v55, %v773_v60  ;;  %v895_v15 = vsel %vm154_vm5, %v879_v59, %v727_v63 }
  0xfd   :  { %5106 = vmatprep.mubr.msk.f32.mxu0 %vm931_vm7, %v910_v41 }
  0xff   :  { %v775_v5 = vpop.permute.xlu1 %774  ;;  %v555_v10 = vpop.permute.xlu0 %554 }
 0x100   :  { %v911_v12 = vsel %vm157_vm6, %v895_v15, %v775_v5  ;;  %v849_v57 = vsel %vm145_vm2, %v833_v48, %v555_v10 }
 0x101   :  { %5107 = vmatmul.mubr.msk.f32.gmra.mrb[6].mxu0 %vm931_vm7, %v911_v12  ;;  %v865_v37 = vsel %vm148_vm3, %v849_v57, %v5789_v46 }
 0x103   :  { %v681_v30 = vpop.permute.xlu1 %680  ;;  %v461_v24 = vpop.permute.xlu0 %460 }
 0x104   :  { %v880_v39 = vsel %vm151_vm4, %v864_v4, %v681_v30  ;;  %v818_v46 = vsel %vm139_vm0, %v5750_v28, %v461_v24 }
 0x107   :  { %v509_v19 = vpop.permute.xlu1 %508  ;;  %v463_v50 = vpop.permute.xlu0 %462 }
 0x108   :  { %v834_v52 = vsel %vm142_vm1, %v818_v46, %v509_v19  ;;  %v819_v51 = vsel %vm139_vm0, %v5769_v35, %v463_v50 }
 0x10b   :  { %v729_v17 = vpop.permute.xlu1 %728  ;;  %v683_v44 = vpop.permute.xlu0 %682 }
 0x10c   :  { %v896_v2 = vsel %vm154_vm5, %v880_v39, %v729_v17  ;;  %v881_v9 = vsel %vm151_vm4, %v865_v37, %v683_v44 }
 0x10f   :  { %v557_v26 = vpop.permute.xlu1 %556  ;;  %v511_v32 = vpop.permute.xlu0 %510 }
 0x110   :  { %v850_v40 = vsel %vm145_vm2, %v834_v52, %v557_v26  ;;  %v835_v58 = vsel %vm142_vm1, %v819_v51, %v511_v32 }
 0x111   :  { %v866_v55 = vsel %vm148_vm3, %v850_v40, %v5829_v21 }
 0x113   :  { %v777_v14 = vpop.permute.xlu1 %776 }
 0x114   :  { %v912_v18 = vsel %vm157_vm6, %v896_v2, %v777_v14  ;;  %v731_v31 = vpop.permute.xlu0 %730 }
 0x115   :  { %5109 = vmatprep.mubr.msk.f32.mxu0 %vm931_vm7, %v912_v18  ;;  %v897_v56 = vsel %vm154_vm5, %v881_v9, %v731_v31 }
 0x117   :  { %v779_v34 = vpop.permute.xlu1 %778 }
 0x118   :  { %v913_v42 = vsel %vm157_vm6, %v897_v56, %v779_v34  ;;  %v559_v20 = vpop.permute.xlu0 %558 }
 0x119   :  { %5110 = vmatmul.mubr.msk.f32.gmra.mrb[8].mxu0 %vm931_vm7, %v913_v42  ;;  %v851_v60 = vsel %vm145_vm2, %v835_v58, %v559_v20 }
 0x11a   :  { %v867_v15 = vsel %vm148_vm3, %v851_v60, %v5857_v47 }
 0x11b   :  { %v685_v38 = vpop.permute.xlu1 %684 }
 0x11c   :  { %v465_v54 = vpop.permute.xlu0 %464  ;;  %v882_v63 = vsel %vm151_vm4, %v866_v55, %v685_v38 }
 0x11d   :  { %v820_v47 = vsel %vm139_vm0, %v5821_v6, %v465_v54 }
 0x11f   :  { %v513_v62 = vpop.permute.xlu1 %512 }
 0x120   :  { %v467_v45 = vpop.permute.xlu0 %466  ;;  %v836_v13 = vsel %vm142_vm1, %v820_v47, %v513_v62 }
 0x121   :  { %v821_v26 = vsel %vm139_vm0, %v5836_v23, %v467_v45 }
 0x123   :  { %v733_v43 = vpop.permute.xlu1 %732 }
 0x124   :  { %v687_v16 = vpop.permute.xlu0 %686  ;;  %v898_v28 = vsel %vm154_vm5, %v882_v63, %v733_v43 }
 0x125   :  { %v883_v35 = vsel %vm151_vm4, %v867_v15, %v687_v16 }
 0x127   :  { %v561_v11 = vpop.permute.xlu1 %560 }
 0x128   :  { %v515_v53 = vpop.permute.xlu0 %514  ;;  %v852_v27 = vsel %vm145_vm2, %v836_v13, %v561_v11 }
 0x129   :  { %v837_v22 = vsel %vm142_vm1, %v821_v26, %v515_v53  ;;  %v868_v48 = vsel %vm148_vm3, %v852_v27, %v5909_v33 }
 0x12b   :  { %v781_v41 = vpop.permute.xlu1 %780 }
 0x12c   :  { %v914_v49 = vsel %vm157_vm6, %v898_v28, %v781_v41  ;;  %v735_v59 = vpop.permute.xlu0 %734 }
 0x12d   :  { %5112 = vmatprep.mubr.msk.f32.mxu0 %vm931_vm7, %v914_v49  ;;  %v899_v5 = vsel %vm154_vm5, %v883_v35, %v735_v59  ;;  %v6133_v59 = vld [vmem:[%s8690_s3] ss:$0 sm:$0xff] }
 0x12f   :  { %v783_v21 = vpop.permute.xlu1 %782 }
 0x130   :  { %v915_v10 = vsel %vm157_vm6, %v899_v5, %v783_v21  ;;  %v563_v12 = vpop.permute.xlu0 %562 }
 0x131   :  { %5113 = vmatmul.mubr.msk.f32.gmra.mrb[10].mxu0 %vm931_vm7, %v915_v10  ;;  %v853_v4 = vsel %vm145_vm2, %v837_v22, %v563_v12 }
 0x132   :  { %v869_v18 = vsel %vm148_vm3, %v853_v4, %v5941_v36 }
 0x133   :  { %v689_v30 = vpop.permute.xlu1 %688 }
 0x134   :  { %v469_v24 = vpop.permute.xlu0 %468  ;;  %v884_v57 = vsel %vm151_vm4, %v868_v48, %v689_v30 }
 0x135   :  { %v822_v36 = vsel %vm139_vm0, %v5894_v25, %v469_v24 }
 0x137   :  { %v517_v19 = vpop.permute.xlu1 %516 }
 0x138   :  { %v471_v50 = vpop.permute.xlu0 %470  ;;  %v838_v38 = vsel %vm142_vm1, %v822_v36, %v517_v19 }
 0x139   :  { %v823_v34 = vsel %vm139_vm0, %v5918_v0, %v471_v50 }
 0x13b   :  { %v737_v17 = vpop.permute.xlu1 %736 }
 0x13c   :  { %v691_v44 = vpop.permute.xlu0 %690  ;;  %v900_v6 = vsel %vm154_vm5, %v884_v57, %v737_v17 }
 0x13d   :  { %v885_v23 = vsel %vm151_vm4, %v869_v18, %v691_v44 }
 0x13f   :  { %v565_v1 = vpop.permute.xlu1 %564 }
 0x140   :  { %v519_v32 = vpop.permute.xlu0 %518  ;;  %v854_v62 = vsel %vm145_vm2, %v838_v38, %v565_v1 }
 0x141   :  { %v839_v20 = vsel %vm142_vm1, %v823_v34, %v519_v32  ;;  %v870_v0 = vsel %vm148_vm3, %v854_v62, %v5981_v29  ;;  %v4968_v29 = vld [vmem:[%s8689_s5] ss:$0 sm:$0xff] }
 0x143   :  { %v785_v39 = vpop.permute.xlu1 %784 }
 0x144   :  { %v916_v2 = vsel %vm157_vm6, %v900_v6, %v785_v39  ;;  %v739_v14 = vpop.permute.xlu0 %738 }
 0x145   :  { %5115 = vmatprep.mubr.msk.f32.mxu0 %vm931_vm7, %v916_v2  ;;  %v901_v31 = vsel %vm154_vm5, %v885_v23, %v739_v14 }
 0x147   :  { %v787_v33 = vpop.permute.xlu1 %786 }
 0x148   :  { %v917_v37 = vsel %vm157_vm6, %v901_v31, %v787_v33  ;;  %v567_v9 = vpop.permute.xlu0 %566 }
 0x149   :  { %5116 = vmatmul.mubr.msk.f32.gmra.mrb[12].mxu0 %vm931_vm7, %v917_v37  ;;  %v855_v54 = vsel %vm145_vm2, %v839_v20, %v567_v9 }
 0x14a   :  { %v871_v46 = vsel %vm148_vm3, %v855_v54, %v5977_v61 }
 0x14b   :  { %v695_v56 = vpop.permute.xlu1 %694 }
 0x14c   :  { %v693_v42 = vpop.permute.xlu0 %692  ;;  %v887_v16 = vsel %vm151_vm4, %v871_v46, %v695_v56 }
 0x14d   :  { %v886_v25 = vsel %vm151_vm4, %v870_v0, %v693_v42 }
 0x14f   :  { %v743_v45 = vpop.permute.xlu1 %742 }
 0x150   :  { %v741_v43 = vpop.permute.xlu0 %740  ;;  %v903_v52 = vsel %vm154_vm5, %v887_v16, %v743_v45 }
 0x151   :  { %v902_v11 = vsel %vm154_vm5, %v886_v25, %v741_v43 }
 0x153   :  { %v791_v40 = vpop.permute.xlu1 %790 }
 0x154   :  { %v919_v51 = vsel %vm157_vm6, %v903_v52, %v791_v40  ;;  %v789_v53 = vpop.permute.xlu0 %788 }
 0x155   :  { %v918_v58 = vsel %vm157_vm6, %v902_v11, %v789_v53 }
 0x156   :  { %5118 = vmatprep.mubr.msk.f32.mxu0 %vm931_vm7, %v918_v58 }
 0x157   :  { %5119 = vmatmul.mubr.msk.f32.gmra.mrb[14].mxu0 %vm931_vm7, %v919_v51 }
 0x180   :  { %v5099_v61 = vpop.f32.mrb[0].mxu0 }
 0x181   :  { %v1046_v55 = vpop.f32.mrb[1].mxu0  ;;  %v1052_v12 = vadd.f32 %v5099_v61, %v6133_v59 }
 0x182   :  { %v1047_v5 = vadd.f32 %v6133_v59, %v1046_v55 }
 0x194   :  { %v5131_v60 = vpop.f32.mrb[0].mxu1 }
 0x195   :  { %v6120_v63 = vadd.f32 %v5131_v60, %v4968_v29  ;;  %v1208_v28 = vpop.f32.mrb[1].mxu1 }
 0x196   :  { %v6122_v41 = vadd.f32 %v4968_v29, %v1208_v28 }
 0x197   :  { %1527 = vrot.lane.b32.xlu1 %v6120_v63, %s5424_s21 }
 0x198   :  { %8746 = vst [vmem:[#allocation5_spill] sm:$0xff] %v6122_v41  ;;  %1525 = vrot.lane.b32.xlu0 %v6122_v41, %s5424_s21  ;;  %v1226_v49 = vrot.slane %v6122_v41, %v5501_v7  ;;  %v1219_v47 = vcombine.high %v6122_v41, %v6122_v41 }
 0x19a   :  { %v1234_v15 = vcombine.high %v1226_v49, %v1226_v49  ;;  %v1242_v35 = vrot.slane %v1226_v49, %v5501_v7  ;;  %v6151_v26 = vrot.slane %v1219_v47, %v5501_v7 }
 0x19c   :  { %v1256_v21 = vrot.slane %v1234_v15, %v5501_v7  ;;  %v1320_v10 = vrot.slane %v1242_v35, %v5504_v8  ;;  %v1264_v50 = vcombine.high %v1242_v35, %v1242_v35  ;;  %v1235_v46 = vcombine.high %v6151_v26, %v6151_v26 }
 0x19e   :  { %v1324_v30 = vrot.slane %v1256_v21, %v5504_v8  ;;  %v1397_v24 = vadd.f32 %v1320_v10, %v1047_v5  ;;  %v1266_v44 = vcombine.high %v1256_v21, %v1256_v21  ;;  %v1328_v1 = vrot.slane %v1264_v50, %v5504_v8 }
 0x1a0   :  { %v1398_v19 = vadd.f32 %v1324_v30, %v1052_v12  ;;  %v6142_v17 = vadd.f32 %v1397_v24, %v6122_v41  ;;  %v1332_v4 = vrot.slane %v1266_v44, %v5504_v8 }
 0x1a2   :  { %v6147_v13 = vadd.f32 %v1398_v19, %v6122_v41  ;;  %v1864_v32 = vsel %vm931_vm7, %v6142_v17, 0.0  ;;  %v1902_v39 = vmul.f32 %v6142_v17, %v6142_v17  ;;  %v4971_v14 = vmul.f32 -1.442695, %v6142_v17 }
 0x1a3   :  { %v2087_v23 = vrot.slane %v6142_v17, 1  ;;  %v2219_v37 = vrot.slane %v6142_v17, 5  ;;  %v2189_v29 = vrot.slane %v6142_v17, 4  ;;  %v2121_v19 = vrot.slane %v6142_v17, 2 }
 0x1a4   :  { %v5102_v27 = vpop.f32.mrb[2].mxu0  ;;  %v1865_v22 = vsel %vm931_vm7, %v6147_v13, 0.0  ;;  %v1903_v18 = vmul.f32 %v6147_v13, %v6147_v13  ;;  %v1918_v33 = vsel %vm931_vm7, %v1902_v39, 0.0  ;;  %v2220_v9 = vrot.slane %v6147_v13, 4 }
 0x1a5   :  { %v1062_v48 = vadd.f32 %v5102_v27, %v6133_v59  ;;  %v1056_v57 = vpop.f32.mrb[3].mxu0  ;;  %v1866_v6 = vadd.f32 %v1865_v22, %v1864_v32  ;;  %v2088_v42 = vsel %vm1835_vm8, %v6147_v13, %v2087_v23  ;;  %v2057_v36 = vrot.slane %v6147_v13, 7 }
 0x1a6   :  { %v1057_v2 = vadd.f32 %v6133_v59, %v1056_v57  ;;  %v1919_v34 = vsel %vm931_vm7, %v1903_v18, 0.0  ;;  %v4972_v38 = vmul.f32 -1.442695, %v6147_v13  ;;  %v2221_v62 = vsel %vm1835_vm8, %v2220_v9, %v2219_v37 }
 0x1a7   :  { %v1400_v31 = vadd.f32 %v1332_v4, %v1062_v48  ;;  %v1920_v54 = vadd.f32 %v1919_v34, %v1918_v33  ;;  %v2058_v43 = vsel %vm1835_vm8, %v2057_v36, %v6142_v17  ;;  %5216 = vpow2.f32 %v4971_v14 }
 0x1a8   :  { %v1399_v56 = vadd.f32 %v1328_v1, %v1057_v2  ;;  %v2190_v16 = vrot.slane %v6147_v13, 3  ;;  %5218 = vpow2.f32 %v4972_v38  ;;  %v2122_v27 = vrot.slane %v6147_v13, 1 }
 0x1a9   :  { %v6174_v20 = vadd.f32 %v1400_v31, %v6122_v41  ;;  %v2155_v48 = vrot.slane %v6142_v17, 3  ;;  %v2253_v23 = vrot.slane %v6142_v17, 6  ;;  %v2254_v31 = vrot.slane %v6147_v13, 5 }
 0x1aa   :  { %v6179_v45 = vadd.f32 %v1399_v56, %v6122_v41  ;;  %v2191_v10 = vsel %vm1835_vm8, %v2190_v16, %v2189_v29  ;;  %v2123_v57 = vsel %vm1835_vm8, %v2122_v27, %v2121_v19  ;;  %v2287_v38 = vrot.slane %v6142_v17, 7 }
 0x1ab   :  { %v1905_v52 = vmul.f32 %v6174_v20, %v6174_v20  ;;  %v2091_v51 = vrot.slane %v6174_v20, 6  ;;  %v1869_v58 = vsel %vm931_vm7, %v6174_v20, 0.0  ;;  %v2224_v15 = vrot.slane %v6174_v20, 2 }
 0x1ac   :  { %v1867_v0 = vsel %vm931_vm7, %v6179_v45, 0.0  ;;  %v1904_v25 = vmul.f32 %v6179_v45, %v6179_v45  ;;  %v2089_v40 = vrot.slane %v6179_v45, 7  ;;  %v2222_v53 = vrot.slane %v6179_v45, 3 }
 0x1ad   :  { %v1868_v11 = vadd.f32 %v1867_v0, %v1866_v6  ;;  %v1923_v35 = vsel %vm931_vm7, %v1905_v52, 0.0  ;;  %v2059_v21 = vrot.slane %v6179_v45, 6  ;;  %v2061_v24 = vrot.slane %v6174_v20, 5 }
 0x1ae   :  { %v1921_v61 = vsel %vm931_vm7, %v1904_v25, 0.0  ;;  %v2090_v55 = vsel %vm1837_vm9, %v2089_v40, %v2088_v42  ;;  %v2223_v5 = vsel %vm1837_vm9, %v2222_v53, %v2221_v62  ;;  %v4974_v50 = vmul.f32 -1.442695, %v6174_v20 }
 0x1af   :  { %v6200_v60 = vadd.f32 %v1869_v58, %v1868_v11  ;;  %v1922_v28 = vadd.f32 %v1921_v61, %v1920_v54  ;;  %v6203_v49 = vsel %vm1839_vm10, %v2091_v51, %v2090_v55  ;;  %v6213_v30 = vsel %vm1839_vm10, %v2224_v15, %v2223_v5 }
 0x1b0   :  { %v2060_v47 = vsel %vm1837_vm9, %v2059_v21, %v2058_v43  ;;  %v2192_v44 = vrot.slane %v6179_v45, 2  ;;  %v2194_v32 = vrot.slane %v6174_v20, 1  ;;  %v2125_v22 = vrot.slane %v6174_v20, 7 }
 0x1b1   :  { %v6210_v12 = vadd.f32 %v1923_v35, %v1922_v28  ;;  %v6222_v1 = vsel %vm1839_vm10, %v2061_v24, %v2060_v47  ;;  %v2156_v6 = vrot.slane %v6147_v13, 2  ;;  %v2158_v39 = vrot.slane %v6179_v45, 1  ;;  %v5217_v2 = vpop.eup %5216 }
 0x1b2   :  { %v2193_v4 = vsel %vm1837_vm9, %v2192_v44, %v2191_v10  ;;  %v2124_v18 = vsel %vm1837_vm9, %v6179_v45, %v2123_v57  ;;  %v2256_v9 = vrot.slane %v6179_v45, 4  ;;  %v2258_v56 = vrot.slane %v6174_v20, 3  ;;  %v5219_v34 = vpop.eup %5218 }
 0x1b3   :  { %v6232_v14 = vsel %vm1839_vm10, %v2194_v32, %v2193_v4  ;;  %v6239_v33 = vsel %vm1839_vm10, %v2125_v22, %v2124_v18  ;;  %v2157_v37 = vsel %vm1835_vm8, %v2156_v6, %v2155_v48  ;;  %v2255_v36 = vsel %vm1835_vm8, %v2254_v31, %v2253_v23 }
 0x1b4   :  { %v2159_v42 = vsel %vm1837_vm9, %v2158_v39, %v2157_v37  ;;  %v2288_v54 = vrot.slane %v6147_v13, 6  ;;  %v4973_v62 = vmul.f32 -1.442695, %v6179_v45  ;;  %v2257_v16 = vsel %vm1837_vm9, %v2256_v9, %v2255_v36 }
 0x1b5   :  { %v6251_v43 = vsel %vm1839_vm10, %v6174_v20, %v2159_v42  ;;  %v2290_v0 = vrot.slane %v6179_v45, 5  ;;  %v6256_v25 = vrot.slane %v1235_v46, %v5501_v7  ;;  %v6259_v52 = vsel %vm1839_vm10, %v2258_v56, %v2257_v16 }
 0x1b6   :  { %v2289_v17 = vsel %vm1835_vm8, %v2288_v54, %v2287_v38  ;;  %v2292_v13 = vrot.slane %v6174_v20, 4  ;;  %v6265_v40 = vrot.slane %v6151_v26, %v5501_v7  ;;  %5220 = vpow2.f32 %v4974_v50 }
 0x1b7   :  { %v1477_v11 = vadd.f32 1.0, %v5217_v2  ;;  %v2291_v51 = vsel %vm1837_vm9, %v2290_v0, %v2289_v17  ;;  %5222 = vpow2.f32 %v4973_v62  ;;  %v1340_v58 = vrot.slane %v6256_v25, %v5504_v8 }
 0x1b8   :  { %v6269_v45 = vsel %vm1839_vm10, %v2292_v13, %v2291_v51  ;;  %v1336_v26 = vrot.slane %v6265_v40, %v5504_v8  ;;  %v1478_v55 = vadd.f32 1.0, %v5219_v34  ;;  %v1275_v42 = vrot.slane %v6120_v63, %v5501_v7 }
 0x1b9   :  { %5224 = vrcp.f32 %v1477_v11  ;;  %v1265_v0 = vcombine.high %v6265_v40, %v6265_v40  ;;  %v1267_v40 = vcombine.high %v6256_v25, %v6256_v25 }
 0x1ba   :  { %5226 = vrcp.f32 %v1478_v55 }
 0x1bc   :  { %v5105_v46 = vpop.f32.mrb[4].mxu0 }
 0x1bd   :  { %v1072_v53 = vadd.f32 %v5105_v46, %v6133_v59  ;;  %v1066_v61 = vpop.f32.mrb[5].mxu0 }
 0x1be   :  { %v1067_v20 = vadd.f32 %v6133_v59, %v1066_v61 }
 0x1bf   :  { %v1402_v29 = vadd.f32 %v1340_v58, %v1072_v53 }
 0x1c0   :  { %v1401_v28 = vadd.f32 %v1336_v26, %v1067_v20  ;;  %v5221_v21 = vpop.eup %5220 }
 0x1c1   :  { %v6278_v15 = vadd.f32 %v1402_v29, %v6122_v41  ;;  %v5223_v47 = vpop.eup %5222  ;;  %v1480_v27 = vadd.f32 1.0, %v5221_v21 }
 0x1c2   :  { %v6281_v35 = vadd.f32 %v1401_v28, %v6122_v41  ;;  %v1479_v6 = vadd.f32 1.0, %v5223_v47 }
 0x1c3   :  { %v4976_v5 = vmul.f32 -1.442695, %v6278_v15  ;;  %v1907_v50 = vmul.f32 %v6278_v15, %v6278_v15  ;;  %v1873_v32 = vsel %vm931_vm7, %v6278_v15, 0.0  ;;  %v6295_v48 = vpop.eup %5224  ;;  %v2197_v62 = vrot.slane %v6278_v15, 7 }
 0x1c4   :  { %v4975_v10 = vmul.f32 -1.442695, %v6281_v35  ;;  %v1871_v24 = vsel %vm931_vm7, %v6281_v35, 0.0  ;;  %v1906_v19 = vmul.f32 %v6281_v35, %v6281_v35  ;;  %v2093_v2 = vrot.slane %v6281_v35, 5  ;;  %v6310_v37 = vpop.eup %5226 }
 0x1c5   :  { %5228 = vpow2.f32 %v4976_v5  ;;  %v1872_v44 = vadd.f32 %v1871_v24, %v6200_v60  ;;  %v1927_v39 = vsel %vm931_vm7, %v1907_v50, 0.0  ;;  %v2095_v60 = vrot.slane %v6278_v15, 4 }
 0x1c6   :  { %5230 = vpow2.f32 %v4975_v10  ;;  %v1925_v22 = vsel %vm931_vm7, %v1906_v19, 0.0  ;;  %v2226_v23 = vrot.slane %v6281_v35, 1  ;;  %v1659_v31 = vsel %vm931_vm7, %v6295_v48, 0.0 }
 0x1c7   :  { %v6297_v4 = vadd.f32 %v1873_v32, %v1872_v44  ;;  %v1926_v57 = vadd.f32 %v1925_v22, %v6210_v12  ;;  %5232 = vrcp.f32 %v1480_v27  ;;  %v2094_v12 = vsel %vm1841_vm11, %v2093_v2, %v6203_v49 }
 0x1c8   :  { %v6313_v9 = vsel %vm1843_vm12, %v2095_v60, %v2094_v12  ;;  %v2227_v56 = vsel %vm1841_vm11, %v2226_v23, %v6213_v30  ;;  %v2063_v34 = vrot.slane %v6281_v35, 4  ;;  %5234 = vrcp.f32 %v1479_v6 }
 0x1c9   :  { %v6302_v18 = vadd.f32 %v1927_v39, %v1926_v57  ;;  %v6322_v36 = vsel %vm1843_vm12, %v6278_v15, %v2227_v56  ;;  %v2065_v49 = vrot.slane %v6278_v15, 3  ;;  %v1660_v38 = vrot.slane %v1659_v31, 4 }
 0x1ca   :  { %v2064_v54 = vsel %vm1841_vm11, %v2063_v34, %v6222_v1  ;;  %v2196_v30 = vsel %vm1841_vm11, %v6281_v35, %v6232_v14  ;;  %v1666_v17 = vsel %vm931_vm7, %v6310_v37, 0.0  ;;  %v2127_v11 = vrot.slane %v6281_v35, 6 }
 0x1cb   :  { %v6336_v13 = vsel %vm1843_vm12, %v2065_v49, %v2064_v54  ;;  %v6340_v46 = vsel %vm1843_vm12, %v2197_v62, %v2196_v30  ;;  %v2129_v14 = vrot.slane %v6278_v15, 5  ;;  %v2161_v53 = vrot.slane %v6281_v35, 7 }
 0x1cc   :  { %v2128_v61 = vsel %vm1841_vm11, %v2127_v11, %v6239_v33  ;;  %v2163_v20 = vrot.slane %v6278_v15, 6  ;;  %v1661_v26 = vadd.f32 %v1660_v38, %v1659_v31  ;;  %v1667_v28 = vrot.slane %v1666_v17, 4 }
 0x1cd   :  { %v6350_v55 = vsel %vm1843_vm12, %v2129_v14, %v2128_v61  ;;  %v2162_v29 = vsel %vm1841_vm11, %v2161_v53, %v6251_v43  ;;  %v2260_v25 = vrot.slane %v6281_v35, 2  ;;  %v1344_v33 = vrot.slane %v1265_v0, %v5504_v8 }
 0x1ce   :  { %v6355_v5 = vsel %vm1843_vm12, %v2163_v20, %v2162_v29  ;;  %v1283_v10 = vcombine.high %v1275_v42, %v1275_v42  ;;  %v2262_v24 = vrot.slane %v6278_v15, 1  ;;  %v2294_v19 = vrot.slane %v6281_v35, 3 }
 0x1cf   :  { %v5229_v16 = vpop.eup %5228  ;;  %v1348_v43 = vrot.slane %v1267_v40, %v5504_v8  ;;  %v2261_v27 = vsel %vm1841_vm11, %v2260_v25, %v6259_v52  ;;  %v2296_v32 = vrot.slane %v6278_v15, 2  ;;  %v1662_v57 = vrot.slane %v1661_v26, 2 }
 0x1d0   :  { %v5231_v51 = vpop.eup %5230  ;;  %v1482_v1 = vadd.f32 1.0, %v5229_v16  ;;  %v6370_v6 = vsel %vm1843_vm12, %v2262_v24, %v2261_v27  ;;  %v2295_v35 = vsel %vm1841_vm11, %v2294_v19, %v6269_v45  ;;  %v6376_v60 = vadd.f32 %v1667_v28, %v1666_v17 }
 0x1d1   :  { %v1481_v58 = vadd.f32 1.0, %v5231_v51  ;;  %v6361_v50 = vpop.eup %5232  ;;  %v6379_v23 = vsel %vm1843_vm12, %v2296_v32, %v2295_v35  ;;  %v6387_v12 = vrot.slane %v1275_v42, %v5501_v7  ;;  %v1268_v45 = vcombine.high %v6120_v63, %v6120_v63 }
 0x1d2   :  { %5236 = vrcp.f32 %v1482_v1  ;;  %v6374_v39 = vpop.eup %5234  ;;  %v1680_v15 = vsel %vm931_vm7, %v6361_v50, 0.0  ;;  %v6395_v34 = vrot.slane %v1283_v10, %v5501_v7  ;;  %v6397_v49 = vadd.f32 %v1662_v57, %v1661_v26 }
 0x1d3   :  { %5238 = vrcp.f32 %v1481_v58  ;;  %v1673_v38 = vsel %vm931_vm7, %v6374_v39, 0.0  ;;  %v1669_v42 = vrot.slane %v6376_v60, 2  ;;  %v1681_v30 = vrot.slane %v1680_v15, 4 }
 0x1d4   :  { %v5108_v21 = vpop.f32.mrb[6].mxu0  ;;  %v1674_v14 = vrot.slane %v1673_v38, 4 }
 0x1d5   :  { %v1082_v47 = vadd.f32 %v5108_v21, %v6133_v59  ;;  %v1076_v44 = vpop.f32.mrb[7].mxu0  ;;  %v1682_v25 = vadd.f32 %v1681_v30, %v1680_v15 }
 0x1d6   :  { %v1077_v22 = vadd.f32 %v6133_v59, %v1076_v44 }
 0x1d7   :  { %v1404_v2 = vadd.f32 %v1348_v43, %v1082_v47 }
 0x1d8   :  { %v1403_v52 = vadd.f32 %v1344_v33, %v1077_v22 }
 0x1d9   :  { %v6384_v31 = vadd.f32 %v1404_v2, %v6122_v41  ;;  %v1675_v2 = vadd.f32 %v1674_v14, %v1673_v38 }
 0x1da   :  { %v6392_v56 = vadd.f32 %v1403_v52, %v6122_v41 }
 0x1db   :  { %v4978_v54 = vmul.f32 -1.442695, %v6384_v31  ;;  %v1909_v62 = vmul.f32 %v6384_v31, %v6384_v31  ;;  %v1877_v40 = vsel %vm931_vm7, %v6384_v31, 0.0  ;;  %v2099_v20 = vrot.slane %v6384_v31, 2 }
 0x1dc   :  { %v6405_v16 = vpop.eup %5236  ;;  %v4977_v0 = vmul.f32 -1.442695, %v6392_v56  ;;  %v1875_v17 = vsel %vm931_vm7, %v6392_v56, 0.0  ;;  %v1908_v11 = vmul.f32 %v6392_v56, %v6392_v56  ;;  %v2097_v51 = vrot.slane %v6392_v56, 3 }
 0x1dd   :  { %v6413_v1 = vpop.eup %5238  ;;  %5240 = vpow2.f32 %v4978_v54  ;;  %v1876_v53 = vadd.f32 %v1875_v17, %v6297_v4  ;;  %v1694_v58 = vsel %vm931_vm7, %v6405_v16, 0.0  ;;  %v1931_v21 = vsel %vm931_vm7, %v1909_v62, 0.0 }
 0x1de   :  { %5242 = vpow2.f32 %v4977_v0  ;;  %v1929_v61 = vsel %vm931_vm7, %v1908_v11, 0.0  ;;  %v1687_v26 = vsel %vm931_vm7, %v6413_v1, 0.0  ;;  %v2098_v4 = vsel %vm1845_vm13, %v2097_v51, %v6313_v9 }
 0x1df   :  { %v6424_v29 = vadd.f32 %v1877_v40, %v1876_v53  ;;  %v1930_v28 = vadd.f32 %v1929_v61, %v6302_v18  ;;  %v6431_v33 = vsel %vm8702_vm14, %v2099_v20, %v2098_v4  ;;  %v2229_v10 = vrot.slane %v6392_v56, 7 }
 0x1e0   :  { %8747 = vst [vmem:[#allocation6_spill] sm:$0xff] %v6431_v33  ;;  %v1695_v24 = vrot.slane %v1694_v58, 4  ;;  %v2231_v47 = vrot.slane %v6384_v31, 6  ;;  %v2067_v43 = vrot.slane %v6392_v56, 2  ;;  %v1688_v44 = vrot.slane %v1687_v26, 4 }
 0x1e1   :  { %v6434_v19 = vadd.f32 %v1931_v21, %v1930_v28  ;;  %v2230_v18 = vsel %vm1845_vm13, %v2229_v10, %v6322_v36  ;;  %v2069_v9 = vrot.slane %v6384_v31, 1  ;;  %v2199_v27 = vrot.slane %v6392_v56, 6 }
 0x1e2   :  { %v6443_v32 = vsel %vm8702_vm14, %v2231_v47, %v2230_v18  ;;  %v2068_v22 = vsel %vm1845_vm13, %v2067_v43, %v6336_v13  ;;  %v2201_v57 = vrot.slane %v6384_v31, 5  ;;  %v2131_v35 = vrot.slane %v6392_v56, 4 }
 0x1e3   :  { %8748 = vst [vmem:[#allocation7_spill] sm:$0xff] %v6443_v32  ;;  %v6450_v52 = vsel %vm8702_vm14, %v2069_v9, %v2068_v22  ;;  %v2200_v36 = vsel %vm1845_vm13, %v2199_v27, %v6340_v46  ;;  %v2133_v15 = vrot.slane %v6384_v31, 3  ;;  %v1696_v54 = vadd.f32 %v1695_v24, %v1694_v58 }
 0x1e4   :  { %8749 = vst [vmem:[#allocation8_spill] sm:$0xff] %v6450_v52  ;;  %v6456_v30 = vsel %vm8702_vm14, %v2201_v57, %v2200_v36  ;;  %v2132_v13 = vsel %vm1845_vm13, %v2131_v35, %v6350_v55  ;;  %v2165_v62 = vrot.slane %v6392_v56, 5  ;;  %v1689_v0 = vadd.f32 %v1688_v44, %v1687_v26 }
 0x1e5   :  { %8750 = vst [vmem:[#allocation9_spill] sm:$0xff] %v6456_v30  ;;  %v6462_v38 = vsel %vm8702_vm14, %v2133_v15, %v2132_v13  ;;  %v2167_v17 = vrot.slane %v6384_v31, 4  ;;  %v2264_v46 = vsel %vm1845_vm13, %v6392_v56, %v6370_v6  ;;  %v1664_v51 = vrot.slane %v6397_v49, 1 }
 0x1e6   :  { %8751 = vst [vmem:[#allocation10_spill] sm:$0xff] %v6462_v38  ;;  %v2166_v14 = vsel %vm1845_vm13, %v2165_v62, %v6355_v5  ;;  %v2265_v55 = vrot.slane %v6384_v31, 7  ;;  %v2298_v53 = vrot.slane %v6392_v56, 1  ;;  %v1670_v61 = vadd.f32 %v1669_v42, %v6376_v60 }
 0x1e7   :  { %v5241_v11 = vpop.eup %5240  ;;  %v1683_v20 = vrot.slane %v1682_v25, 2  ;;  %v6475_v26 = vsel %vm8702_vm14, %v2167_v17, %v2166_v14  ;;  %v1676_v6 = vrot.slane %v1675_v2, 2  ;;  %v1690_v21 = vrot.slane %v1689_v0, 2 }
 0x1e8   :  { %v5243_v40 = vpop.eup %5242  ;;  %v1484_v58 = vadd.f32 1.0, %v5241_v11  ;;  %8752 = vst [vmem:[#allocation11_spill] sm:$0xff] %v6475_v26  ;;  %v6478_v4 = vsel %vm8702_vm14, %v2265_v55, %v2264_v46  ;;  %v2299_v5 = vsel %vm1845_vm13, %v2298_v53, %v6379_v23  ;;  %v1697_v10 = vrot.slane %v1696_v54, 2 }
 0x1e9   :  { %v1483_v28 = vadd.f32 1.0, %v5243_v40  ;;  %8753 = vst [vmem:[#allocation12_spill] sm:$0xff] %v6478_v4  ;;  %v6484_v56 = vsel %vm8702_vm14, %v6384_v31, %v2299_v5  ;;  %v1356_v42 = vrot.slane %v6395_v34, %v5504_v8  ;;  %v1352_v24 = vrot.slane %v6387_v12, %v5504_v8 }
 0x1ea   :  { %5244 = vrcp.f32 %v1484_v58  ;;  %8754 = vst [vmem:[#allocation13_spill] sm:$0xff] %v6484_v56  ;;  %v6494_v23 = vrot.slane %v1268_v45, %v5501_v7  ;;  %v1665_v31 = vadd.f32 %v1664_v51, %v6397_v49  ;;  %v1671_v44 = vrot.slane %v1670_v61, 1 }
 0x1eb   :  { %5246 = vrcp.f32 %v1483_v28  ;;  %v1684_v18 = vadd.f32 %v1683_v20, %v1682_v25  ;;  %v1677_v27 = vadd.f32 %v1676_v6, %v1675_v2  ;;  %v6499_v22 = vadd.f32 %v1690_v21, %v1689_v0 }
 0x1ec   :  { %v5111_v60 = vpop.f32.mrb[8].mxu0  ;;  %v6501_v57 = vadd.f32 %v1697_v10, %v1696_v54  ;;  %v1284_v45 = vcombine.high %v6494_v23, %v6494_v23  ;;  %v6508_v13 = vadd.f32 %v1671_v44, %v1670_v61  ;;  %v6510_v62 = vadd.f32 1e-20, %v1665_v31 }
 0x1ed   :  { %v1092_v47 = vadd.f32 %v5111_v60, %v6133_v59  ;;  %v1086_v43 = vpop.f32.mrb[9].mxu0  ;;  %v1685_v49 = vrot.slane %v1684_v18, 1  ;;  %v1678_v2 = vrot.slane %v1677_v27, 1  ;;  %v1692_v0 = vrot.slane %v6499_v22, 1 }
 0x1ee   :  { %v1087_v9 = vadd.f32 %v6133_v59, %v1086_v43  ;;  %v1699_v54 = vrot.slane %v6501_v57, 1 }
 0x1ef   :  { %v1406_v35 = vadd.f32 %v1356_v42, %v1092_v47 }
 0x1f0   :  { %v1405_v36 = vadd.f32 %v1352_v24, %v1087_v9 }
 0x1f1   :  { %v6506_v15 = vadd.f32 %v1406_v35, %v6120_v63 }
 0x1f2   :  { %v1421_v25 = vadd.f32 %v1405_v36, %v6120_v63 }
 0x1f3   :  { %v4980_v17 = vmul.f32 -1.442695, %v6506_v15  ;;  %v1881_v46 = vsel %vm931_vm7, %v6506_v15, 0.0  ;;  %v1911_v11 = vmul.f32 %v6506_v15, %v6506_v15  ;;  %v2136_v51 = vrot.slane %v6506_v15, 1 }
 0x1f4   :  { %v6521_v14 = vpop.eup %5244  ;;  %v4979_v55 = vmul.f32 -1.442695, %v1421_v25  ;;  %v1879_v53 = vsel %vm931_vm7, %v1421_v25, 0.0  ;;  %v1910_v40 = vmul.f32 %v1421_v25, %v1421_v25  ;;  %v2135_v58 = vrot.slane %v1421_v25, 2 }
 0x1f5   :  { %v6524_v61 = vpop.eup %5246  ;;  %5248 = vpow2.f32 %v4980_v17  ;;  %v1708_v20 = vsel %vm931_vm7, %v6521_v14, 0.0  ;;  %v1880_v28 = vadd.f32 %v1879_v53, %v6424_v29  ;;  %v1935_v6 = vsel %vm931_vm7, %v1911_v11, 0.0 }
 0x1f6   :  { %5250 = vpow2.f32 %v4979_v55  ;;  %v1701_v5 = vsel %vm931_vm7, %v6524_v61, 0.0  ;;  %v1709_v21 = vrot.slane %v1708_v20, 4  ;;  %v1933_v10 = vsel %vm931_vm7, %v1910_v40, 0.0 }
 0x1f7   :  { %v1702_v60 = vrot.slane %v1701_v5, 4  ;;  %v6533_v42 = vadd.f32 %v1881_v46, %v1880_v28  ;;  %v1934_v24 = vadd.f32 %v1933_v10, %v6434_v19  ;;  %v6537_v47 = vsel %vm1835_vm8, %v2136_v51, %v2135_v58 }
 0x1f8   :  { %v1710_v43 = vadd.f32 %v1709_v21, %v1708_v20  ;;  %v2101_v31 = vrot.slane %v1421_v25, 1  ;;  %v2169_v29 = vrot.slane %v1421_v25, 3  ;;  %v2170_v44 = vrot.slane %v6506_v15, 2 }
 0x1f9   :  { %v1703_v9 = vadd.f32 %v1702_v60, %v1701_v5  ;;  %v6540_v35 = vadd.f32 %v1935_v6, %v1934_v24  ;;  %v2267_v36 = vrot.slane %v1421_v25, 6  ;;  %v2268_v17 = vrot.slane %v6506_v15, 5 }
 0x1fa   :  { %v1711_v11 = vrot.slane %v1710_v43, 2  ;;  %v6545_v46 = vsel %vm1835_vm8, %v6506_v15, %v2101_v31  ;;  %v6548_v19 = vsel %vm1835_vm8, %v2170_v44, %v2169_v29  ;;  %v2233_v51 = vrot.slane %v1421_v25, 5 }
 0x1fb   :  { %v1704_v55 = vrot.slane %v1703_v9, 2  ;;  %v6551_v53 = vsel %vm1835_vm8, %v2268_v17, %v2267_v36  ;;  %v2234_v40 = vrot.slane %v6506_v15, 4  ;;  %v2301_v58 = vrot.slane %v1421_v25, 7 }
 0x1fc   :  { %v1712_v20 = vadd.f32 %v1711_v11, %v1710_v43  ;;  %v2302_v28 = vrot.slane %v6506_v15, 6  ;;  %v2071_v6 = vrot.slane %v6506_v15, 7  ;;  %v2203_v5 = vrot.slane %v1421_v25, 4 }
 0x1fd   :  { %v1686_v21 = vadd.f32 %v1685_v49, %v1684_v18  ;;  %v1705_v10 = vadd.f32 %v1704_v55, %v1703_v9  ;;  %v6557_v60 = vsel %vm1835_vm8, %v2234_v40, %v2233_v51  ;;  %v2204_v24 = vrot.slane %v6506_v15, 3 }
 0x1fe   :  { %v1679_v31 = vadd.f32 %v1678_v2, %v1677_v27  ;;  %v1713_v29 = vrot.slane %v1712_v20, 1  ;;  %v6561_v44 = vsel %vm1835_vm8, %v2302_v28, %v2301_v58  ;;  %v6564_v36 = vsel %vm1835_vm8, %v2071_v6, %v1421_v25 }
 0x1ff   :  { %8755 = vst [vmem:[#allocation14_spill] sm:$0xff] %v6564_v36  ;;  %v5249_v43 = vpop.eup %5248  ;;  %v1313_v17 = vcombine.high %v6387_v12, %v6387_v12  ;;  %v1700_v18 = vadd.f32 %v1699_v54, %v6501_v57  ;;  %v1706_v49 = vrot.slane %v1705_v10, 1  ;;  %v6570_v9 = vsel %vm1835_vm8, %v2204_v24, %v2203_v5 }
 0x200   :  { %8756 = vst [vmem:[#allocation15_spill] sm:$0xff] %v6570_v9  ;;  %v5251_v11 = vpop.eup %5250  ;;  %v1315_v27 = vcombine.high %v6395_v34, %v6395_v34  ;;  %v1486_v15 = vadd.f32 1.0, %v5249_v43  ;;  %v1693_v2 = vadd.f32 %v1692_v0, %v6499_v22  ;;  %v1772_v25 = vadd.f32 1e-20, %v6508_v13 }
 0x201   :  { %v1485_v51 = vadd.f32 1.0, %v5251_v11  ;;  %v1714_v55 = vadd.f32 %v1713_v29, %v1712_v20  ;;  %v1774_v40 = vadd.f32 1e-20, %v1686_v21  ;;  %5252 = vrcp.f32 %v6510_v62 }
 0x202   :  { %5254 = vrcp.f32 %v1486_v15  ;;  %v6581_v12 = vrot.slane %v1284_v45, %v5501_v7  ;;  %v1707_v57 = vadd.f32 %v1706_v49, %v1705_v10  ;;  %v1773_v54 = vadd.f32 1e-20, %v1679_v31 }
 0x203   :  { %5256 = vrcp.f32 %v1485_v51  ;;  %v1776_v34 = vadd.f32 1e-20, %v1700_v18  ;;  %v1364_v22 = vrot.slane %v1315_v27, %v5504_v8  ;;  %v1360_v13 = vrot.slane %v1313_v17, %v5504_v8 }
 0x204   :  { %v5114_v58 = vpop.f32.mrb[10].mxu0  ;;  %v1775_v0 = vadd.f32 1e-20, %v1693_v2  ;;  %5258 = vrcp.f32 %v1772_v25  ;;  %v6588_v28 = vrot.slane %v6494_v23, %v5501_v7  ;;  %v1778_v45 = vadd.f32 1e-20, %v1714_v55 }
 0x205   :  { %v1102_v62 = vadd.f32 %v5114_v58, %v6133_v59  ;;  %v1096_v20 = vpop.f32.mrb[11].mxu0  ;;  %5260 = vrcp.f32 %v1774_v40  ;;  %v1777_v5 = vadd.f32 1e-20, %v1707_v57  ;;  %v1316_v21 = vcombine.high %v6581_v12, %v6581_v12 }
 0x206   :  { %v1097_v6 = vadd.f32 %v6133_v59, %v1096_v20  ;;  %5262 = vrcp.f32 %v1773_v54 }
 0x207   :  { %v1408_v10 = vadd.f32 %v1364_v22, %v1102_v62  ;;  %5264 = vrcp.f32 %v1776_v34  ;;  %v6604_v18 = vrot.slane %v1316_v21, %v5504_v8 }
 0x208   :  { %v1407_v24 = vadd.f32 %v1360_v13, %v1097_v6  ;;  %5266 = vrcp.f32 %v1775_v0 }
 0x209   :  { %v6594_v31 = vadd.f32 %v1408_v10, %v6120_v63  ;;  %5268 = vrcp.f32 %v1778_v45  ;;  %v6616_v55 = vpop.permute.xlu1 %1527 }
 0x20a   :  { %v6601_v43 = vadd.f32 %v1407_v24, %v6120_v63  ;;  %v1526_v17 = vpop.permute.xlu0 %1525  ;;  %5270 = vrcp.f32 %v1777_v5 }
 0x20b   :  { %v6608_v11 = vpop.eup %5252  ;;  %v4982_v27 = vmul.f32 -1.442695, %v6594_v31  ;;  %v1531_v15 = vmul.f32 %v6295_v48, %v1526_v17  ;;  %v1532_v2 = vmul.f32 %v6310_v37, %v1526_v17  ;;  %v1533_v25 = vmul.f32 %v6374_v39, %v1526_v17 }
 0x20c   :  { %v6614_v51 = vpop.eup %5254  ;;  %v4981_v40 = vmul.f32 -1.442695, %v6601_v43  ;;  %v1534_v57 = vmul.f32 %v6361_v50, %v1526_v17  ;;  %v1535_v54 = vmul.f32 %v6413_v1, %v1526_v17  ;;  %v1536_v34 = vmul.f32 %v6405_v16, %v1526_v17 }
 0x20d   :  { %v6622_v58 = vpop.eup %5256  ;;  %5272 = vpow2.f32 %v4982_v27  ;;  %v1540_v48 = vmul.f32 %v6614_v51, %v6616_v55  ;;  %v1547_v37 = vsel %vm931_vm7, %v1531_v15, 0.0  ;;  %v1554_v39 = vsel %vm931_vm7, %v1532_v2, 0.0 }
 0x20e   :  { %v6628_v22 = vpop.eup %5258  ;;  %5274 = vpow2.f32 %v4981_v40  ;;  %v1539_v50 = vmul.f32 %v6622_v58, %v6616_v55  ;;  %v1548_v13 = vrot.slane %v1547_v37, 4  ;;  %v1555_v1 = vrot.slane %v1554_v39, 4 }
 0x20f   :  { %v6632_v0 = vpop.eup %5260  ;;  %v6635_v16 = vsel %vm931_vm7, %v1540_v48, 0.0  ;;  %v1537_v62 = vmul.f32 %v6524_v61, %v1526_v17  ;;  %v1538_v20 = vmul.f32 %v6521_v14, %v1526_v17  ;;  %v1561_v45 = vsel %vm931_vm7, %v1533_v25, 0.0 }
 0x210   :  { %v6640_v6 = vpop.eup %5262  ;;  %v6643_v5 = vsel %vm931_vm7, %v1539_v50, 0.0  ;;  %v1549_v10 = vadd.f32 %v1548_v13, %v1547_v37  ;;  %v1556_v24 = vadd.f32 %v1555_v1, %v1554_v39  ;;  %v1562_v2 = vrot.slane %v1561_v45, 4 }
 0x211   :  { %v6646_v27 = vpop.eup %5264  ;;  %v1568_v61 = vsel %vm931_vm7, %v1534_v57, 0.0  ;;  %v1575_v14 = vsel %vm931_vm7, %v1535_v54, 0.0  ;;  %v1582_v37 = vsel %vm931_vm7, %v1536_v34, 0.0  ;;  %v1589_v39 = vsel %vm931_vm7, %v1537_v62, 0.0 }
 0x212   :  { %v5267_v17 = vpop.eup %5266  ;;  %v1550_v25 = vrot.slane %v1549_v10, 2  ;;  %v1557_v40 = vrot.slane %v1556_v24, 2  ;;  %v1569_v48 = vrot.slane %v1568_v61, 4  ;;  %v1576_v49 = vrot.slane %v1575_v14, 4 }
 0x213   :  { %v6651_v50 = vpop.eup %5268  ;;  %v1563_v29 = vadd.f32 %v1562_v2, %v1561_v45  ;;  %v1596_v13 = vsel %vm931_vm7, %v1538_v20, 0.0  ;;  %v1583_v3 = vrot.slane %v1582_v37, 4  ;;  %v1590_v30 = vrot.slane %v1589_v39, 4 }
 0x214   :  { %v5271_v1 = vpop.eup %5270  ;;  %v1551_v21 = vadd.f32 %v1550_v25, %v1549_v10  ;;  %v1558_v15 = vadd.f32 %v1557_v40, %v1556_v24  ;;  %v1570_v57 = vadd.f32 %v1569_v48, %v1568_v61  ;;  %v1577_v23 = vadd.f32 %v1576_v49, %v1575_v14 }
 0x215   :  { %v1564_v54 = vrot.slane %v1563_v29, 2  ;;  %v1597_v52 = vrot.slane %v1596_v13, 4  ;;  %v1584_v34 = vadd.f32 %v1583_v3, %v1582_v37  ;;  %v1591_v7 = vadd.f32 %v1590_v30, %v1589_v39 }
 0x216   :  { %v1552_v56 = vrot.slane %v1551_v21, 1  ;;  %v1559_v4 = vrot.slane %v1558_v15, 1  ;;  %v1571_v26 = vrot.slane %v1570_v57, 2  ;;  %v1578_v38 = vrot.slane %v1577_v23, 2 }
 0x217   :  { %v5273_v45 = vpop.eup %5272  ;;  %v1565_v2 = vadd.f32 %v1564_v54, %v1563_v29  ;;  %v1598_v62 = vadd.f32 %v1597_v52, %v1596_v13  ;;  %v1585_v25 = vrot.slane %v1584_v34, 2  ;;  %v1592_v48 = vrot.slane %v1591_v7, 2 }
 0x218   :  { %v5275_v41 = vpop.eup %5274  ;;  %v1488_v20 = vadd.f32 1.0, %v5273_v45  ;;  %v1553_v32 = vadd.f32 %v1552_v56, %v1551_v21  ;;  %v1560_v10 = vadd.f32 %v1559_v4, %v1558_v15  ;;  %v1572_v24 = vadd.f32 %v1571_v26, %v1570_v57 }
 0x219   :  { %v1487_v61 = vadd.f32 1.0, %v5275_v41  ;;  %v1566_v49 = vrot.slane %v1565_v2, 1  ;;  %v1579_v14 = vadd.f32 %v1578_v38, %v1577_v23  ;;  %v1599_v33 = vrot.slane %v1598_v62, 2 }
 0x21a   :  { %5276 = vrcp.f32 %v1488_v20  ;;  %v1573_v40 = vrot.slane %v1572_v24, 1  ;;  %v1586_v29 = vadd.f32 %v1585_v25, %v1584_v34  ;;  %v1593_v52 = vadd.f32 %v1592_v48, %v1591_v7 }
 0x21b   :  { %5278 = vrcp.f32 %v1487_v61  ;;  %v1567_v9 = vadd.f32 %v1566_v49, %v1565_v2  ;;  %v1580_v36 = vrot.slane %v1579_v14, 1  ;;  %v1600_v37 = vadd.f32 %v1599_v33, %v1598_v62 }
 0x21c   :  { %v5117_v3 = vpop.f32.mrb[12].mxu0  ;;  %v1574_v30 = vadd.f32 %v1573_v40, %v1572_v24  ;;  %v1803_v56 = vmul.f32 %v6608_v11, %v1553_v32  ;;  %v1587_v38 = vrot.slane %v1586_v29, 1  ;;  %v1804_v23 = vmul.f32 %v6628_v22, %v1560_v10 }
 0x21d   :  { %v1112_v26 = vadd.f32 %v5117_v3, %v6133_v59  ;;  %v1106_v41 = vpop.f32.mrb[13].mxu0  ;;  %v1581_v4 = vadd.f32 %v1580_v36, %v1579_v14  ;;  %v1594_v15 = vrot.slane %v1593_v52, 1  ;;  %v1601_v39 = vrot.slane %v1600_v37, 1 }
 0x21e   :  { %v1107_v21 = vadd.f32 %v6133_v59, %v1106_v41  ;;  %v1805_v13 = vmul.f32 %v6640_v6, %v1567_v9  ;;  %v8757_v57 = vrot.slane %v6581_v12, %v5504_v8  ;;  %v1588_v33 = vadd.f32 %v1587_v38, %v1586_v29 }
 0x21f   :  { %v1806_v32 = vmul.f32 %v6632_v0, %v1574_v30  ;;  %v1807_v11 = vmul.f32 %v5267_v17, %v1581_v4  ;;  %v8758_v36 = vrot.slane %v6588_v28, %v5504_v8  ;;  %v1595_v45 = vadd.f32 %v1594_v15, %v1593_v52 }
 0x220   :  { %v1410_v7 = vadd.f32 %v8757_v57, %v1112_v26  ;;  %v1602_v22 = vadd.f32 %v1601_v39, %v1600_v37  ;;  %v1836_v59 = vsel %vm1835_vm8, %v1804_v23, %v1803_v56  ;;  %v1808_v9 = vmul.f32 %v6646_v27, %v1588_v33 }
 0x221   :  { %v1409_v54 = vadd.f32 %v8758_v36, %v1107_v21  ;;  %v1838_v12 = vsel %vm1837_vm9, %v1805_v13, %v1836_v59  ;;  %v8759_v6 = vrot.slane %v6643_v5, 4  ;;  %v1809_v34 = vmul.f32 %v5271_v1, %v1595_v45  ;;  %v5416_v36 = vld [vmem:[%s8690_s3] ss:$0 sm:$0xff] }
 0x222   :  { %v6670_v2 = vadd.f32 %v1410_v7, %v6120_v63  ;;  %v1810_v62 = vmul.f32 %v6651_v50, %v1602_v22  ;;  %v1840_v20 = vsel %vm1839_vm10, %v1806_v32, %v1838_v12  ;;  %v8760_v27 = vrot.slane %v6635_v16, 4 }
 0x223   :  { %v1605_v0 = vadd.f32 %v8759_v6, %v6643_v5  ;;  %v6678_v17 = vadd.f32 %v1409_v54, %v6120_v63  ;;  %v1842_v10 = vsel %vm1841_vm11, %v1807_v11, %v1840_v20  ;;  %v1715_v1 = vsel %vm931_vm7, %v6622_v58, 0.0 }
 0x224   :  { %v4984_v24 = vmul.f32 -1.442695, %v6670_v2  ;;  %v1612_v49 = vadd.f32 %v8760_v27, %v6635_v16  ;;  %v5277_v14 = vpop.eup %5276  ;;  %v1844_v5 = vsel %vm1843_vm12, %v1808_v9, %v1842_v10  ;;  %v1722_v50 = vsel %vm931_vm7, %v6614_v51, 0.0 }
 0x225   :  { %v1606_v61 = vrot.slane %v1605_v0, 2  ;;  %v4983_v25 = vmul.f32 -1.442695, %v6678_v17  ;;  %v5279_v40 = vpop.eup %5278  ;;  %v1542_v48 = vmul.f32 %v5277_v14, %v6616_v55  ;;  %v1846_v29 = vsel %vm1845_vm13, %v1809_v34, %v1844_v5 }
 0x226   :  { %5280 = vpow2.f32 %v4984_v24  ;;  %v1541_v16 = vmul.f32 %v5279_v40, %v6616_v55  ;;  %v1848_v30 = vsel %vm8702_vm14, %v1810_v62, %v1846_v29  ;;  %v1613_v52 = vrot.slane %v1612_v49, 2 }
 0x227   :  { %v1607_v3 = vadd.f32 %v1606_v61, %v1605_v0  ;;  %5282 = vpow2.f32 %v4983_v25  ;;  %1856 = vrot.lane.b32.xlu0 %v1848_v30, %s5426_s23  ;;  %v1624_v58 = vsel %vm931_vm7, %v1542_v48, 0.0  ;;  %v1716_v56 = vrot.slane %v1715_v1, 4 }
 0x228   :  { %v1723_v51 = vrot.slane %v1722_v50, 4  ;;  %v1614_v26 = vadd.f32 %v1613_v52, %v1612_v49  ;;  %v1617_v41 = vsel %vm931_vm7, %v1541_v16, 0.0  ;;  %v1625_v4 = vrot.slane %v1624_v58, 4 }
 0x229   :  { %v1608_v37 = vrot.slane %v1607_v3, 1  ;;  %v1729_v38 = vsel %vm931_vm7, %v5279_v40, 0.0  ;;  %v8761_v23 = vcombine.high %v6588_v28, %v6588_v28  ;;  %v1618_v15 = vrot.slane %v1617_v41, 4 }
 0x22a   :  { %v1717_v39 = vadd.f32 %v1716_v56, %v1715_v1  ;;  %v1724_v13 = vadd.f32 %v1723_v51, %v1722_v50  ;;  %v5120_v57 = vpop.f32.mrb[14].mxu0  ;;  %v1626_v33 = vadd.f32 %v1625_v4, %v1624_v58  ;;  %v1730_v32 = vrot.slane %v1729_v38, 4 }
 0x22b   :  { %v1376_v21 = vrot.slane %v8761_v23, %v5504_v8  ;;  %v6705_v7 = vadd.f32 %v1608_v37, %v1607_v3  ;;  %v1736_v11 = vsel %vm931_vm7, %v5277_v14, 0.0  ;;  %v1122_v54 = vadd.f32 %v5416_v36, %v5120_v57  ;;  %v1116_v45 = vpop.f32.mrb[15].mxu0 }
 0x22c   :  { %v1619_v22 = vadd.f32 %v1618_v15, %v1617_v41  ;;  %v1718_v59 = vrot.slane %v1717_v39, 2  ;;  %v1725_v28 = vrot.slane %v1724_v13, 2  ;;  %v1117_v9 = vadd.f32 %v5416_v36, %v1116_v45 }
 0x22d   :  { %v1615_v12 = vrot.slane %v1614_v26, 1  ;;  %v1627_v6 = vrot.slane %v1626_v33, 2  ;;  %v1731_v0 = vadd.f32 %v1730_v32, %v1729_v38  ;;  %v1412_v34 = vadd.f32 %v6604_v18, %v1122_v54 }
 0x22e   :  { %v1620_v62 = vrot.slane %v1619_v22, 2  ;;  %v1719_v20 = vadd.f32 %v1718_v59, %v1717_v39  ;;  %v1726_v10 = vadd.f32 %v1725_v28, %v1724_v13  ;;  %v1411_v24 = vadd.f32 %v1376_v21, %v1117_v9 }
 0x22f   :  { %v1628_v61 = vadd.f32 %v1627_v6, %v1626_v33  ;;  %v1732_v27 = vrot.slane %v1731_v0, 2  ;;  %v1737_v49 = vrot.slane %v1736_v11, 4  ;;  %v6713_v5 = vadd.f32 %v1412_v34, %v6120_v63 }
 0x230   :  { %v5281_v14 = vpop.eup %5280  ;;  %v1621_v25 = vadd.f32 %v1620_v62, %v1619_v22  ;;  %v1720_v1 = vrot.slane %v1719_v20, 1  ;;  %v1727_v50 = vrot.slane %v1726_v10, 1  ;;  %v6716_v48 = vadd.f32 %v1411_v24, %v6120_v63 }
 0x231   :  { %v5283_v40 = vpop.eup %5282  ;;  %v1490_v29 = vadd.f32 1.0, %v5281_v14  ;;  %v1629_v18 = vrot.slane %v1628_v61, 1  ;;  %v1733_v3 = vadd.f32 %v1732_v27, %v1731_v0  ;;  %v4986_v16 = vmul.f32 -1.442695, %v6713_v5 }
 0x232   :  { %v1489_v30 = vadd.f32 1.0, %v5283_v40  ;;  %v6719_v52 = vadd.f32 %v1615_v12, %v1614_v26  ;;  %v1721_v37 = vadd.f32 %v1720_v1, %v1719_v20  ;;  %v4985_v58 = vmul.f32 -1.442695, %v6716_v48 }
 0x233   :  { %5284 = vrcp.f32 %v1490_v29  ;;  %v1622_v56 = vrot.slane %v1621_v25, 1  ;;  %v1728_v51 = vadd.f32 %v1727_v50, %v1726_v10  ;;  %v6722_v41 = vadd.f32 %v1629_v18, %v1628_v61 }
 0x234   :  { %5286 = vpow2.f32 %v4986_v16  ;;  %v1734_v4 = vrot.slane %v1733_v3, 1  ;;  %v1738_v38 = vadd.f32 %v1737_v49, %v1736_v11  ;;  %v1779_v23 = vadd.f32 1e-20, %v1721_v37 }
 0x235   :  { %5288 = vpow2.f32 %v4985_v58  ;;  %v1780_v21 = vadd.f32 1e-20, %v1728_v51  ;;  %v1883_v15 = vsel %vm931_vm7, %v6601_v43, 0.0  ;;  %v6727_v57 = vadd.f32 %v1622_v56, %v1621_v25 }
 0x236   :  { %5290 = vrcp.f32 %v1489_v30  ;;  %v1735_v26 = vadd.f32 %v1734_v4, %v1733_v3  ;;  %v1739_v39 = vrot.slane %v1738_v38, 2  ;;  %v1884_v13 = vadd.f32 %v1883_v15, %v6533_v42 }
 0x237   :  { %5292 = vrcp.f32 %v1779_v23  ;;  %v1885_v33 = vsel %vm931_vm7, %v6594_v31, 0.0  ;;  %v1887_v32 = vsel %vm931_vm7, %v6678_v17, 0.0  ;;  %v1889_v45 = vsel %vm931_vm7, %v6670_v2, 0.0 }
 0x238   :  { %v1740_v11 = vadd.f32 %v1739_v39, %v1738_v38  ;;  %v1781_v36 = vadd.f32 1e-20, %v1735_v26  ;;  %5294 = vrcp.f32 %v1780_v21  ;;  %v1886_v54 = vadd.f32 %v1885_v33, %v1884_v13 }
 0x239   :  { %v1891_v22 = vsel %vm931_vm7, %v6716_v48, 0.0  ;;  %v1912_v42 = vmul.f32 %v6601_v43, %v6601_v43  ;;  %v1913_v59 = vmul.f32 %v6594_v31, %v6594_v31  ;;  %v1914_v12 = vmul.f32 %v6678_v17, %v6678_v17 }
 0x23a   :  { %v1741_v28 = vrot.slane %v1740_v11, 1  ;;  %5296 = vrcp.f32 %v1781_v36  ;;  %v1888_v9 = vadd.f32 %v1887_v32, %v1886_v54  ;;  %v1915_v6 = vmul.f32 %v6670_v2, %v6670_v2 }
 0x23b   :  { %v1916_v0 = vmul.f32 %v6716_v48, %v6716_v48  ;;  %v1917_v34 = vmul.f32 %v6713_v5, %v6713_v5  ;;  %v1937_v62 = vsel %vm931_vm7, %v1912_v42, 0.0  ;;  %v1893_v24 = vsel %vm931_vm7, %v6713_v5, 0.0 }
 0x23c   :  { %v1742_v20 = vadd.f32 %v1741_v28, %v1740_v11  ;;  %v1890_v10 = vadd.f32 %v1889_v45, %v1888_v9  ;;  %v1938_v61 = vadd.f32 %v1937_v62, %v6540_v35  ;;  %v1939_v49 = vsel %vm931_vm7, %v1913_v59, 0.0 }
 0x23d   :  { %v5285_v27 = vpop.eup %5284  ;;  %v1941_v14 = vsel %vm931_vm7, %v1914_v12, 0.0  ;;  %v1943_v25 = vsel %vm931_vm7, %v1915_v6, 0.0  ;;  %v1945_v1 = vsel %vm931_vm7, %v1916_v0, 0.0  ;;  %v1947_v58 = vsel %vm931_vm7, %v1917_v34, 0.0 }
 0x23e   :  { %v5287_v50 = vpop.eup %5286  ;;  %v1544_v40 = vmul.f32 %v5285_v27, %v6616_v55  ;;  %v1750_v29 = vsel %vm931_vm7, %v5285_v27, 0.0  ;;  %v1782_v18 = vadd.f32 1e-20, %v1742_v20  ;;  %v1892_v3 = vadd.f32 %v1891_v22, %v1890_v10 }
 0x23f   :  { %v5289_v16 = vpop.eup %5288  ;;  %v1492_v30 = vadd.f32 1.0, %v5287_v50  ;;  %v1751_v37 = vrot.slane %v1750_v29, 4  ;;  %v1940_v35 = vadd.f32 %v1939_v49, %v1938_v61  ;;  %v2139_v27 = vrot.slane %v6594_v31, 7 }
 0x240   :  { %v5291_v56 = vpop.eup %5290  ;;  %v1491_v51 = vadd.f32 1.0, %v5289_v16  ;;  %v1638_v4 = vsel %vm931_vm7, %v1544_v40, 0.0  ;;  %5298 = vrcp.f32 %v1782_v18  ;;  %v1894_v38 = vadd.f32 %v1893_v24, %v1892_v3 }
 0x241   :  { %v5293_v23 = vpop.eup %5292  ;;  %5300 = vrcp.f32 %v1492_v30  ;;  %v1543_v21 = vmul.f32 %v5291_v56, %v6616_v55  ;;  %v1639_v15 = vrot.slane %v1638_v4, 4  ;;  %v1743_v26 = vsel %vm931_vm7, %v5291_v56, 0.0 }
 0x242   :  { %v5295_v39 = vpop.eup %5294  ;;  %5302 = vrcp.f32 %v1491_v51  ;;  %v1744_v13 = vrot.slane %v1743_v26, 4  ;;  %v1752_v33 = vadd.f32 %v1751_v37, %v1750_v29  ;;  %v1811_v32 = vmul.f32 %v5293_v23, %v6705_v7 }
 0x243   :  { %v1631_v11 = vsel %vm931_vm7, %v1543_v21, 0.0  ;;  %v1640_v36 = vadd.f32 %v1639_v15, %v1638_v4  ;;  %v1812_v54 = vmul.f32 %v5295_v39, %v6719_v52  ;;  %v1895_v45 = vrot.slane %v1894_v38, 4 }
 0x244   :  { %v5297_v22 = vpop.eup %5296  ;;  %v1632_v42 = vrot.slane %v1631_v11, 4  ;;  %v1745_v59 = vadd.f32 %v1744_v13, %v1743_v26  ;;  %v1753_v28 = vrot.slane %v1752_v33, 2  ;;  %v1942_v9 = vadd.f32 %v1941_v14, %v1940_v35 }
 0x245   :  { %v1641_v12 = vrot.slane %v1640_v36, 2  ;;  %v1813_v6 = vmul.f32 %v5297_v22, %v6727_v57  ;;  %v1849_v0 = vsel %vm1835_vm8, %v1812_v54, %v1811_v32  ;;  %v1896_v34 = vadd.f32 %v1895_v45, %v1894_v38 }
 0x246   :  { %v1633_v62 = vadd.f32 %v1632_v42, %v1631_v11  ;;  %v1746_v20 = vrot.slane %v1745_v59, 2  ;;  %v1754_v7 = vadd.f32 %v1753_v28, %v1752_v33  ;;  %v1944_v10 = vadd.f32 %v1943_v25, %v1942_v9 }
 0x247   :  { %v1642_v24 = vadd.f32 %v1641_v12, %v1640_v36  ;;  %v1897_v61 = vrot.slane %v1896_v34, 2  ;;  %v2138_v52 = vsel %vm1837_vm9, %v6601_v43, %v6537_v47  ;;  %v1850_v29 = vsel %vm1837_vm9, %v1813_v6, %v1849_v0 }
 0x248   :  { %v1634_v49 = vrot.slane %v1633_v62, 2  ;;  %v1747_v14 = vadd.f32 %v1746_v20, %v1745_v59  ;;  %v1755_v50 = vrot.slane %v1754_v7, 1  ;;  %v1946_v40 = vadd.f32 %v1945_v1, %v1944_v10 }
 0x249   :  { %v1643_v57 = vrot.slane %v1642_v24, 1  ;;  %v1898_v18 = vadd.f32 %v1897_v61, %v1896_v34  ;;  %v2141_v3 = vrot.slane %v6678_v17, 6  ;;  %v2140_v38 = vsel %vm1839_vm10, %v2139_v27, %v2138_v52 }
 0x24a   :  { %v5299_v16 = vpop.eup %5298  ;;  %v1635_v25 = vadd.f32 %v1634_v49, %v1633_v62  ;;  %v1748_v30 = vrot.slane %v1747_v14, 1  ;;  %v1756_v37 = vadd.f32 %v1755_v50, %v1754_v7  ;;  %v1948_v35 = vadd.f32 %v1947_v58, %v1946_v40 }
 0x24b   :  { %v5301_v56 = vpop.eup %5300  ;;  %v6774_v51 = vadd.f32 %v1643_v57, %v1642_v24  ;;  %v1814_v47 = vmul.f32 %v5299_v16, %v6722_v41  ;;  %v1899_v4 = vrot.slane %v1898_v18, 1  ;;  %v2142_v36 = vsel %vm1841_vm11, %v2141_v3, %v2140_v38 }
 0x24c   :  { %v5303_v1 = vpop.eup %5302  ;;  %v1546_v23 = vmul.f32 %v5301_v56, %v6616_v55  ;;  %v1636_v21 = vrot.slane %v1635_v25, 1  ;;  %v1749_v15 = vadd.f32 %v1748_v30, %v1747_v14  ;;  %v1764_v26 = vsel %vm931_vm7, %v5301_v56, 0.0 }
 0x24d   :  { %v1545_v39 = vmul.f32 %v5303_v1, %v6616_v55  ;;  %v1757_v13 = vsel %vm931_vm7, %v5303_v1, 0.0  ;;  %v1765_v58 = vrot.slane %v1764_v26, 4  ;;  %v1784_v33 = vadd.f32 1e-20, %v1756_v37 }
 0x24e   :  { %v1652_v32 = vsel %vm931_vm7, %v1546_v23, 0.0  ;;  %v1758_v11 = vrot.slane %v1757_v13, 4  ;;  %v1783_v41 = vadd.f32 1e-20, %v1749_v15  ;;  %v1637_v42 = vadd.f32 %v1636_v21, %v1635_v25 }
 0x24f   :  { %v1645_v54 = vsel %vm931_vm7, %v1545_v39, 0.0  ;;  %v1653_v45 = vrot.slane %v1652_v32, 4  ;;  %v1766_v22 = vadd.f32 %v1765_v58, %v1764_v26  ;;  %5304 = vrcp.f32 %v1784_v33 }
 0x250   :  { %v1646_v59 = vrot.slane %v1645_v54, 4  ;;  %v1759_v28 = vadd.f32 %v1758_v11, %v1757_v13  ;;  %5306 = vrcp.f32 %v1783_v41  ;;  %v1900_v12 = vadd.f32 %v1899_v4, %v1898_v18 }
 0x251   :  { %v1654_v55 = vadd.f32 %v1653_v45, %v1652_v32  ;;  %v1767_v9 = vrot.slane %v1766_v22, 2  ;;  %v1949_v6 = vrot.slane %v1948_v35, 4  ;;  %v2143_v62 = vrot.slane %v6670_v2, 5 }
 0x252   :  { %v1647_v0 = vadd.f32 %v1646_v59, %v1645_v54  ;;  %v1760_v34 = vrot.slane %v1759_v28, 2  ;;  %v2145_v20 = vrot.slane %v6716_v48, 4  ;;  %v6787_v24 = vmul.f32 0.0078125, %v1900_v12 }
 0x253   :  { %v1655_v7 = vrot.slane %v1654_v55, 2  ;;  %v1768_v10 = vadd.f32 %v1767_v9, %v1766_v22  ;;  %v1950_v61 = vadd.f32 %v1949_v6, %v1948_v35  ;;  %v1851_v49 = vsel %vm1839_vm10, %v1814_v47, %v1850_v29 }
 0x254   :  { %v1648_v52 = vrot.slane %v1647_v0, 2  ;;  %v1761_v27 = vadd.f32 %v1760_v34, %v1759_v28  ;;  %v2144_v14 = vsel %vm1843_vm12, %v2143_v62, %v2142_v36  ;;  %v2147_v18 = vrot.slane %v6713_v5, 3 }
 0x255   :  { %v1656_v50 = vadd.f32 %v1655_v7, %v1654_v55  ;;  %v1769_v40 = vrot.slane %v1768_v10, 1  ;;  %v1951_v57 = vrot.slane %v1950_v61, 2  ;;  %v1956_v25 = vmul.f32 %v6787_v24, %v6787_v24 }
 0x256   :  { %v1649_v3 = vadd.f32 %v1648_v52, %v1647_v0  ;;  %v1762_v16 = vrot.slane %v1761_v27, 1  ;;  %v2146_v30 = vsel %vm1845_vm13, %v2145_v20, %v2144_v14  ;;  %v2103_v38 = vrot.slane %v6601_v43, 7 }
 0x257   :  { %v1657_v37 = vrot.slane %v1656_v50, 1  ;;  %v1770_v35 = vadd.f32 %v1769_v40, %v1768_v10  ;;  %v1952_v56 = vadd.f32 %v1951_v57, %v1950_v61  ;;  %v6796_v4 = vsel %vm8702_vm14, %v2147_v18, %v2146_v30 }
 0x258   :  { %v1650_v29 = vrot.slane %v1649_v3, 1  ;;  %v1763_v47 = vadd.f32 %v1762_v16, %v1761_v27  ;;  %v2105_v1 = vrot.slane %v6594_v31, 6  ;;  %v2107_v39 = vrot.slane %v6678_v17, 5 }
 0x259   :  { %v5305_v23 = vpop.eup %5304  ;;  %v1658_v21 = vadd.f32 %v1657_v37, %v1656_v50  ;;  %v1786_v15 = vadd.f32 1e-20, %v1770_v35  ;;  %v1953_v26 = vrot.slane %v1952_v56, 1  ;;  %v2104_v11 = vsel %vm1837_vm9, %v2103_v38, %v6545_v46 }
 0x25a   :  { %v5307_v13 = vpop.eup %5306  ;;  %v1651_v58 = vadd.f32 %v1650_v29, %v1649_v3  ;;  %v1785_v33 = vadd.f32 1e-20, %v1763_v47  ;;  %v1816_v32 = vmul.f32 %v5305_v23, %v6774_v51  ;;  %v2106_v54 = vsel %vm1839_vm10, %v2105_v1, %v2104_v11 }
 0x25b   :  { %5308 = vrcp.f32 %v1786_v15  ;;  %v1815_v41 = vmul.f32 %v5307_v13, %v1637_v42  ;;  %v1954_v36 = vadd.f32 %v1953_v26, %v1952_v56  ;;  %v2108_v45 = vsel %vm1841_vm11, %v2107_v39, %v2106_v54 }
 0x25c   :  { %5310 = vrcp.f32 %v1785_v33  ;;  %v2109_v22 = vrot.slane %v6670_v2, 4  ;;  %v2111_v59 = vrot.slane %v6716_v48, 3  ;;  %v2113_v51 = vrot.slane %v6713_v5, 2 }
 0x25d   :  { %v1852_v28 = vsel %vm1841_vm11, %v1815_v41, %v1851_v49  ;;  %v1955_v55 = vmul.f32 0.0078125, %v1954_v36  ;;  %v2172_v9 = vrot.slane %v6601_v43, 1  ;;  %v2175_v12 = vrot.slane %v6678_v17, 7 }
 0x25e   :  { %v1853_v46 = vsel %vm1843_vm12, %v1816_v32, %v1852_v28  ;;  %v2110_v42 = vsel %vm1843_vm12, %v2109_v22, %v2108_v45  ;;  %v2177_v6 = vrot.slane %v6670_v2, 6  ;;  %v2179_v20 = vrot.slane %v6716_v48, 5 }
 0x25f   :  { %v1957_v0 = vsub.f32 %v1955_v55, %v1956_v25  ;;  %v2112_v34 = vsel %vm1845_vm13, %v2111_v59, %v2110_v42  ;;  %v2173_v62 = vsel %vm1837_vm9, %v2172_v9, %v6548_v19  ;;  %v2181_v61 = vrot.slane %v6713_v5, 4  ;;  %v1958_v9 = vld [vmem:[%s8691_s6] sm:$0x1] }
 0x260   :  { %v6820_v7 = vsel %vm8702_vm14, %v2113_v51, %v2112_v34  ;;  %v2174_v10 = vsel %vm1839_vm10, %v6594_v31, %v2173_v62  ;;  %v2270_v52 = vrot.slane %v6601_v43, 4  ;;  %v2272_v14 = vrot.slane %v6594_v31, 3 }
 0x261   :  { %v1959_v27 = vadd.f32 1e-05, %v1957_v0  ;;  %v2176_v49 = vsel %vm1841_vm11, %v2175_v12, %v2174_v10  ;;  %v2274_v50 = vrot.slane %v6678_v17, 2  ;;  %v2276_v57 = vrot.slane %v6670_v2, 1  ;;  %v8762_v0 = vld [vmem:[#allocation14_spill] sm:$0xff] }
 0x262   :  { %v2178_v19 = vsel %vm1843_vm12, %v2177_v6, %v2176_v49  ;;  %v2271_v40 = vsel %vm1837_vm9, %v2270_v52, %v6551_v53  ;;  %v2279_v18 = vrot.slane %v6713_v5, 7  ;;  %v2236_v25 = vrot.slane %v6601_v43, 3 }
 0x263   :  { %5312 = vrsqrt.f32 %v1959_v27  ;;  %v2180_v3 = vsel %vm1845_vm13, %v2179_v20, %v2178_v19  ;;  %v2273_v16 = vsel %vm1839_vm10, %v2272_v14, %v2271_v40  ;;  %v2238_v35 = vrot.slane %v6594_v31, 2 }
 0x264   :  { %v6838_v30 = vsel %vm8702_vm14, %v2181_v61, %v2180_v3  ;;  %v2275_v37 = vsel %vm1841_vm11, %v2274_v50, %v2273_v16  ;;  %v2240_v53 = vrot.slane %v6678_v17, 1  ;;  %v2237_v47 = vsel %vm1837_vm9, %v2236_v25, %v6557_v60 }
 0x265   :  { %v5309_v56 = vpop.eup %5308  ;;  %v2277_v29 = vsel %vm1843_vm12, %v2276_v57, %v2275_v37  ;;  %v2243_v38 = vrot.slane %v6716_v48, 7  ;;  %v2245_v1 = vrot.slane %v6713_v5, 6  ;;  %v2239_v39 = vsel %vm1839_vm10, %v2238_v35, %v2237_v47  ;;  %v1962_v37 = vld [vmem:[%s8692_s7] sm:$0x1] }
 0x266   :  { %v5311_v23 = vpop.eup %5310  ;;  %v1818_v15 = vmul.f32 %v5309_v56, %v1658_v21  ;;  %v2278_v26 = vsel %vm1845_vm13, %v6716_v48, %v2277_v29  ;;  %v2304_v13 = vrot.slane %v6601_v43, 5  ;;  %v2241_v11 = vsel %vm1841_vm11, %v2240_v53, %v2239_v39 }
 0x267   :  { %v1817_v33 = vmul.f32 %v5311_v23, %v1651_v58  ;;  %v6853_v32 = vsel %vm8702_vm14, %v2279_v18, %v2278_v26  ;;  %v2306_v60 = vrot.slane %v6594_v31, 4  ;;  %v2242_v41 = vsel %vm1843_vm12, %v6670_v2, %v2241_v11  ;;  %v8763_v18 = vld [vmem:[#allocation15_spill] sm:$0xff]  ;;  %v8766_v23 = vld [vmem:[#allocation5_spill] sm:$0xff] }
 0x268   :  { %v2305_v21 = vsel %vm1837_vm9, %v2304_v13, %v6561_v44  ;;  %v2308_v36 = vrot.slane %v6678_v17, 3  ;;  %v2310_v54 = vrot.slane %v6670_v2, 2  ;;  %v2244_v58 = vsel %vm1845_vm13, %v2243_v38, %v2242_v41  ;;  %v8764_v38 = vld [vmem:[#allocation6_spill] sm:$0xff] }
 0x269   :  { %v1854_v45 = vsel %vm1845_vm13, %v1817_v33, %v1853_v46  ;;  %v2307_v22 = vsel %vm1839_vm10, %v2306_v60, %v2305_v21  ;;  %v2312_v59 = vrot.slane %v6716_v48, 1  ;;  %v6869_v55 = vsel %vm8702_vm14, %v2245_v1, %v2244_v58 }
 0x26a   :  { %v1855_v28 = vsel %vm8702_vm14, %v1818_v15, %v1854_v45  ;;  %v2309_v51 = vsel %vm1841_vm11, %v2308_v36, %v2307_v22  ;;  %v2073_v44 = vrot.slane %v6601_v43, 6  ;;  %v2075_v42 = vrot.slane %v6594_v31, 5 }
 0x26b   :  { %1858 = vrot.lane.b32.xlu1 %v1855_v28, %s5426_s23  ;;  %v2311_v46 = vsel %vm1843_vm12, %v2310_v54, %v2309_v51  ;;  %v2077_v12 = vrot.slane %v6678_v17, 4  ;;  %v2081_v62 = vrot.slane %v6716_v48, 2  ;;  %v2079_v52 = vrot.slane %v6670_v2, 3 }
 0x26c   :  { %v2313_v6 = vsel %vm1845_vm13, %v2312_v59, %v2311_v46  ;;  %v2074_v34 = vsel %vm1837_vm9, %v2073_v44, %v8762_v0  ;;  %v2206_v27 = vrot.slane %v6601_v43, 2  ;;  %v2208_v50 = vrot.slane %v6594_v31, 1 }
 0x26d   :  { %v5313_v20 = vpop.eup %5312  ;;  %v6886_v10 = vsel %vm8702_vm14, %v6713_v5, %v2313_v6  ;;  %v2076_v61 = vsel %vm1839_vm10, %v2075_v42, %v2074_v34  ;;  %v2211_v19 = vrot.slane %v6670_v2, 7  ;;  %v2083_v57 = vrot.slane %v6713_v5, 1 }
 0x26e   :  { %v6891_v49 = vmul.f32 %v5313_v20, %v1958_v9  ;;  %v2078_v14 = vsel %vm1841_vm11, %v2077_v12, %v2076_v61  ;;  %v2207_v3 = vsel %vm1837_vm9, %v2206_v27, %v8763_v18  ;;  %v2213_v16 = vrot.slane %v6716_v48, 6 }
 0x26f   :  { %v2080_v40 = vsel %vm1843_vm12, %v2079_v52, %v2078_v14  ;;  %v2209_v2 = vsel %vm1839_vm10, %v2208_v50, %v2207_v3 }
 0x270   :  { %v6903_v43 = vrot.slane %v6891_v49, %v5504_v8  ;;  %v1963_v25 = vmul.f32 %v6891_v49, %v6787_v24  ;;  %v2082_v31 = vsel %vm1845_vm13, %v2081_v62, %v2080_v40  ;;  %v2210_v48 = vsel %vm1841_vm11, %v6678_v17, %v2209_v2 }
 0x271   :  { %v6913_v35 = vsel %vm8702_vm14, %v2083_v57, %v2082_v31  ;;  %v2212_v53 = vsel %vm1843_vm12, %v2211_v19, %v2210_v48  ;;  %v2215_v24 = vrot.slane %v6713_v5, 5  ;;  %v8765_v5 = vld [vmem:[#allocation7_spill] sm:$0xff] }
 0x272   :  { %2340 = vrot.lane.b32.xlu1 %v6903_v43, %s5426_s23  ;;  %v2214_v56 = vsel %vm1845_vm13, %v2213_v16, %v2212_v53  ;;  %v6922_v29 = vsub.f32 %v1962_v37, %v1963_v25  ;;  %v8767_v16 = vld [vmem:[#allocation3_spill] sm:$0xff] }
 0x273   :  { %v6925_v47 = vsel %vm8702_vm14, %v2215_v24, %v2214_v56  ;;  %v8769_v37 = vld [vmem:[#allocation11_spill] sm:$0xff]  ;;  %v8770_v24 = vld [vmem:[#allocation12_spill] sm:$0xff]  ;;  %vm2326_vm14 = vcmask 785408  }
 0x274   :  { %v2356_v17 = vrot.slane %v6922_v29, %v5504_v8 }
 0x276   :  { %2115 = vrot.lane.b32.xlu1 %v8764_v38, %s5426_s23 }
 0x27a   :  { %2357 = vrot.lane.b32.xlu1 %v2356_v17, %s5426_s23 }
 0x27e   :  { %2360 = vrot.lane.b32.xlu1 %v2356_v17, %s5424_s21 }
 0x282   :  { %2363 = vrot.lane.b32.xlu1 %v2356_v17, %s5425_s22  ;;  %v8771_v17 = vld [vmem:[#allocation13_spill] sm:$0xff] }
 0x286   :  { %2247 = vrot.lane.b32.xlu1 %v8765_v5, %s5426_s23 }
 0x299   :  { %v1857_v1 = vpop.permute.xlu0 %1856 }
 0x29a   :  { %v6937_v15 = vadd.f32 %v1857_v1, %v8766_v23 }
 0x29c   :  { %v1976_v13 = vmul.f32 %v6937_v15, %v6937_v15  ;;  %v2415_v33 = vrot.slane %v6937_v15, 4  ;;  %v1966_v60 = vsel %vm8701_vm15, %v6937_v15, 0.0  ;;  %v2403_v59 = vrot.slane %v6937_v15, 2 }
 0x29d   :  { %v2409_v12 = vrot.slane %v6937_v15, 3  ;;  %v2431_v5 = vrot.slane %v6937_v15, 7 }
 0x29e   :  { %v1978_v58 = vsel %vm8701_vm15, %v1976_v13, 0.0  ;;  %v1990_v13 = vld [vmem:[%s8693_s8] sm:$0x1] }
 0x2dd   :  { %v1859_v26 = vpop.permute.xlu1 %1858 }
 0x2de   :  { %v6940_v39 = vadd.f32 %v1859_v26, %v6120_v63 }
 0x2e0   :  { %v2416_v11 = vrot.slane %v6940_v39, 3  ;;  %v1967_v41 = vsel %vm8701_vm15, %v6940_v39, 0.0  ;;  %v1977_v36 = vmul.f32 %v6940_v39, %v6940_v39  ;;  %v2404_v54 = vrot.slane %v6940_v39, 1 }
 0x2e1   :  { %v1968_v21 = vadd.f32 %v1967_v41, %v1966_v60  ;;  %v2410_v9 = vrot.slane %v6940_v39, 2  ;;  %v2395_v2 = vrot.slane %v6940_v39, 7  ;;  %v2426_v53 = vrot.slane %v6940_v39, 5 }
 0x2e2   :  { %v2417_v63 = vsel %vm1835_vm8, %v2416_v11, %v2415_v33  ;;  %v1979_v22 = vsel %vm8701_vm15, %v1977_v36, 0.0  ;;  %v2405_v44 = vsel %vm1835_vm8, %v2404_v54, %v2403_v59  ;;  %v2432_v38 = vrot.slane %v6940_v39, 6 }
 0x2e3   :  { %2418 = vrot.lane.b32.xlu1 %v2417_v63, %s5425_s22  ;;  %v1969_v45 = vrot.slane %v1968_v21, 4  ;;  %v1980_v28 = vadd.f32 %v1979_v22, %v1978_v58  ;;  %v2411_v34 = vsel %vm1835_vm8, %v2410_v9, %v2409_v12  ;;  %v2396_v48 = vsel %vm1835_vm8, %v2395_v2, %v6937_v15 }
 0x2e4   :  { %v2433_v1 = vsel %vm1835_vm8, %v2432_v38, %v2431_v5  ;;  %v2341_v23 = vpop.permute.xlu1 %2340  ;;  %vm2323_vm15 = vcmask 523264  }
 0x2e5   :  { %v1970_v51 = vadd.f32 %v1969_v45, %v1968_v21  ;;  %v1981_v46 = vrot.slane %v1980_v28, 4  ;;  %v2349_v21 = vsel %vm931_vm7, %v6891_v49, %v2341_v23 }
 0x2e7   :  { %2406 = vrot.lane.b32.xlu1 %v2405_v44, %s5426_s23  ;;  %v1971_v42 = vrot.slane %v1970_v51, 2  ;;  %v1982_v6 = vadd.f32 %v1981_v46, %v1980_v28 }
 0x2e8   :  { %v2116_v26 = vpop.permute.xlu1 %2115 }
 0x2e9   :  { %v1972_v0 = vadd.f32 %v1971_v42, %v1970_v51  ;;  %v1983_v62 = vrot.slane %v1982_v6, 2 }
 0x2eb   :  { %2412 = vrot.lane.b32.xlu1 %v2411_v34, %s5424_s21  ;;  %v1973_v20 = vrot.slane %v1972_v0, 1  ;;  %v1984_v61 = vadd.f32 %v1983_v62, %v1982_v6  ;;  %v5417_v6 = vld [vmem:[%s8685_s1] sm:$0xff] }
 0x2ec   :  { %v2358_v33 = vpop.permute.xlu1 %2357 }
 0x2ed   :  { %v1974_v52 = vadd.f32 %v1973_v20, %v1972_v0  ;;  %v1985_v27 = vrot.slane %v1984_v61, 1  ;;  %v2366_v45 = vsel %vm931_vm7, %v6922_v29, %v2358_v33  ;;  %v4988_v33 = vld [vmem:[%s8687_s2 + $0x28] sm:$0xff] }
 0x2ef   :  { %2151 = vrot.lane.b32.xlu1 %v6796_v4, %s5424_s21  ;;  %v6966_v14 = vmul.f32 0.0625, %v1974_v52  ;;  %v1986_v50 = vadd.f32 %v1985_v27, %v1984_v61  ;;  %v8768_v4 = vld [vmem:[#allocation10_spill] sm:$0xff] }
 0x2f1   :  { %v1988_v19 = vmul.f32 %v6966_v14, %v6966_v14  ;;  %v1987_v40 = vmul.f32 0.0625, %v1986_v50 }
 0x2f3   :  { %v1989_v57 = vsub.f32 %v1987_v40, %v1988_v19  ;;  %v8774_v40 = vld [vmem:[#allocation9_spill] sm:$0xff] }
 0x2f5   :  { %v1991_v18 = vadd.f32 1e-05, %v1989_v57 }
 0x2f7   :  { %5314 = vrsqrt.f32 %v1991_v18 }
 0x301   :  { %v5315_v3 = vpop.eup %5314 }
 0x302   :  { %v2000_v25 = vrot.slane %v5315_v3, %v8767_v16 }
 0x304   :  { %v2007_v31 = vrot.slane %v2000_v25, %v8767_v16 }
 0x306   :  { %2008 = vrot.lane.b32.xlu0 %v2007_v31, %s5425_s22 }
 0x30a   :  { %2343 = vrot.lane.b32.xlu0 %v6903_v43, %s5424_s21 }
 0x30e   :  { %2346 = vrot.lane.b32.xlu0 %v6903_v43, %s5425_s22  ;;  %v2425_v43 = vrot.slane %v6937_v15, 6 }
 0x310   :  { %v2427_v56 = vsel %vm1835_vm8, %v2426_v53, %v2425_v43  ;;  %v5418_v53 = vld [vmem:[%s8685_s1 + $0x8] sm:$0xff] }
 0x312   :  { %2149 = vrot.lane.b32.xlu0 %v8768_v4, %s5424_s21 }
 0x316   :  { %2183 = vrot.lane.b32.xlu0 %v8769_v37, %s5425_s22 }
 0x31a   :  { %2397 = vrot.lane.b32.xlu0 %v2396_v48, %s5425_s22 }
 0x31e   :  { %2281 = vrot.lane.b32.xlu0 %v8770_v24, %s5424_s21 }
 0x322   :  { %2428 = vrot.lane.b32.xlu0 %v2427_v56, %s5426_s23 }
 0x326   :  { %2315 = vrot.lane.b32.xlu0 %v8771_v17, %s5425_s22 }
 0x32a   :  { %2434 = vrot.lane.b32.xlu0 %v2433_v1, %s5424_s21 }
 0x32e   :  { %2117 = vrot.lane.b32.xlu0 %v6820_v7, %s5426_s23 }
 0x332   :  { %2185 = vrot.lane.b32.xlu0 %v6838_v30, %s5425_s22  ;;  %v2361_v30 = vpop.permute.xlu1 %2360 }
 0x333   :  { %v2367_v22 = vsel %vm2323_vm15, %v2366_v45, %v2361_v30  ;;  %v4989_v30 = vld [vmem:[%s8687_s2 + $0x30] sm:$0xff] }
 0x336   :  { %2283 = vrot.lane.b32.xlu0 %v6853_v32, %s5424_s21  ;;  %v2364_v36 = vpop.permute.xlu1 %2363 }
 0x337   :  { %v2368_v49 = vsel %vm2326_vm14, %v2367_v22, %v2364_v36 }
 0x338   :  { %v7034_v9 = vrot.slane %v2368_v49, %v5504_v8 }
 0x33a   :  { %v2248_v20 = vpop.permute.xlu1 %2247 }
 0x33b   :  { %v2329_v57 = vsel %vm931_vm7, %v8774_v40, %v2248_v20 }
 0x378   :  { %v2009_v11 = vpop.permute.xlu0 %2008 }
 0x379   :  { %v7006_v60 = vmul.f32 %v2009_v11, %v1990_v13  ;;  %v4987_v13 = vld [vmem:[%s8687_s2 + $0x20] sm:$0xff] }
 0x37b   :  { %v7010_v41 = vrot.slane %v7006_v60, %v5504_v8 }
 0x37c   :  { %v2344_v7 = vpop.permute.xlu0 %2343 }
 0x37d   :  { %2018 = vrot.lane.b32.xlu1 %v7010_v41, %s5426_s23  ;;  %v2350_v63 = vsel %vm2323_vm15, %v2349_v21, %v2344_v7  ;;  %v5191_v7 = vpack.c.bf16 %v4988_v33, %v4987_v13 }
 0x37f   :  { %5192 = vmatprep.subr.bf16.mxu1 %v5191_v7 }
 0x380   :  { %v2347_v32 = vpop.permute.xlu0 %2346  ;;  %5194 = vmatpush3.bf16.msra.mxu1 %v5191_v7 }
 0x381   :  { %2249 = vrot.lane.b32.xlu1 %v6869_v55, %s5426_s23  ;;  %v2351_v58 = vsel %vm2326_vm14, %v2350_v63, %v2347_v32  ;;  %v8772_v55 = vld [vmem:[#allocation8_spill] sm:$0xff]  ;;  %v4990_v32 = vld [vmem:[%s8687_s2 + $0x38] sm:$0xff] }
 0x382   :  { %v2321_v59 = vsel %vm931_vm7, %v8772_v55, %v2116_v26  ;;  %v7029_v28 = vrot.slane %v2351_v58, %v5504_v8  ;;  %v5195_v21 = vpack.c.bf16 %v4990_v32, %v4989_v30 }
 0x384   :  { %v2150_v54 = vpop.permute.xlu0 %2149  ;;  %5196 = vmatprep.subr.bf16.mxu1 %v5195_v21 }
 0x385   :  { %2317 = vrot.lane.b32.xlu1 %v6886_v10, %s5425_s22  ;;  %v2324_v51 = vsel %vm2323_vm15, %v2321_v59, %v2150_v54  ;;  %5198 = vmatpush3.bf16.msra.mxu1 %v5195_v21 }
 0x388   :  { %v2184_v44 = vpop.permute.xlu0 %2183 }
 0x389   :  { %v2327_v29 = vsel %vm2326_vm14, %v2324_v51, %v2184_v44 }
 0x38a   :  { %v2373_v10 = vmul.f32 %v7029_v28, %v2327_v29  ;;  %v7151_v29 = vpop.permute.xlu1 %2418 }
 0x38c   :  { %v2381_v46 = vadd.f32 %v7034_v9, %v2373_v10  ;;  %v7038_v42 = vpop.permute.xlu0 %2397 }
 0x38e   :  { %v2385_v12 = vmax.f32 %v2381_v46, 0.0  ;;  %v7162_v46 = vpop.permute.xlu1 %2406 }
 0x390   :  { %v7043_v0 = vadd.f32 %v5417_v6, %v2385_v12  ;;  %v2282_v34 = vpop.permute.xlu0 %2281 }
 0x391   :  { %v2331_v18 = vsel %vm2323_vm15, %v2329_v57, %v2282_v34 }
 0x392   :  { %8773 = vst [vmem:[#allocation14_spill] sm:$0xff] %v7043_v0  ;;  %v2615_v62 = vrot.slane %v7043_v0, %v8767_v16  ;;  %v2608_v36 = vcombine.high %v7043_v0, %v7043_v0 }
 0x394   :  { %v2623_v61 = vcombine.high %v2615_v62, %v2615_v62  ;;  %v7047_v52 = vpop.permute.xlu0 %2428  ;;  %v7050_v27 = vrot.slane %v2615_v62, %v8767_v16  ;;  %v2622_v63 = vrot.slane %v2608_v36, %v8767_v16  ;;  %v7170_v62 = vpop.permute.xlu1 %2412 }
 0x396   :  { %v2825_v50 = vrot.slane %v7050_v27, %v5504_v8  ;;  %v7055_v19 = vrot.slane %v2623_v61, %v8767_v16  ;;  %v7071_v48 = vcombine.high %v7050_v27, %v7050_v27  ;;  %v7127_v54 = vrot.slane %v2622_v63, %v8767_v16 }
 0x397   :  { %v2624_v45 = vcombine.high %v2622_v63, %v2622_v63 }
 0x398   :  { %2886 = vrot.lane.b32.xlu0 %v2825_v50, %s5425_s22  ;;  %v2316_v3 = vpop.permute.xlu0 %2315  ;;  %v2829_v25 = vrot.slane %v7055_v19, %v5504_v8  ;;  %v2833_v43 = vrot.slane %v7071_v48, %v5504_v8  ;;  %v7084_v56 = vcombine.high %v7055_v19, %v7055_v19  ;;  %v2841_v58 = vrot.slane %v7127_v54, %v5504_v8  ;;  %v2152_v40 = vpop.permute.xlu1 %2151 }
 0x399   :  { %v2333_v31 = vsel %vm2326_vm14, %v2331_v18, %v2316_v3  ;;  %v7135_v55 = vrot.slane %v2624_v45, %v8767_v16  ;;  %v7185_v18 = vcombine.high %v7127_v54, %v7127_v54 }
 0x39a   :  { %v2374_v4 = vmul.f32 %v7029_v28, %v2333_v31  ;;  %2888 = vrot.lane.b32.xlu1 %v2829_v25, %s5425_s22  ;;  %v2837_v1 = vrot.slane %v7084_v56, %v5504_v8 }
 0x39b   :  { %v2845_v49 = vrot.slane %v7135_v55, %v5504_v8  ;;  %v7247_v63 = vcombine.high %v7135_v55, %v7135_v55 }
 0x39c   :  { %v2382_v2 = vadd.f32 %v7034_v9, %v2374_v4  ;;  %2934 = vrot.lane.b32.xlu0 %v2825_v50, %s5424_s21  ;;  %v7156_v10 = vpop.permute.xlu0 %2434 }
 0x39e   :  { %v2386_v37 = vmax.f32 %v2382_v2, 0.0  ;;  %2936 = vrot.lane.b32.xlu1 %v2829_v25, %s5424_s21 }
 0x3a0   :  { %v7076_v24 = vadd.f32 %v5418_v53, %v2386_v37  ;;  %2982 = vrot.lane.b32.xlu0 %v2825_v50, %s5426_s23  ;;  %v2118_v6 = vpop.permute.xlu0 %2117  ;;  %v5419_v37 = vld [vmem:[%s8685_s1 + $0x10] sm:$0xff] }
 0x3a1   :  { %v2322_v61 = vsel %vm931_vm7, %v6913_v35, %v2118_v6 }
 0x3a2   :  { %8775 = vst [vmem:[#allocation15_spill] sm:$0xff] %v7076_v24  ;;  %2984 = vrot.lane.b32.xlu1 %v2829_v25, %s5426_s23  ;;  %v2731_v38 = vrot.slane %v7076_v24, %v8767_v16  ;;  %v2724_v12 = vcombine.high %v7076_v24, %v7076_v24  ;;  %v2849_v25 = vrot.slane %v7185_v18, %v5504_v8 }
 0x3a4   :  { %2890 = vrot.lane.b32.xlu0 %v2833_v43, %s5425_s22  ;;  %v2747_v17 = vrot.slane %v2731_v38, %v8767_v16  ;;  %v2739_v5 = vcombine.high %v2731_v38, %v2731_v38  ;;  %v2738_v34 = vrot.slane %v2724_v12, %v8767_v16  ;;  %v2186_v50 = vpop.permute.xlu0 %2185 }
 0x3a6   :  { %v7093_v23 = vrot.slane %v2747_v17, %v5504_v8  ;;  %v2761_v26 = vrot.slane %v2739_v5, %v8767_v16  ;;  %v2769_v22 = vcombine.high %v2747_v17, %v2747_v17  ;;  %v2754_v20 = vrot.slane %v2738_v34, %v8767_v16 }
 0x3a7   :  { %v2740_v2 = vcombine.high %v2738_v34, %v2738_v34 }
 0x3a8   :  { %2892 = vrot.lane.b32.xlu0 %v2837_v1, %s5425_s22  ;;  %3110 = vrot.lane.b32.xlu1 %v7093_v23, %s5425_s22  ;;  %v7106_v11 = vrot.slane %v2761_v26, %v5504_v8  ;;  %v7141_v59 = vrot.slane %v2769_v22, %v5504_v8  ;;  %v2771_v51 = vcombine.high %v2761_v26, %v2761_v26  ;;  %v2284_v45 = vpop.permute.xlu0 %2283 }
 0x3a9   :  { %v7181_v57 = vrot.slane %v2754_v20, %v5504_v8  ;;  %v2770_v5 = vcombine.high %v2754_v20, %v2754_v20  ;;  %v2853_v22 = vrot.slane %v7247_v63, %v5504_v8 }
 0x3aa   :  { %v7149_v44 = vrot.slane %v2771_v51, %v5504_v8 }
 0x3ac   :  { %2938 = vrot.lane.b32.xlu1 %v2833_v43, %s5424_s21  ;;  %3112 = vrot.lane.b32.xlu0 %v7106_v11, %s5425_s22 }
 0x3b0   :  { %3158 = vrot.lane.b32.xlu1 %v7093_v23, %s5424_s21  ;;  %2940 = vrot.lane.b32.xlu0 %v2837_v1, %s5424_s21 }
 0x3b4   :  { %2986 = vrot.lane.b32.xlu1 %v2833_v43, %s5426_s23  ;;  %3160 = vrot.lane.b32.xlu0 %v7106_v11, %s5424_s21  ;;  %v2768_v43 = vrot.slane %v2740_v2, %v8767_v16 }
 0x3b6   :  { %v7209_v17 = vrot.slane %v2768_v43, %v5504_v8 }
 0x3b8   :  { %3206 = vrot.lane.b32.xlu1 %v7093_v23, %s5426_s23  ;;  %2988 = vrot.lane.b32.xlu0 %v2837_v1, %s5426_s23  ;;  %v7214_v1 = vrot.slane %v2770_v5, %v5504_v8 }
 0x3bc   :  { %3208 = vrot.lane.b32.xlu1 %v7106_v11, %s5426_s23  ;;  %2894 = vrot.lane.b32.xlu0 %v2841_v58, %s5425_s22 }
 0x3c0   :  { %3114 = vrot.lane.b32.xlu1 %v7141_v59, %s5425_s22  ;;  %2896 = vrot.lane.b32.xlu0 %v2845_v49, %s5425_s22 }
 0x3c4   :  { %2942 = vrot.lane.b32.xlu1 %v2841_v58, %s5424_s21  ;;  %3116 = vrot.lane.b32.xlu0 %v7149_v44, %s5425_s22 }
 0x3c8   :  { %3162 = vrot.lane.b32.xlu1 %v7141_v59, %s5424_s21  ;;  %2443 = vrot.lane.b32.xlu0 %v7010_v41, %s5424_s21 }
 0x3cc   :  { %2990 = vrot.lane.b32.xlu1 %v2841_v58, %s5426_s23  ;;  %2446 = vrot.lane.b32.xlu0 %v7010_v41, %s5425_s22  ;;  %v2325_v41 = vsel %vm2323_vm15, %v2322_v61, %v2152_v40 }
 0x3cd   :  { %v2328_v3 = vsel %vm2326_vm14, %v2325_v41, %v2186_v50 }
 0x3ce   :  { %v2375_v35 = vmul.f32 %v7029_v28, %v2328_v3 }
 0x3d0   :  { %3210 = vrot.lane.b32.xlu1 %v7141_v59, %s5426_s23  ;;  %v2383_v31 = vadd.f32 %v7034_v9, %v2375_v35 }
 0x3d2   :  { %v2387_v4 = vmax.f32 %v2383_v31, 0.0 }
 0x3d4   :  { %3212 = vrot.lane.b32.xlu1 %v7149_v44, %s5426_s23  ;;  %v7201_v53 = vadd.f32 %v5419_v37, %v2387_v4 }
 0x3d6   :  { %8776 = vst [vmem:[#allocation6_spill] sm:$0xff] %v7201_v53  ;;  %v2664_v38 = vrot.slane %v7201_v53, %v8767_v16 }
 0x3d8   :  { %3118 = vrot.lane.b32.xlu1 %v7181_v57, %s5425_s22  ;;  %v7217_v26 = vrot.slane %v2664_v38, %v8767_v16  ;;  %v2672_v50 = vcombine.high %v2664_v38, %v2664_v38 }
 0x3da   :  { %v2857_v30 = vrot.slane %v7217_v26, %v5504_v8 }
 0x3dc   :  { %2946 = vrot.lane.b32.xlu1 %v2849_v25, %s5424_s21 }
 0x3e0   :  { %3166 = vrot.lane.b32.xlu1 %v7181_v57, %s5424_s21 }
 0x3e4   :  { %2994 = vrot.lane.b32.xlu1 %v2849_v25, %s5426_s23 }
 0x3e8   :  { %3214 = vrot.lane.b32.xlu1 %v7181_v57, %s5426_s23 }
 0x3ec   :  { %3216 = vrot.lane.b32.xlu1 %v7209_v17, %s5426_s23 }
 0x3ef   :  { %v7219_v13 = vpop.permute.xlu1 %2018 }
 0x3f0   :  { %v2021_v33 = vmul.f32 %v7219_v13, %v6966_v14  ;;  %3122 = vrot.lane.b32.xlu1 %v7214_v1, %s5425_s22  ;;  %v2772_v14 = vcombine.high %v2768_v43, %v2768_v43 }
 0x3f2   :  { %v2029_v7 = vrot.slane %v2021_v33, %v8767_v16  ;;  %v7241_v36 = vrot.slane %v2772_v14, %v5504_v8 }
 0x3f3   :  { %v2250_v21 = vpop.permute.xlu1 %2249 }
 0x3f4   :  { %2950 = vrot.lane.b32.xlu1 %v2857_v30, %s5424_s21  ;;  %v2036_v32 = vrot.slane %v2029_v7, %v8767_v16  ;;  %v2330_v40 = vsel %vm931_vm7, %v6925_v47, %v2250_v21 }
 0x3f5   :  { %v2332_v35 = vsel %vm2323_vm15, %v2330_v40, %v2284_v45 }
 0x3f6   :  { %2037 = vrot.lane.b32.xlu0 %v2036_v32, %s5425_s22 }
 0x3f7   :  { %v2318_v58 = vpop.permute.xlu1 %2317 }
 0x3f8   :  { %3170 = vrot.lane.b32.xlu1 %v7214_v1, %s5424_s21  ;;  %v2334_v31 = vsel %vm2326_vm14, %v2332_v35, %v2318_v58 }
 0x3f9   :  { %v2376_v37 = vmul.f32 %v7029_v28, %v2334_v31 }
 0x3fa   :  { %2944 = vrot.lane.b32.xlu0 %v2845_v49, %s5424_s21 }
 0x3fb   :  { %v2384_v5 = vadd.f32 %v7034_v9, %v2376_v37 }
 0x3fc   :  { %2998 = vrot.lane.b32.xlu1 %v2857_v30, %s5426_s23 }
 0x3fd   :  { %v2388_v14 = vmax.f32 %v2384_v5, 0.0 }
 0x3fe   :  { %3164 = vrot.lane.b32.xlu0 %v7149_v44, %s5424_s21 }
 0x400   :  { %3218 = vrot.lane.b32.xlu1 %v7214_v1, %s5426_s23 }
 0x402   :  { %2992 = vrot.lane.b32.xlu0 %v2845_v49, %s5426_s23 }
 0x404   :  { %3220 = vrot.lane.b32.xlu1 %v7241_v36, %s5426_s23 }
 0x406   :  { %2898 = vrot.lane.b32.xlu0 %v2849_v25, %s5425_s22  ;;  %v7265_v25 = vrot.slane %v2672_v50, %v8767_v16 }
 0x408   :  { %v2861_v47 = vrot.slane %v7265_v25, %v5504_v8  ;;  %v7321_v31 = vcombine.high %v7265_v25, %v7265_v25 }
 0x40a   :  { %2900 = vrot.lane.b32.xlu0 %v2853_v22, %s5425_s22  ;;  %v2887_v49 = vpop.permute.xlu0 %2886 }
 0x40b   :  { %v3254_v38 = vsel %vm139_vm0, %v7050_v27, %v2887_v49 }
 0x40c   :  { %v2889_v51 = vpop.permute.xlu1 %2888 }
 0x40d   :  { %v3255_v28 = vsel %vm139_vm0, %v7055_v19, %v2889_v51  ;;  %v5420_v19 = vld [vmem:[%s8685_s1 + $0x18] sm:$0xff] }
 0x40e   :  { %3120 = vrot.lane.b32.xlu0 %v7209_v17, %s5425_s22  ;;  %v2935_v12 = vpop.permute.xlu0 %2934  ;;  %v7295_v51 = vadd.f32 %v5420_v19, %v2388_v14 }
 0x40f   :  { %v3270_v33 = vsel %vm142_vm1, %v3254_v38, %v2935_v12 }
 0x410   :  { %v2937_v6 = vpop.permute.xlu1 %2936  ;;  %8777 = vst [vmem:[#allocation7_spill] sm:$0xff] %v7295_v51  ;;  %v7307_v40 = vrot.slane %v7295_v51, %v8767_v16 }
 0x411   :  { %v3271_v21 = vsel %vm142_vm1, %v3255_v28, %v2937_v6 }
 0x412   :  { %2948 = vrot.lane.b32.xlu0 %v2853_v22, %s5424_s21  ;;  %v2983_v34 = vpop.permute.xlu0 %2982 }
 0x413   :  { %v3286_v7 = vsel %vm145_vm2, %v3270_v33, %v2983_v34 }
 0x414   :  { %v2985_v20 = vpop.permute.xlu1 %2984  ;;  %v3302_v27 = vsel %vm148_vm3, %v3286_v7, %v7093_v23 }
 0x415   :  { %v3287_v9 = vsel %vm145_vm2, %v3271_v21, %v2985_v20  ;;  %v2657_v21 = vcombine.high %v7201_v53, %v7201_v53 }
 0x416   :  { %3168 = vrot.lane.b32.xlu0 %v7209_v17, %s5424_s21  ;;  %v2891_v61 = vpop.permute.xlu0 %2890  ;;  %v3303_v23 = vsel %vm148_vm3, %v3287_v9, %v7106_v11  ;;  %v7312_v11 = vcombine.high %v7217_v26, %v7217_v26 }
 0x417   :  { %v3256_v5 = vsel %vm139_vm0, %v7071_v48, %v2891_v61 }
 0x418   :  { %v7317_v35 = vrot.slane %v7312_v11, %v5504_v8 }
 0x41a   :  { %v3111_v41 = vpop.permute.xlu1 %3110  ;;  %2996 = vrot.lane.b32.xlu0 %v2853_v22, %s5426_s23  ;;  %v7261_v3 = vpop.permute.xlu0 %2892 }
 0x41b   :  { %v3318_v45 = vsel %vm151_vm4, %v3302_v27, %v3111_v41 }
 0x41e   :  { %v2939_v4 = vpop.permute.xlu1 %2938  ;;  %2902 = vrot.lane.b32.xlu0 %v2857_v30, %s5425_s22  ;;  %v3113_v2 = vpop.permute.xlu0 %3112 }
 0x41f   :  { %v3319_v6 = vsel %vm151_vm4, %v3303_v23, %v3113_v2  ;;  %v2788_v2 = vcombine.high %v7307_v40, %v7307_v40  ;;  %v3272_v33 = vsel %vm142_vm1, %v3256_v5, %v2939_v4 }
 0x422   :  { %v3159_v43 = vpop.permute.xlu1 %3158  ;;  %2904 = vrot.lane.b32.xlu0 %v2861_v47, %s5425_s22  ;;  %v7278_v32 = vpop.permute.xlu0 %2940 }
 0x423   :  { %v3334_v58 = vsel %vm154_vm5, %v3318_v45, %v3159_v43  ;;  %v2869_v43 = vrot.slane %v7321_v31, %v5504_v8 }
 0x426   :  { %v2987_v30 = vpop.permute.xlu1 %2986  ;;  %3124 = vrot.lane.b32.xlu0 %v7241_v36, %s5425_s22  ;;  %v3161_v49 = vpop.permute.xlu0 %3160 }
 0x427   :  { %v3335_v34 = vsel %vm154_vm5, %v3319_v6, %v3161_v49  ;;  %v3288_v28 = vsel %vm145_vm2, %v3272_v33, %v2987_v30  ;;  %v2671_v30 = vrot.slane %v2657_v21, %v8767_v16 }
 0x428   :  { %v3304_v27 = vsel %vm148_vm3, %v3288_v28, %v7141_v59 }
 0x429   :  { %v7355_v59 = vrot.slane %v2671_v30, %v8767_v16 }
 0x42a   :  { %v3207_v22 = vpop.permute.xlu1 %3206  ;;  %2952 = vrot.lane.b32.xlu0 %v2861_v47, %s5424_s21  ;;  %v2989_v45 = vpop.permute.xlu0 %2988 }
 0x42b   :  { %v3350_v12 = vsel %vm157_vm6, %v3334_v58, %v3207_v22  ;;  %v2673_v22 = vcombine.high %v2671_v30, %v2671_v30  ;;  %v7384_v5 = vcombine.high %v7355_v59, %v7355_v59  ;;  %v3257_v30 = vsel %vm139_vm0, %v7084_v56, %v7261_v3 }
 0x42c   :  { %5140 = vmatprep.mubr.msk.f32.mxu1 %vm931_vm7, %v3350_v12  ;;  %v7360_v12 = vrot.slane %v7355_v59, %v5504_v8 }
 0x42d   :  { %v7363_v19 = vrot.slane %v2673_v22, %v8767_v16  ;;  %v7391_v28 = vrot.slane %v7384_v5, %v5504_v8  ;;  %v3273_v22 = vsel %vm142_vm1, %v3257_v30, %v7278_v32 }
 0x42e   :  { %v3209_v20 = vpop.permute.xlu1 %3208  ;;  %3172 = vrot.lane.b32.xlu0 %v7241_v36, %s5424_s21  ;;  %v2895_v49 = vpop.permute.xlu0 %2894  ;;  %v3289_v53 = vsel %vm145_vm2, %v3273_v22, %v2989_v45 }
 0x42f   :  { %v3351_v50 = vsel %vm157_vm6, %v3335_v34, %v3209_v20  ;;  %v2877_v6 = vrot.slane %v7363_v19, %v5504_v8  ;;  %v7395_v21 = vcombine.high %v7363_v19, %v7363_v19  ;;  %v3305_v3 = vsel %vm148_vm3, %v3289_v53, %v7149_v44 }
 0x430   :  { %5141 = vmatmul.mubr.msk.f32.vlgmr.msra.gmra.mrb[2].mxu1 %vm931_vm7, %v3351_v50  ;;  %v2796_v44 = vrot.slane %v7307_v40, %v8767_v16 }
 0x432   :  { %v3115_v41 = vpop.permute.xlu1 %3114  ;;  %3000 = vrot.lane.b32.xlu0 %v2861_v47, %s5426_s23  ;;  %v2810_v47 = vrot.slane %v2788_v2, %v8767_v16  ;;  %v7369_v20 = vpop.permute.xlu0 %2896  ;;  %v7441_v53 = vrot.slane %v2796_v44, %v5504_v8 }
 0x433   :  { %v3320_v9 = vsel %vm151_vm4, %v3304_v27, %v3115_v41 }
 0x434   :  { %v7337_v7 = vrot.slane %v2810_v47, %v5504_v8  ;;  %v2820_v34 = vcombine.high %v2810_v47, %v2810_v47 }
 0x436   :  { %v7325_v37 = vpop.permute.xlu1 %2942  ;;  %2906 = vrot.lane.b32.xlu0 %v7317_v35, %s5425_s22  ;;  %v7373_v41 = vrot.slane %v2820_v34, %v5504_v8  ;;  %v3117_v2 = vpop.permute.xlu0 %3116 }
 0x437   :  { %v3321_v32 = vsel %vm151_vm4, %v3305_v3, %v3117_v2 }
 0x43a   :  { %v3163_v38 = vpop.permute.xlu1 %3162  ;;  %2908 = vrot.lane.b32.xlu0 %v2869_v43, %s5425_s22 }
 0x43b   :  { %v3336_v48 = vsel %vm154_vm5, %v3320_v9, %v3163_v38  ;;  %v7378_v38 = vpop.permute.xlu0 %2443  ;;  %v2012_v9 = vld [vmem:[%s8694_s9] sm:$0x1] }
 0x43e   :  { %v2991_v14 = vpop.permute.xlu1 %2990  ;;  %3128 = vrot.lane.b32.xlu0 %v7337_v7, %s5425_s22 }
 0x43f   :  { %v7387_v33 = vpop.permute.xlu0 %2446 }
 0x442   :  { %v3211_v61 = vpop.permute.xlu1 %3210  ;;  %2956 = vrot.lane.b32.xlu0 %v2869_v43, %s5424_s21 }
 0x443   :  { %v3352_v4 = vsel %vm157_vm6, %v3336_v48, %v3211_v61  ;;  %v7404_v61 = vrot.slane %v7395_v21, %v5504_v8 }
 0x444   :  { %5143 = vmatprep.mubr.msk.f32.mxu1 %vm931_vm7, %v3352_v4 }
 0x446   :  { %3176 = vrot.lane.b32.xlu0 %v7337_v7, %s5424_s21  ;;  %v3213_v58 = vpop.permute.xlu1 %3212 }
 0x44a   :  { %3004 = vrot.lane.b32.xlu0 %v2869_v43, %s5426_s23  ;;  %v3119_v23 = vpop.permute.xlu1 %3118 }
 0x44e   :  { %2910 = vrot.lane.b32.xlu0 %v7360_v12, %s5425_s22  ;;  %v2947_v50 = vpop.permute.xlu1 %2946 }
 0x452   :  { %2912 = vrot.lane.b32.xlu0 %v2877_v6, %s5425_s22  ;;  %v3167_v43 = vpop.permute.xlu1 %3166 }
 0x456   :  { %3132 = vrot.lane.b32.xlu0 %v7373_v41, %s5425_s22  ;;  %v2995_v47 = vpop.permute.xlu1 %2994 }
 0x45a   :  { %2960 = vrot.lane.b32.xlu0 %v2877_v6, %s5424_s21  ;;  %v3215_v27 = vpop.permute.xlu1 %3214 }
 0x45e   :  { %3180 = vrot.lane.b32.xlu0 %v7373_v41, %s5424_s21 }
 0x462   :  { %3008 = vrot.lane.b32.xlu0 %v2877_v6, %s5426_s23  ;;  %v3258_v6 = vsel %vm139_vm0, %v7127_v54, %v2895_v49 }
 0x466   :  { %2914 = vrot.lane.b32.xlu0 %v7391_v28, %s5425_s22 }
 0x468   :  { %v2038_v48 = vpop.permute.xlu0 %2037 }
 0x469   :  { %v7406_v4 = vsub.f32 %v2012_v9, %v2038_v48  ;;  %v3274_v9 = vsel %vm142_vm1, %v3258_v6, %v7325_v37  ;;  %v3217_v48 = vpop.permute.xlu1 %3216 }
 0x46a   :  { %2916 = vrot.lane.b32.xlu0 %v7404_v61, %s5425_s22  ;;  %v3290_v56 = vsel %vm145_vm2, %v3274_v9, %v2991_v14 }
 0x46b   :  { %v2456_v34 = vrot.slane %v7406_v4, %v5504_v8  ;;  %v3306_v54 = vsel %vm148_vm3, %v3290_v56, %v7181_v57 }
 0x46c   :  { %v2945_v24 = vpop.permute.xlu0 %2944  ;;  %v3322_v45 = vsel %vm151_vm4, %v3306_v54, %v3119_v23 }
 0x46d   :  { %2457 = vrot.lane.b32.xlu1 %v2456_v34, %s5426_s23  ;;  %v3338_v37 = vsel %vm154_vm5, %v3322_v45, %v3167_v43  ;;  %v3123_v14 = vpop.permute.xlu1 %3122 }
 0x46e   :  { %v3354_v6 = vsel %vm157_vm6, %v3338_v37, %v3215_v27  ;;  %v2818_v37 = vcombine.high %v2796_v44, %v2796_v44 }
 0x470   :  { %v3165_v49 = vpop.permute.xlu0 %3164 }
 0x471   :  { %v3337_v30 = vsel %vm154_vm5, %v3321_v32, %v3165_v49  ;;  %2460 = vrot.lane.b32.xlu1 %v2456_v34, %s5424_s21  ;;  %v7443_v23 = vpop.permute.xlu1 %2950 }
 0x472   :  { %v3353_v22 = vsel %vm157_vm6, %v3337_v30, %v3213_v58 }
 0x473   :  { %5144 = vmatmul.mubr.msk.f32.gmra.mrb[4].mxu1 %vm931_vm7, %v3353_v22 }
 0x474   :  { %5146 = vmatprep.mubr.msk.f32.mxu1 %vm931_vm7, %v3354_v6  ;;  %v2993_v57 = vpop.permute.xlu0 %2992 }
 0x475   :  { %2463 = vrot.lane.b32.xlu1 %v2456_v34, %s5425_s22  ;;  %v3171_v27 = vpop.permute.xlu1 %3170 }
 0x478   :  { %v2899_v2 = vpop.permute.xlu0 %2898 }
 0x479   :  { %v3260_v58 = vsel %vm139_vm0, %v7185_v18, %v2899_v2  ;;  %3126 = vrot.lane.b32.xlu1 %v7441_v53, %s5425_s22  ;;  %v3259_v18 = vsel %vm139_vm0, %v7135_v55, %v7369_v20  ;;  %v7461_v3 = vpop.permute.xlu1 %2998 }
 0x47a   :  { %v3276_v43 = vsel %vm142_vm1, %v3260_v58, %v2947_v50  ;;  %v3275_v50 = vsel %vm142_vm1, %v3259_v18, %v2945_v24 }
 0x47b   :  { %v3292_v34 = vsel %vm145_vm2, %v3276_v43, %v2995_v47  ;;  %v3291_v32 = vsel %vm145_vm2, %v3275_v50, %v2993_v57  ;;  %v2773_v57 = vcombine.high %v7295_v51, %v7295_v51 }
 0x47c   :  { %v2901_v40 = vpop.permute.xlu0 %2900  ;;  %v3308_v56 = vsel %vm148_vm3, %v3292_v34, %v7214_v1  ;;  %v3307_v49 = vsel %vm148_vm3, %v3291_v32, %v7209_v17 }
 0x47d   :  { %2954 = vrot.lane.b32.xlu1 %v7317_v35, %s5424_s21  ;;  %v3324_v47 = vsel %vm151_vm4, %v3308_v56, %v3123_v14  ;;  %v3219_v45 = vpop.permute.xlu1 %3218  ;;  %v7481_v14 = vrot.slane %v2818_v37, %v5504_v8  ;;  %v3261_v44 = vsel %vm139_vm0, %v7247_v63, %v2901_v40  ;;  %v7506_v34 = vrot.slane %v2773_v57, %v8767_v16  ;;  %v5009_v57 = vld [vmem:[%s8688_s4 + $0x20] sm:$0xff] }
 0x47e   :  { %v3340_v1 = vsel %vm154_vm5, %v3324_v47, %v3171_v27 }
 0x480   :  { %v3121_v9 = vpop.permute.xlu0 %3120 }
 0x481   :  { %3174 = vrot.lane.b32.xlu1 %v7441_v53, %s5424_s21  ;;  %v3323_v55 = vsel %vm151_vm4, %v3307_v49, %v3121_v9  ;;  %v3221_v9 = vpop.permute.xlu1 %3220 }
 0x484   :  { %v2949_v54 = vpop.permute.xlu0 %2948 }
 0x485   :  { %3002 = vrot.lane.b32.xlu1 %v7317_v35, %s5426_s23  ;;  %v3356_v35 = vsel %vm157_vm6, %v3340_v1, %v3219_v45  ;;  %v3277_v2 = vsel %vm142_vm1, %v3261_v44, %v2949_v54  ;;  %v2449_v44 = vsel %vm931_vm7, %v7006_v60, %v7219_v13 }
 0x488   :  { %v3169_v20 = vpop.permute.xlu0 %3168 }
 0x489   :  { %v3339_v24 = vsel %vm154_vm5, %v3323_v55, %v3169_v20  ;;  %3222 = vrot.lane.b32.xlu1 %v7441_v53, %s5426_s23 }
 0x48a   :  { %v3355_v30 = vsel %vm157_vm6, %v3339_v24, %v3217_v48 }
 0x48b   :  { %5147 = vmatmul.mubr.msk.f32.gmra.mrb[6].mxu1 %vm931_vm7, %v3355_v30 }
 0x48c   :  { %5149 = vmatprep.mubr.msk.f32.mxu1 %vm931_vm7, %v3356_v35  ;;  %v2997_v17 = vpop.permute.xlu0 %2996 }
 0x48d   :  { %3224 = vrot.lane.b32.xlu1 %v7337_v7, %s5426_s23  ;;  %v3293_v58 = vsel %vm145_vm2, %v3277_v2, %v2997_v17  ;;  %v2400_v17 = vrot.slane %v6937_v15, 1  ;;  %v5010_v2 = vld [vmem:[%s8688_s4 + $0x28] sm:$0xff] }
 0x48e   :  { %v3309_v27 = vsel %vm148_vm3, %v3293_v58, %v7241_v36 }
 0x48f   :  { %v2401_v58 = vsel %vm1835_vm8, %v6940_v39, %v2400_v17 }
 0x490   :  { %v7483_v22 = vpop.permute.xlu0 %2902  ;;  %v2437_v60 = vsel %vm931_vm7, %v7038_v42, %v2401_v58 }
 0x491   :  { %3130 = vrot.lane.b32.xlu1 %v7481_v14, %s5425_s22 }
 0x494   :  { %v7487_v48 = vpop.permute.xlu0 %2904 }
 0x495   :  { %2958 = vrot.lane.b32.xlu1 %v7360_v12, %s5424_s21 }
 0x498   :  { %v3125_v6 = vpop.permute.xlu0 %3124 }
 0x499   :  { %3178 = vrot.lane.b32.xlu1 %v7481_v14, %s5424_s21  ;;  %v3325_v63 = vsel %vm151_vm4, %v3309_v27, %v3125_v6  ;;  %v2450_v27 = vsel %vm2323_vm15, %v2449_v44, %v7378_v38  ;;  %v5427_v38 = vmov 1983009808  }
 0x49a   :  { %v2451_v13 = vsel %vm2326_vm14, %v2450_v27, %v7387_v33 }
 0x49c   :  { %v7499_v43 = vpop.permute.xlu0 %2952 }
 0x49d   :  { %3006 = vrot.lane.b32.xlu1 %v7360_v12, %s5426_s23  ;;  %v7516_v12 = vrot.slane %v7506_v34, %v8767_v16 }
 0x49f   :  { %v7524_v50 = vrot.slane %v7516_v12, %v5504_v8 }
 0x4a0   :  { %v3173_v40 = vpop.permute.xlu0 %3172 }
 0x4a1   :  { %v3341_v18 = vsel %vm154_vm5, %v3325_v63, %v3173_v40  ;;  %3226 = vrot.lane.b32.xlu1 %v7481_v14, %s5426_s23  ;;  %v5199_v63 = vpack.c.bf16 %v5010_v2, %v5009_v57  ;;  %v2421_v40 = vrot.slane %v6937_v15, 5 }
 0x4a2   :  { %v3357_v56 = vsel %vm157_vm6, %v3341_v18, %v3221_v9 }
 0x4a3   :  { %5150 = vmatmul.mubr.msk.f32.gmra.mrb[8].mxu1 %vm931_vm7, %v3357_v56  ;;  %5200 = vmatprep.subr.bf16.mxu0 %v5199_v63  ;;  %v2472_v56 = vrot.slane %v2451_v13, %v5504_v8 }
 0x4a4   :  { %v7518_v36 = vpop.permute.xlu0 %3000  ;;  %5202 = vmatpush3.bf16.msra.mxu0 %v5199_v63 }
 0x4a5   :  { %3228 = vrot.lane.b32.xlu1 %v7373_v41, %s5426_s23 }
 0x4a8   :  { %v7526_v32 = vpop.permute.xlu0 %2906 }
 0x4a9   :  { %3134 = vrot.lane.b32.xlu1 %v7524_v50, %s5425_s22 }
 0x4ac   :  { %v7530_v54 = vpop.permute.xlu0 %2908 }
 0x4ad   :  { %2962 = vrot.lane.b32.xlu1 %v7391_v28, %s5424_s21 }
 0x4b0   :  { %v7534_v47 = vpop.permute.xlu0 %3128 }
 0x4b4   :  { %v7536_v49 = vpop.permute.xlu0 %2956 }
 0x4b8   :  { %v7538_v55 = vpop.permute.xlu0 %3176 }
 0x4bc   :  { %v7540_v20 = vpop.permute.xlu0 %3004 }
 0x4c0   :  { %v7542_v1 = vpop.permute.xlu0 %2910 }
 0x4c4   :  { %v2913_v24 = vpop.permute.xlu0 %2912 }
 0x4c5   :  { %v3267_v30 = vsel %vm139_vm0, %v7363_v19, %v2913_v24  ;;  %v2422_v19 = vrot.slane %v6940_v39, 4  ;;  %v2438_v39 = vsel %vm2323_vm15, %v2437_v60, %v7162_v46  ;;  %v2487_v24 = vunpack.c.l.s4 %v5427_v38  ;;  %v5011_v38 = vld [vmem:[%s8688_s4 + $0x30] sm:$0xff] }
 0x4c6   :  { %v2439_v46 = vsel %vm2326_vm14, %v2438_v39, %v7170_v62  ;;  %v3262_v62 = vsel %vm139_vm0, %v7217_v26, %v7483_v22  ;;  %v5012_v26 = vld [vmem:[%s8688_s4 + $0x38] sm:$0xff] }
 0x4c7   :  { %v2423_v18 = vsel %vm1835_vm8, %v2422_v19, %v2421_v40  ;;  %v2473_v57 = vmul.f32 %v2472_v56, %v2439_v46 }
 0x4c8   :  { %v7544_v45 = vpop.permute.xlu0 %3132  ;;  %v2440_v42 = vsel %vm931_vm7, %v7151_v29, %v2423_v18  ;;  %v2488_v29 = vunpack.c.0.s8 %v2487_v24  ;;  %v5421_v18 = vld [vmem:[%s8686_s0] sm:$0xf] }
 0x4c9   :  { %v2441_v15 = vsel %vm2323_vm15, %v2440_v42, %v7047_v52  ;;  %v8778_v52 = vld [vmem:[#allocation2_spill] sm:$0xff] }
 0x4ca   :  { %v2442_v17 = vsel %vm2326_vm14, %v2441_v15, %v7156_v10  ;;  %v7589_v27 = vsub.s32 %v2488_v29, %v8778_v52 }
 0x4cb   :  { %v2474_v2 = vmul.f32 %v2472_v56, %v2442_v17 }
 0x4cc   :  { %v2961_v35 = vpop.permute.xlu0 %2960  ;;  %8779 = vst [vmem:[#allocation5_spill] sm:$0xff] %v7589_v27 }
 0x4cd   :  { %v7549_v37 = vsel %vm142_vm1, %v3267_v30, %v2961_v35 }
 0x4df   :  { %v2458_v6 = vpop.permute.xlu1 %2457 }
 0x4e0   :  { %v2466_v33 = vsel %vm931_vm7, %v7406_v4, %v2458_v6 }
 0x4e3   :  { %v2461_v9 = vpop.permute.xlu1 %2460 }
 0x4e4   :  { %v2467_v30 = vsel %vm2323_vm15, %v2466_v33, %v2461_v9  ;;  %v3278_v9 = vsel %vm142_vm1, %v3262_v62, %v7443_v23  ;;  %v5203_v23 = vpack.c.bf16 %v5012_v26, %v5011_v38  ;;  %v3263_v33 = vsel %vm139_vm0, %v7265_v25, %v7487_v48 }
 0x4e5   :  { %v3294_v24 = vsel %vm145_vm2, %v3278_v9, %v7461_v3  ;;  %v3279_v15 = vsel %vm142_vm1, %v3263_v33, %v7499_v43  ;;  %v3265_v62 = vsel %vm139_vm0, %v7321_v31, %v7530_v54  ;;  %v3181_v54 = vpop.permute.xlu0 %3180 }
 0x4e6   :  { %5204 = vmatprep.subr.bf16.mxu0 %v5203_v23 }
 0x4e7   :  { %v2464_v35 = vpop.permute.xlu1 %2463  ;;  %5206 = vmatpush3.bf16.msra.mxu0 %v5203_v23 }
 0x4e8   :  { %v2468_v44 = vsel %vm2326_vm14, %v2467_v30, %v2464_v35  ;;  %v3310_v30 = vsel %vm148_vm3, %v3294_v24, %v7441_v53  ;;  %v3295_v35 = vsel %vm145_vm2, %v3279_v15, %v7518_v36 }
 0x4e9   :  { %v2478_v19 = vrot.slane %v2468_v44, %v5504_v8  ;;  %v3311_v48 = vsel %vm148_vm3, %v3295_v35, %v7337_v7  ;;  %v3009_v24 = vpop.permute.xlu0 %3008 }
 0x4ea   :  { %v3327_v36 = vsel %vm151_vm4, %v3311_v48, %v7534_v47 }
 0x4eb   :  { %v2479_v4 = vadd.f32 %v2478_v19, %v2473_v57  ;;  %v2480_v6 = vadd.f32 %v2478_v19, %v2474_v2  ;;  %v3127_v58 = vpop.permute.xlu1 %3126  ;;  %v3343_v44 = vsel %vm154_vm5, %v3327_v36, %v7538_v55  ;;  %v2789_v19 = vcombine.high %v7506_v34, %v7506_v34 }
 0x4ec   :  { %v3326_v17 = vsel %vm151_vm4, %v3310_v30, %v3127_v58  ;;  %v3264_v34 = vsel %vm139_vm0, %v7312_v11, %v7526_v32  ;;  %v3281_v32 = vsel %vm142_vm1, %v3265_v62, %v7536_v49 }
 0x4ed   :  { %v2481_v63 = vmax.f32 %v2479_v4, 0.0  ;;  %v2482_v60 = vmax.f32 %v2480_v6, 0.0  ;;  %v3266_v4 = vsel %vm139_vm0, %v7355_v59, %v7542_v1  ;;  %v2817_v52 = vrot.slane %v2789_v19, %v8767_v16 }
 0x4ef   :  { %v2485_v13 = vcombine.low %v2481_v63, %v2482_v60  ;;  %v2955_v10 = vpop.permute.xlu1 %2954  ;;  %v7677_v1 = vrot.slane %v2817_v52, %v5504_v8  ;;  %v2821_v26 = vcombine.high %v2817_v52, %v2817_v52 }
 0x4f0   :  { %v3280_v59 = vsel %vm142_vm1, %v3264_v34, %v2955_v10 }
 0x4f1   :  { %v2492_v40 = vrot.slane %v2485_v13, %v7589_v27 }
 0x4f3   :  { %v7600_v39 = vadd.f32 %v5421_v18, %v2492_v40  ;;  %v3175_v56 = vpop.permute.xlu1 %3174  ;;  %v3297_v40 = vsel %vm145_vm2, %v3281_v32, %v7540_v20 }
 0x4f4   :  { %v3342_v46 = vsel %vm154_vm5, %v3326_v17, %v3175_v56 }
 0x4f5   :  { %8780 = vst [vmem:[#allocation3_spill] sm:$0xff] %v7600_v39  ;;  %v7610_v22 = vrot.slane %v7600_v39, %v8767_v16 }
 0x4f7   :  { %2514 = vrot.lane.b32.xlu1 %v7610_v22, %s5424_s21  ;;  %2508 = vrot.lane.b32.xlu0 %v7610_v22, %s5425_s22  ;;  %v3003_v42 = vpop.permute.xlu1 %3002  ;;  %v7627_v3 = vcombine.high %v7610_v22, %v7610_v22  ;;  %v2529_v43 = vrot.slane %v7610_v22, %v5504_v8 }
 0x4f8   :  { %v3296_v60 = vsel %vm145_vm2, %v3280_v59, %v3003_v42  ;;  %v7743_v42 = vpop.permute.xlu0 %2914 }
 0x4f9   :  { %v2533_v55 = vrot.slane %v7627_v3, %v5504_v8  ;;  %v3312_v10 = vsel %vm148_vm3, %v3296_v60, %v7481_v14  ;;  %v3313_v14 = vsel %vm148_vm3, %v3297_v40, %v7373_v41  ;;  %v2819_v41 = vcombine.high %v7516_v12, %v7516_v12 }
 0x4fa   :  { %v3329_v20 = vsel %vm151_vm4, %v3313_v14, %v7544_v45  ;;  %v7722_v45 = vrot.slane %v2821_v26, %v5504_v8  ;;  %v2507_v62 = vrot.slane %v7627_v3, 1 }
 0x4fb   :  { %2520 = vrot.lane.b32.xlu1 %v7610_v22, %s5426_s23  ;;  %2510 = vrot.lane.b32.xlu0 %v7627_v3, %s5425_s22  ;;  %v3223_v25 = vpop.permute.xlu1 %3222  ;;  %v3345_v56 = vsel %vm154_vm5, %v3329_v20, %v3181_v54  ;;  %v7725_v23 = vrot.slane %v2819_v41, %v5504_v8 }
 0x4fc   :  { %v3358_v53 = vsel %vm157_vm6, %v3342_v46, %v3223_v25  ;;  %v7749_v35 = vpop.permute.xlu0 %2916 }
 0x4fd   :  { %5152 = vmatprep.mubr.msk.f32.mxu1 %vm931_vm7, %v3358_v53 }
 0x4ff   :  { %2534 = vrot.lane.b32.xlu1 %v2529_v43, %s5425_s22  ;;  %2516 = vrot.lane.b32.xlu0 %v7627_v3, %s5424_s21  ;;  %v3225_v57 = vpop.permute.xlu1 %3224 }
 0x500   :  { %v3359_v2 = vsel %vm157_vm6, %v3343_v44, %v3225_v57 }
 0x501   :  { %5153 = vmatmul.mubr.msk.f32.gmra.mrb[10].mxu1 %vm931_vm7, %v3359_v2  ;;  %v2506_v2 = vrot.slane %v7610_v22, 1 }
 0x503   :  { %v7652_v7 = vpop.f32.mrb[2].mxu1  ;;  %2540 = vrot.lane.b32.xlu1 %v2529_v43, %s5424_s21  ;;  %2522 = vrot.lane.b32.xlu0 %v7627_v3, %s5426_s23  ;;  %v3131_v47 = vpop.permute.xlu1 %3130 }
 0x504   :  { %v7657_v29 = vpop.f32.mrb[3].mxu1  ;;  %v3328_v9 = vsel %vm151_vm4, %v3312_v10, %v3131_v47 }
 0x507   :  { %2546 = vrot.lane.b32.xlu1 %v2529_v43, %s5426_s23  ;;  %2536 = vrot.lane.b32.xlu0 %v2533_v55, %s5425_s22  ;;  %v2959_v6 = vpop.permute.xlu1 %2958 }
 0x508   :  { %v3282_v58 = vsel %vm142_vm1, %v3266_v4, %v2959_v6 }
 0x50b   :  { %2548 = vrot.lane.b32.xlu1 %v2533_v55, %s5426_s23  ;;  %2542 = vrot.lane.b32.xlu0 %v2533_v55, %s5424_s21  ;;  %v3179_v63 = vpop.permute.xlu1 %3178 }
 0x50c   :  { %v3344_v18 = vsel %vm154_vm5, %v3328_v9, %v3179_v63  ;;  %v2555_v63 = vrot.slane %v2506_v2, %v5504_v8 }
 0x50f   :  { %3182 = vrot.lane.b32.xlu1 %v7524_v50, %s5424_s21  ;;  %3136 = vrot.lane.b32.xlu0 %v7677_v1, %s5425_s22  ;;  %v3007_v13 = vpop.permute.xlu1 %3006 }
 0x510   :  { %v7688_v11 = vsel %vm145_vm2, %v3282_v58, %v3007_v13 }
 0x513   :  { %3010 = vrot.lane.b32.xlu1 %v7391_v28, %s5426_s23  ;;  %2964 = vrot.lane.b32.xlu0 %v7404_v61, %s5424_s21  ;;  %v3227_v31 = vpop.permute.xlu1 %3226 }
 0x514   :  { %v3360_v49 = vsel %vm157_vm6, %v3344_v18, %v3227_v31 }
 0x515   :  { %5155 = vmatprep.mubr.msk.f32.mxu1 %vm931_vm7, %v3360_v49 }
 0x517   :  { %3230 = vrot.lane.b32.xlu1 %v7524_v50, %s5426_s23  ;;  %3184 = vrot.lane.b32.xlu0 %v7677_v1, %s5424_s21  ;;  %v3229_v28 = vpop.permute.xlu1 %3228 }
 0x518   :  { %v3361_v38 = vsel %vm157_vm6, %v3345_v56, %v3229_v28  ;;  %v2559_v56 = vrot.slane %v2507_v62, %v5504_v8  ;;  %v3268_v62 = vsel %vm139_vm0, %v7384_v5, %v7743_v42 }
 0x519   :  { %5156 = vmatmul.mubr.msk.f32.gmra.mrb[12].mxu1 %vm931_vm7, %v3361_v38 }
 0x51b   :  { %3232 = vrot.lane.b32.xlu1 %v7677_v1, %s5426_s23  ;;  %3012 = vrot.lane.b32.xlu0 %v7404_v61, %s5426_s23  ;;  %v3135_v15 = vpop.permute.xlu1 %3134 }
 0x51f   :  { %3140 = vrot.lane.b32.xlu1 %v7722_v45, %s5425_s22  ;;  %3138 = vrot.lane.b32.xlu0 %v7725_v23, %s5425_s22  ;;  %v7751_v17 = vpop.permute.xlu1 %2962 }
 0x523   :  { %3188 = vrot.lane.b32.xlu1 %v7722_v45, %s5424_s21  ;;  %3186 = vrot.lane.b32.xlu0 %v7725_v23, %s5424_s21 }
 0x527   :  { %3236 = vrot.lane.b32.xlu1 %v7722_v45, %s5426_s23  ;;  %3234 = vrot.lane.b32.xlu0 %v7725_v23, %s5426_s23 }
 0x546   :  { %v7739_v61 = vpop.f32.mrb[4].mxu1 }
 0x547   :  { %v7741_v12 = vpop.f32.mrb[5].mxu1 }
 0x55e   :  { %v7745_v33 = vpop.f32.mrb[6].mxu1 }
 0x55f   :  { %v7747_v30 = vpop.f32.mrb[7].mxu1 }
 0x569   :  { %v2515_v46 = vpop.permute.xlu1 %2514  ;;  %v2509_v25 = vpop.permute.xlu0 %2508 }
 0x56a   :  { %v2512_v47 = vrot.slane %v2509_v25, 1  ;;  %v2518_v19 = vrot.slane %v2515_v46, 1 }
 0x56c   :  { %v2565_v60 = vrot.slane %v2512_v47, %v5504_v8  ;;  %v2575_v32 = vrot.slane %v2518_v19, %v5504_v8  ;;  %v3314_v47 = vsel %vm148_vm3, %v7688_v11, %v7524_v50  ;;  %v3299_v19 = vsel %vm145_vm2, %v7549_v37, %v3009_v24 }
 0x56d   :  { %v2521_v53 = vpop.permute.xlu1 %2520  ;;  %v2511_v48 = vpop.permute.xlu0 %2510 }
 0x56e   :  { %v2524_v6 = vrot.slane %v2521_v53, 1  ;;  %v2513_v10 = vrot.slane %v2511_v48, 1 }
 0x570   :  { %v2585_v9 = vrot.slane %v2524_v6, %v5504_v8  ;;  %v2569_v26 = vrot.slane %v2513_v10, %v5504_v8  ;;  %v3330_v6 = vsel %vm151_vm4, %v3314_v47, %v3135_v15 }
 0x571   :  { %v2535_v43 = vpop.permute.xlu1 %2534  ;;  %v2517_v36 = vpop.permute.xlu0 %2516 }
 0x572   :  { %v2592_v58 = vsel %vm139_vm0, %v7610_v22, %v2535_v43  ;;  %v2519_v22 = vrot.slane %v2517_v36, 1 }
 0x574   :  { %v2579_v46 = vrot.slane %v2519_v22, %v5504_v8 }
 0x575   :  { %v2541_v44 = vpop.permute.xlu1 %2540  ;;  %v2523_v57 = vpop.permute.xlu0 %2522 }
 0x576   :  { %v7754_v55 = vpop.f32.mrb[8].mxu1  ;;  %v2594_v52 = vsel %vm142_vm1, %v2592_v58, %v2541_v44  ;;  %v2525_v31 = vrot.slane %v2523_v57, 1 }
 0x577   :  { %v7756_v4 = vpop.f32.mrb[9].mxu1 }
 0x578   :  { %v2589_v25 = vrot.slane %v2525_v31, %v5504_v8 }
 0x579   :  { %v2547_v34 = vpop.permute.xlu1 %2546  ;;  %v2537_v59 = vpop.permute.xlu0 %2536 }
 0x57a   :  { %v2596_v13 = vsel %vm145_vm2, %v2594_v52, %v2547_v34  ;;  %v2593_v54 = vsel %vm139_vm0, %v7627_v3, %v2537_v59  ;;  %v3315_v59 = vsel %vm148_vm3, %v3299_v19, %v7677_v1  ;;  %v3269_v1 = vsel %vm139_vm0, %v7395_v21, %v7749_v35 }
 0x57b   :  { %v2598_v40 = vsel %vm148_vm3, %v2596_v13, %v2555_v63  ;;  %vm8797_vm0 = vcmask 1047559  }
 0x57c   :  { %v2600_v18 = vsel %vm151_vm4, %v2598_v40, %v2565_v60 }
 0x57d   :  { %v2549_v49 = vpop.permute.xlu1 %2548  ;;  %v2543_v14 = vpop.permute.xlu0 %2542  ;;  %v2602_v20 = vsel %vm154_vm5, %v2600_v18, %v2575_v32  ;;  %v3284_v32 = vsel %vm142_vm1, %v3268_v62, %v7751_v17 }
 0x57e   :  { %v2595_v28 = vsel %vm142_vm1, %v2593_v54, %v2543_v14  ;;  %v2604_v38 = vsel %vm157_vm6, %v2602_v20, %v2585_v9 }
 0x57f   :  { %v2597_v41 = vsel %vm145_vm2, %v2595_v28, %v2549_v49  ;;  %5172 = vmatprep.mubr.msk.f32.mxu0 %vm931_vm7, %v2604_v38  ;;  %v5014_v38 = vld [vmem:[%s8689_s5 + $0x1] ss:$0 sm:$0xff] }
 0x580   :  { %v2599_v3 = vsel %vm148_vm3, %v2597_v41, %v2559_v56 }
 0x581   :  { %v2601_v53 = vsel %vm151_vm4, %v2599_v3, %v2569_v26  ;;  %v3183_v48 = vpop.permute.xlu1 %3182  ;;  %v3137_v43 = vpop.permute.xlu0 %3136 }
 0x582   :  { %v2603_v36 = vsel %vm154_vm5, %v2601_v53, %v2579_v46  ;;  %v3346_v58 = vsel %vm154_vm5, %v3330_v6, %v3183_v48  ;;  %v3331_v60 = vsel %vm151_vm4, %v3315_v59, %v3137_v43  ;;  %v7848_v6 = vld [vmem:[%s8690_s3 + $0x1] ss:$0 sm:$0xff] }
 0x583   :  { %v2605_v44 = vsel %vm157_vm6, %v2603_v36, %v2589_v25 }
 0x584   :  { %5173 = vmatmul.mubr.msk.f32.vlgmr.msra.gmra.mrb[16].mxu0 %vm931_vm7, %v2605_v44 }
 0x585   :  { %v3011_v57 = vpop.permute.xlu1 %3010  ;;  %v2965_v2 = vpop.permute.xlu0 %2964 }
 0x586   :  { %v3285_v10 = vsel %vm142_vm1, %v3269_v1, %v2965_v2  ;;  %v3300_v40 = vsel %vm145_vm2, %v3284_v32, %v3011_v57  ;;  %vm8798_vm1 = vmmov %vm8797_vm0 }
 0x587   :  { %v3316_v5 = vsel %vm148_vm3, %v3300_v40, %v7725_v23 }
 0x589   :  { %v3231_v52 = vpop.permute.xlu1 %3230  ;;  %v3185_v63 = vpop.permute.xlu0 %3184 }
 0x58a   :  { %v3362_v34 = vsel %vm157_vm6, %v3346_v58, %v3231_v52  ;;  %v3347_v50 = vsel %vm154_vm5, %v3331_v60, %v3185_v63  ;;  %v3499_v60 = vadd.f32 %v7652_v7, %v7848_v6  ;;  %v3519_v7 = vadd.f32 %v7745_v33, %v7848_v6 }
 0x58b   :  { %5158 = vmatprep.mubr.msk.f32.mxu1 %vm931_vm7, %v3362_v34 }
 0x58d   :  { %v3233_v11 = vpop.permute.xlu1 %3232  ;;  %v3013_v13 = vpop.permute.xlu0 %3012 }
 0x58e   :  { %v3363_v37 = vsel %vm157_vm6, %v3347_v50, %v3233_v11  ;;  %v3301_v9 = vsel %vm145_vm2, %v3285_v10, %v3013_v13  ;;  %v3494_v50 = vadd.f32 %v7848_v6, %v7657_v29  ;;  %v3514_v29 = vadd.f32 %v7848_v6, %v7747_v30 }
 0x58f   :  { %5159 = vmatmul.mubr.msk.f32.gmra.mrb[14].mxu1 %vm931_vm7, %v3363_v37  ;;  %v3317_v31 = vsel %vm148_vm3, %v3301_v9, %v7722_v45  ;;  %vm8799_vm2 = vcmask 523520  }
 0x590   :  { %vm8800_vm3 = vmmov %vm8799_vm2 }
 0x591   :  { %v3141_v24 = vpop.permute.xlu1 %3140  ;;  %v3139_v15 = vpop.permute.xlu0 %3138 }
 0x592   :  { %v3333_v42 = vsel %vm151_vm4, %v3317_v31, %v3141_v24  ;;  %v3332_v21 = vsel %vm151_vm4, %v3316_v5, %v3139_v15  ;;  %v3509_v24 = vadd.f32 %v7739_v61, %v7848_v6  ;;  %v3504_v15 = vadd.f32 %v7848_v6, %v7741_v12  ;;  %vm8801_vm4 = vmmov %vm8799_vm2 }
 0x593   :  { %v7870_v61 = vadd.f32 %v7754_v55, %v7848_v6 }
 0x595   :  { %v3189_v22 = vpop.permute.xlu1 %3188  ;;  %v3187_v18 = vpop.permute.xlu0 %3186 }
 0x596   :  { %v3349_v35 = vsel %vm154_vm5, %v3333_v42, %v3189_v22  ;;  %v3348_v17 = vsel %vm154_vm5, %v3332_v21, %v3187_v18  ;;  %vm8802_vm5 = vmmov %vm8799_vm2 }
 0x599   :  { %v3237_v54 = vpop.permute.xlu1 %3236  ;;  %v3235_v49 = vpop.permute.xlu0 %3234 }
 0x59a   :  { %v3365_v14 = vsel %vm157_vm6, %v3349_v35, %v3237_v54  ;;  %v3364_v20 = vsel %vm157_vm6, %v3348_v17, %v3235_v49  ;;  %vm8820_vm6 = vmmov %vm8797_vm0 }
 0x59b   :  { %5161 = vmatprep.mubr.msk.f32.mxu1 %vm931_vm7, %v3364_v20 }
 0x59c   :  { %5162 = vmatmul.mubr.msk.f32.gmra.mrb[16].mxu1 %vm931_vm7, %v3365_v14 }
 0x5d4   :  { %v5154_v45 = vpop.f32.mrb[10].mxu1 }
 0x5d5   :  { %v3533_v23 = vpop.f32.mrb[11].mxu1  ;;  %v3539_v18 = vadd.f32 %v5154_v45, %v7848_v6 }
 0x5d6   :  { %v3534_v63 = vadd.f32 %v7848_v6, %v3533_v23 }
 0x5ec   :  { %v5157_v56 = vpop.f32.mrb[12].mxu1 }
 0x5ed   :  { %v3543_v28 = vpop.f32.mrb[13].mxu1  ;;  %v3549_v33 = vadd.f32 %v5157_v56, %v7848_v6 }
 0x5ee   :  { %v3544_v5 = vadd.f32 %v7848_v6, %v3543_v28 }
 0x657   :  { %v5174_v26 = vpop.f32.mrb[16].mxu0 }
 0x658   :  { %v7826_v41 = vadd.f32 %v5174_v26, %v5014_v38  ;;  %v3657_v46 = vpop.f32.mrb[17].mxu0 }
 0x659   :  { %v7828_v3 = vadd.f32 %v5014_v38, %v3657_v46  ;;  %v3524_v46 = vadd.f32 %v7848_v6, %v7756_v4 }
 0x65a   :  { %3976 = vrot.lane.b32.xlu1 %v7826_v41, %s5424_s21  ;;  %v3724_v53 = vrot.slane %v7826_v41, %v8767_v16  ;;  %v3717_v43 = vcombine.high %v7826_v41, %v7826_v41 }
 0x65b   :  { %3974 = vrot.lane.b32.xlu0 %v7828_v3, %s5424_s21  ;;  %v3675_v57 = vrot.slane %v7828_v3, %v8767_v16  ;;  %v3668_v19 = vcombine.high %v7828_v3, %v7828_v3 }
 0x65c   :  { %v3732_v36 = vcombine.high %v3724_v53, %v3724_v53  ;;  %v3740_v44 = vrot.slane %v3724_v53, %v8767_v16  ;;  %v3731_v2 = vrot.slane %v3717_v43, %v8767_v16 }
 0x65d   :  { %v3683_v52 = vcombine.high %v3675_v57, %v3675_v57  ;;  %v3682_v13 = vrot.slane %v3668_v19, %v8767_v16  ;;  %v3691_v1 = vrot.slane %v3675_v57, %v8767_v16 }
 0x65e   :  { %v3754_v47 = vrot.slane %v3732_v36, %v8767_v16  ;;  %v3801_v58 = vrot.slane %v3740_v44, %v5504_v8  ;;  %v3762_v34 = vcombine.high %v3740_v44, %v3740_v44  ;;  %v3733_v59 = vcombine.high %v3731_v2, %v3731_v2 }
 0x65f   :  { %v3705_v40 = vrot.slane %v3683_v52, %v8767_v16  ;;  %v3747_v22 = vrot.slane %v3731_v2, %v8767_v16  ;;  %v3684_v31 = vcombine.high %v3682_v13, %v3682_v13  ;;  %v3698_v55 = vrot.slane %v3682_v13, %v8767_v16 }
 0x660   :  { %v3764_v11 = vcombine.high %v3754_v47, %v3754_v47  ;;  %v3854_v62 = vadd.f32 %v3801_v58, %v3534_v63  ;;  %v3805_v10 = vrot.slane %v3754_v47, %v5504_v8  ;;  %v3809_v12 = vrot.slane %v3762_v34, %v5504_v8 }
 0x661   :  { %v3761_v9 = vrot.slane %v3733_v59, %v8767_v16  ;;  %v3769_v21 = vrot.slane %v3691_v1, %v5504_v8  ;;  %v3713_v17 = vcombine.high %v3691_v1, %v3691_v1  ;;  %v3715_v54 = vcombine.high %v3705_v40, %v3705_v40 }
 0x662   :  { %v5160_v25 = vpop.f32.mrb[14].mxu1  ;;  %v3813_v30 = vrot.slane %v3764_v11, %v5504_v8  ;;  %v7880_v42 = vadd.f32 %v3854_v62, %v7826_v41  ;;  %v3855_v35 = vadd.f32 %v3805_v10, %v3539_v18  ;;  %v3856_v14 = vadd.f32 %v3809_v12, %v3544_v5 }
 0x663   :  { %v3553_v48 = vpop.f32.mrb[15].mxu1  ;;  %v3559_v20 = vadd.f32 %v5160_v25, %v7848_v6  ;;  %v3821_v45 = vrot.slane %v3761_v9, %v5504_v8  ;;  %v3763_v23 = vcombine.high %v3747_v22, %v3747_v22  ;;  %v3712_v28 = vrot.slane %v3684_v31, %v8767_v16 }
 0x664   :  { %8781 = vst [vmem:[#allocation10_spill] sm:$0xff] %v7880_v42  ;;  %v3554_v49 = vadd.f32 %v7848_v6, %v3553_v48  ;;  %v3857_v56 = vadd.f32 %v3813_v30, %v3549_v33  ;;  %v3773_v38 = vrot.slane %v3705_v40, %v5504_v8  ;;  %v3817_v26 = vrot.slane %v3747_v22, %v5504_v8 }
 0x665   :  { %v3846_v53 = vadd.f32 %v3769_v21, %v3494_v50  ;;  %v5025_v48 = vmul.f32 -1.442695, %v7880_v42  ;;  %v7895_v25 = vadd.f32 %v3855_v35, %v7826_v41  ;;  %v3714_v36 = vcombine.high %v3698_v55, %v3698_v55 }
 0x666   :  { %v3777_v44 = vrot.slane %v3713_v17, %v5504_v8  ;;  %v3858_v57 = vadd.f32 %v3817_v26, %v3554_v49  ;;  %v7899_v2 = vadd.f32 %v3856_v14, %v7826_v41  ;;  %v3781_v47 = vrot.slane %v3715_v54, %v5504_v8 }
 0x667   :  { %8782 = vst [vmem:[#allocation11_spill] sm:$0xff] %v7895_v25  ;;  %v3859_v19 = vadd.f32 %v3821_v45, %v3559_v20  ;;  %v3825_v4 = vrot.slane %v3763_v23, %v5504_v8  ;;  %v7904_v58 = vadd.f32 %v3857_v56, %v7826_v41  ;;  %v3785_v52 = vrot.slane %v3698_v55, %v5504_v8 }
 0x668   :  { %8783 = vst [vmem:[#allocation12_spill] sm:$0xff] %v7899_v2  ;;  %v3789_v63 = vrot.slane %v3712_v28, %v5504_v8  ;;  %v3847_v34 = vadd.f32 %v3773_v38, %v3499_v60  ;;  %v7909_v59 = vadd.f32 %v3846_v53, %v7828_v3  ;;  %v3765_v50 = vcombine.high %v3761_v9, %v3761_v9 }
 0x669   :  { %8784 = vst [vmem:[#allocation13_spill] sm:$0xff] %v7904_v58  ;;  %5316 = vpow2.f32 %v5025_v48  ;;  %v3716_v13 = vcombine.high %v3712_v28, %v3712_v28  ;;  %v3848_v62 = vadd.f32 %v3777_v44, %v3504_v15  ;;  %v7912_v1 = vadd.f32 %v3858_v57, %v7826_v41 }
 0x66a   :  { %8785 = vst [vmem:[#allocation8_spill] sm:$0xff] %v7909_v59  ;;  %v3849_v10 = vadd.f32 %v3781_v47, %v3509_v24  ;;  %v7916_v40 = vadd.f32 %v3859_v19, %v7826_v41  ;;  %v5027_v60 = vmul.f32 -1.442695, %v7899_v2  ;;  %v3793_v22 = vrot.slane %v3714_v36, %v5504_v8 }
 0x66b   :  { %8786 = vst [vmem:[#allocation9_spill] sm:$0xff] %v7912_v1  ;;  %v3850_v9 = vadd.f32 %v3785_v52, %v3514_v29  ;;  %v7922_v18 = vadd.f32 %v3847_v34, %v7828_v3  ;;  %v5028_v15 = vmul.f32 -1.442695, %v7904_v58  ;;  %v3851_v33 = vadd.f32 %v3789_v63, %v3519_v7 }
 0x66c   :  { %8787 = vst [vmem:[#allocation2_spill] sm:$0xff] %v7916_v40  ;;  %v3829_v30 = vrot.slane %v3765_v50, %v5504_v8  ;;  %v5017_v31 = vmul.f32 -1.442695, %v7909_v59  ;;  %v5029_v29 = vmul.f32 -1.442695, %v7912_v1  ;;  %v7936_v5 = vadd.f32 %v3849_v10, %v7828_v3 }
 0x66d   :  { %8788 = vst [vmem:[#allocation16_spill] sm:$0xff] %v7922_v18  ;;  %v5030_v7 = vmul.f32 -1.442695, %v7916_v40  ;;  %v3852_v21 = vadd.f32 %v3793_v22, %v3524_v46  ;;  %v7940_v35 = vadd.f32 %v3850_v9, %v7828_v3  ;;  %v5018_v17 = vmul.f32 -1.442695, %v7922_v18 }
 0x66e   :  { %8791 = vst [vmem:[#allocation19_spill] sm:$0xff] %v7936_v5  ;;  %v7944_v54 = vadd.f32 %v3851_v33, %v7828_v3  ;;  %v5020_v56 = vmul.f32 -1.442695, %v7936_v5 }
 0x66f   :  { %v5163_v37 = vpop.f32.mrb[16].mxu1  ;;  %8792 = vst [vmem:[#allocation20_spill] sm:$0xff] %v7940_v35  ;;  %v7954_v28 = vadd.f32 %v3852_v21, %v7828_v3  ;;  %v5021_v38 = vmul.f32 -1.442695, %v7940_v35 }
 0x670   :  { %v3563_v32 = vpop.f32.mrb[17].mxu1  ;;  %v3569_v12 = vadd.f32 %v5163_v37, %v7848_v6  ;;  %v7932_v37 = vadd.f32 %v3848_v62, %v7828_v3  ;;  %8793 = vst [vmem:[#allocation21_spill] sm:$0xff] %v7944_v54  ;;  %v5022_v26 = vmul.f32 -1.442695, %v7944_v54 }
 0x671   :  { %v3564_v43 = vadd.f32 %v7848_v6, %v3563_v32  ;;  %v5026_v32 = vmul.f32 -1.442695, %v7895_v25  ;;  %v3797_v6 = vrot.slane %v3716_v13, %v5504_v8  ;;  %8795 = vst [vmem:[#allocation23_spill] sm:$0xff] %v7954_v28  ;;  %v5023_v48 = vmul.f32 -1.442695, %v7954_v28 }
 0x672   :  { %8790 = vst [vmem:[#allocation18_spill] sm:$0xff] %v7932_v37  ;;  %v3861_v55 = vadd.f32 %v3829_v30, %v3569_v12  ;;  %v5019_v20 = vmul.f32 -1.442695, %v7932_v37 }
 0x673   :  { %v3860_v11 = vadd.f32 %v3825_v4, %v3564_v43  ;;  %5318 = vpow2.f32 %v5026_v32  ;;  %v3853_v14 = vadd.f32 %v3797_v6, %v7870_v61  ;;  %v5317_v45 = vpop.eup %5316 }
 0x674   :  { %5320 = vpow2.f32 %v5027_v60  ;;  %v7950_v23 = vadd.f32 %v3861_v55, %v7826_v41  ;;  %v3934_v46 = vadd.f32 1.0, %v5317_v45 }
 0x675   :  { %v7927_v24 = vadd.f32 %v3860_v11, %v7826_v41  ;;  %5322 = vpow2.f32 %v5028_v15  ;;  %v7959_v61 = vadd.f32 %v3853_v14, %v7828_v3 }
 0x676   :  { %5324 = vpow2.f32 %v5017_v31  ;;  %8794 = vst [vmem:[#allocation22_spill] sm:$0xff] %v7950_v23  ;;  %v5032_v53 = vmul.f32 -1.442695, %v7950_v23 }
 0x677   :  { %8789 = vst [vmem:[#allocation17_spill] sm:$0xff] %v7927_v24  ;;  %v5031_v49 = vmul.f32 -1.442695, %v7927_v24  ;;  %5326 = vpow2.f32 %v5029_v29  ;;  %8796 = vst [vmem:[#allocation24_spill] sm:$0xff] %v7959_v61  ;;  %v5024_v57 = vmul.f32 -1.442695, %v7959_v61 }
 0x678   :  { %5328 = vpow2.f32 %v5030_v7 }
 0x679   :  { %5330 = vpow2.f32 %v5018_v17 }
 0x67a   :  { %5332 = vpow2.f32 %v5031_v49 }
 0x67b   :  { %5334 = vpow2.f32 %v5019_v20 }
 0x67c   :  { %5336 = vpow2.f32 %v5020_v56 }
 0x67d   :  { %v5319_v43 = vpop.eup %5318  ;;  %5338 = vpow2.f32 %v5021_v38 }
 0x67e   :  { %v5321_v36 = vpop.eup %5320  ;;  %5340 = vpow2.f32 %v5022_v26  ;;  %v3935_v19 = vadd.f32 1.0, %v5319_v43 }
 0x67f   :  { %v5323_v44 = vpop.eup %5322  ;;  %5342 = vrcp.f32 %v3934_v46  ;;  %v3936_v63 = vadd.f32 1.0, %v5321_v36 }
 0x680   :  { %v5325_v47 = vpop.eup %5324  ;;  %5344 = vpow2.f32 %v5032_v53  ;;  %v3937_v50 = vadd.f32 1.0, %v5323_v44 }
 0x681   :  { %v5327_v4 = vpop.eup %5326  ;;  %5346 = vpow2.f32 %v5023_v48  ;;  %v3926_v12 = vadd.f32 1.0, %v5325_v47 }
 0x682   :  { %v5329_v52 = vpop.eup %5328  ;;  %5348 = vpow2.f32 %v5024_v57  ;;  %v3938_v13 = vadd.f32 1.0, %v5327_v4 }
 0x683   :  { %v5331_v34 = vpop.eup %5330  ;;  %5350 = vrcp.f32 %v3935_v19  ;;  %v3939_v32 = vadd.f32 1.0, %v5329_v52 }
 0x684   :  { %v5333_v11 = vpop.eup %5332  ;;  %5352 = vrcp.f32 %v3936_v63  ;;  %v3927_v15 = vadd.f32 1.0, %v5331_v34 }
 0x685   :  { %v5335_v62 = vpop.eup %5334  ;;  %5354 = vrcp.f32 %v3937_v50  ;;  %v3940_v22 = vadd.f32 1.0, %v5333_v11 }
 0x686   :  { %v5337_v10 = vpop.eup %5336  ;;  %5356 = vrcp.f32 %v3938_v13  ;;  %v3928_v30 = vadd.f32 1.0, %v5335_v62 }
 0x687   :  { %v5339_v60 = vpop.eup %5338  ;;  %5358 = vrcp.f32 %v3939_v32  ;;  %v3929_v6 = vadd.f32 1.0, %v5337_v10 }
 0x688   :  { %v5341_v9 = vpop.eup %5340  ;;  %5360 = vrcp.f32 %v3926_v12  ;;  %v3930_v55 = vadd.f32 1.0, %v5339_v60 }
 0x689   :  { %v7964_v33 = vpop.eup %5342  ;;  %5362 = vrcp.f32 %v3940_v22  ;;  %v3931_v7 = vadd.f32 1.0, %v5341_v9 }
 0x68a   :  { %v5345_v31 = vpop.eup %5344  ;;  %5364 = vrcp.f32 %v3927_v15  ;;  %v4164_v14 = vsel %vm931_vm7, %v7964_v33, 0.0 }
 0x68b   :  { %v5347_v29 = vpop.eup %5346  ;;  %5366 = vrcp.f32 %v3928_v30  ;;  %v3941_v17 = vadd.f32 1.0, %v5345_v31  ;;  %v4165_v26 = vrot.slane %v4164_v14, 4 }
 0x68c   :  { %v5349_v21 = vpop.eup %5348  ;;  %5368 = vrcp.f32 %v3929_v6  ;;  %v3932_v20 = vadd.f32 1.0, %v5347_v29 }
 0x68d   :  { %v7966_v49 = vpop.eup %5350  ;;  %5370 = vrcp.f32 %v3930_v55  ;;  %v3933_v56 = vadd.f32 1.0, %v5349_v21  ;;  %v4166_v19 = vadd.f32 %v4165_v26, %v4164_v14 }
 0x68e   :  { %v7970_v45 = vpop.eup %5352  ;;  %5372 = vrcp.f32 %v3931_v7  ;;  %v4171_v46 = vsel %vm931_vm7, %v7966_v49, 0.0 }
 0x68f   :  { %v7972_v38 = vpop.eup %5354  ;;  %5374 = vrcp.f32 %v3941_v17  ;;  %v4178_v48 = vsel %vm931_vm7, %v7970_v45, 0.0  ;;  %v4172_v44 = vrot.slane %v4171_v46, 4  ;;  %v4167_v22 = vrot.slane %v4166_v19, 2 }
 0x690   :  { %v7976_v53 = vpop.eup %5356  ;;  %5376 = vrcp.f32 %v3932_v20  ;;  %v4185_v57 = vsel %vm931_vm7, %v7972_v38, 0.0  ;;  %v4179_v63 = vrot.slane %v4178_v48, 4 }
 0x691   :  { %v7978_v43 = vpop.eup %5358  ;;  %5378 = vrcp.f32 %v3933_v56  ;;  %v4192_v4 = vsel %vm931_vm7, %v7976_v53, 0.0  ;;  %v4186_v11 = vrot.slane %v4185_v57, 4  ;;  %v4173_v32 = vadd.f32 %v4172_v44, %v4171_v46 }
 0x692   :  { %v7982_v36 = vpop.eup %5360  ;;  %v4199_v34 = vsel %vm931_vm7, %v7978_v43, 0.0  ;;  %v4193_v10 = vrot.slane %v4192_v4, 4  ;;  %v4180_v31 = vadd.f32 %v4179_v63, %v4178_v48  ;;  %v4168_v48 = vadd.f32 %v4167_v22, %v4166_v19 }
 0x693   :  { %v7986_v47 = vpop.eup %5362  ;;  %v4108_v13 = vsel %vm931_vm7, %v7982_v36, 0.0  ;;  %v4200_v9 = vrot.slane %v4199_v34, 4  ;;  %v4187_v7 = vadd.f32 %v4186_v11, %v4185_v57  ;;  %v4174_v20 = vrot.slane %v4173_v32, 2 }
 0x694   :  { %v7990_v52 = vpop.eup %5364  ;;  %v4206_v12 = vsel %vm931_vm7, %v7986_v47, 0.0  ;;  %v4109_v6 = vrot.slane %v4108_v13, 4  ;;  %v4194_v56 = vadd.f32 %v4193_v10, %v4192_v4  ;;  %v4181_v57 = vrot.slane %v4180_v31, 2 }
 0x695   :  { %v7994_v50 = vpop.eup %5366  ;;  %v4115_v15 = vsel %vm931_vm7, %v7990_v52, 0.0  ;;  %v4207_v21 = vrot.slane %v4206_v12, 4  ;;  %v4201_v44 = vadd.f32 %v4200_v9, %v4199_v34  ;;  %v4188_v8 = vrot.slane %v4187_v7, 2 }
 0x696   :  { %v7998_v62 = vpop.eup %5368  ;;  %v4122_v29 = vsel %vm931_vm7, %v7994_v50, 0.0  ;;  %v4116_v26 = vrot.slane %v4115_v15, 4  ;;  %v4110_v39 = vadd.f32 %v4109_v6, %v4108_v13  ;;  %v4175_v19 = vadd.f32 %v4174_v20, %v4173_v32 }
 0x697   :  { %v8002_v60 = vpop.eup %5370  ;;  %v4129_v17 = vsel %vm931_vm7, %v7998_v62, 0.0  ;;  %v4123_v63 = vrot.slane %v4122_v29, 4  ;;  %v4208_v4 = vadd.f32 %v4207_v21, %v4206_v12  ;;  %v4195_v34 = vrot.slane %v4194_v56, 2 }
 0x698   :  { %v8006_v30 = vpop.eup %5372  ;;  %v4136_v46 = vsel %vm931_vm7, %v8002_v60, 0.0  ;;  %v4130_v27 = vrot.slane %v4129_v17, 4  ;;  %v4117_v22 = vadd.f32 %v4116_v26, %v4115_v15  ;;  %v4202_v24 = vrot.slane %v4201_v44, 2 }
 0x699   :  { %v8010_v55 = vpop.eup %5374  ;;  %v4143_v51 = vsel %vm931_vm7, %v8006_v30, 0.0  ;;  %v4137_v10 = vrot.slane %v4136_v46, 4  ;;  %v4124_v1 = vadd.f32 %v4123_v63, %v4122_v29  ;;  %v4182_v2 = vadd.f32 %v4181_v57, %v4180_v31 }
 0x69a   :  { %v8014_v14 = vpop.eup %5376  ;;  %v4213_v11 = vsel %vm931_vm7, %v8010_v55, 0.0  ;;  %v4144_v9 = vrot.slane %v4143_v51, 4  ;;  %v4111_v25 = vrot.slane %v4110_v39, 2  ;;  %v4131_v13 = vadd.f32 %v4130_v27, %v4129_v17 }
 0x69b   :  { %v8020_v0 = vpop.eup %5378  ;;  %v4150_v23 = vsel %vm931_vm7, %v8014_v14, 0.0  ;;  %v4214_v40 = vrot.slane %v4213_v11, 4  ;;  %v4169_v42 = vrot.slane %v4168_v48, 1  ;;  %v4189_v12 = vadd.f32 %v4188_v8, %v4187_v7 }
 0x69c   :  { %v4157_v58 = vsel %vm931_vm7, %v8020_v0, 0.0  ;;  %v4151_v6 = vrot.slane %v4150_v23, 4  ;;  %v4209_v21 = vrot.slane %v4208_v4, 2  ;;  %v4138_v61 = vadd.f32 %v4137_v10, %v4136_v46 }
 0x69d   :  { %v4196_v28 = vadd.f32 %v4195_v34, %v4194_v56  ;;  %v4118_v54 = vrot.slane %v4117_v22, 2  ;;  %v4145_v32 = vadd.f32 %v4144_v9, %v4143_v51  ;;  %v4158_v20 = vrot.slane %v4157_v58, 4 }
 0x69e   :  { %v4176_v15 = vrot.slane %v4175_v19, 1  ;;  %v4203_v26 = vadd.f32 %v4202_v24, %v4201_v44  ;;  %v4215_v35 = vadd.f32 %v4214_v40, %v4213_v11  ;;  %v4125_v5 = vrot.slane %v4124_v1, 2 }
 0x69f   :  { %v4183_v29 = vrot.slane %v4182_v2, 1  ;;  %v4112_v63 = vadd.f32 %v4111_v25, %v4110_v39  ;;  %v4132_v37 = vrot.slane %v4131_v13, 2  ;;  %v4152_v59 = vadd.f32 %v4151_v6, %v4150_v23 }
 0x6a0   :  { %v4170_v31 = vadd.f32 %v4169_v42, %v4168_v48  ;;  %v4190_v57 = vrot.slane %v4189_v12, 1  ;;  %v4210_v27 = vadd.f32 %v4209_v21, %v4208_v4  ;;  %v4139_v17 = vrot.slane %v4138_v61, 2 }
 0x6a1   :  { %v4197_v18 = vrot.slane %v4196_v28, 1  ;;  %v4119_v8 = vadd.f32 %v4118_v54, %v4117_v22  ;;  %v4146_v7 = vrot.slane %v4145_v32, 2  ;;  %v4159_v46 = vadd.f32 %v4158_v20, %v4157_v58 }
 0x6a2   :  { %v4177_v56 = vadd.f32 %v4176_v15, %v4175_v19  ;;  %v4204_v10 = vrot.slane %v4203_v26, 1  ;;  %v4216_v51 = vrot.slane %v4215_v35, 2  ;;  %v4126_v34 = vadd.f32 %v4125_v5, %v4124_v1 }
 0x6a3   :  { %v4184_v9 = vadd.f32 %v4183_v29, %v4182_v2  ;;  %v4113_v24 = vrot.slane %v4112_v63, 1  ;;  %v4133_v40 = vadd.f32 %v4132_v37, %v4131_v13  ;;  %v4153_v44 = vrot.slane %v4152_v59, 2 }
 0x6a4   :  { %v4191_v11 = vadd.f32 %v4190_v57, %v4189_v12  ;;  %v4211_v39 = vrot.slane %v4210_v27, 1  ;;  %v4228_v25 = vadd.f32 1e-20, %v4170_v31  ;;  %v4140_v23 = vadd.f32 %v4139_v17, %v4138_v61 }
 0x6a5   :  { %v4198_v42 = vadd.f32 %v4197_v18, %v4196_v28  ;;  %v4120_v48 = vrot.slane %v4119_v8, 1  ;;  %v4147_v4 = vadd.f32 %v4146_v7, %v4145_v32  ;;  %v4160_v6 = vrot.slane %v4159_v46, 2 }
 0x6a6   :  { %v4205_v21 = vadd.f32 %v4204_v10, %v4203_v26  ;;  %v4217_v54 = vadd.f32 %v4216_v51, %v4215_v35  ;;  %v4229_v22 = vadd.f32 1e-20, %v4177_v56  ;;  %v4127_v58 = vrot.slane %v4126_v34, 1 }
 0x6a7   :  { %v4230_v19 = vadd.f32 1e-20, %v4184_v9  ;;  %v4114_v20 = vadd.f32 %v4113_v24, %v4112_v63  ;;  %v4134_v15 = vrot.slane %v4133_v40, 1  ;;  %v4154_v1 = vadd.f32 %v4153_v44, %v4152_v59 }
 0x6a8   :  { %v4212_v2 = vadd.f32 %v4211_v39, %v4210_v27  ;;  %v4231_v5 = vadd.f32 1e-20, %v4191_v11  ;;  %5380 = vrcp.f32 %v4228_v25  ;;  %v4141_v37 = vrot.slane %v4140_v23, 1 }
 0x6a9   :  { %v4232_v13 = vadd.f32 1e-20, %v4198_v42  ;;  %v4121_v12 = vadd.f32 %v4120_v48, %v4119_v8  ;;  %v4148_v29 = vrot.slane %v4147_v4, 1  ;;  %v4161_v61 = vadd.f32 %v4160_v6, %v4159_v46 }
 0x6aa   :  { %v4218_v18 = vrot.slane %v4217_v54, 1  ;;  %v4233_v28 = vadd.f32 1e-20, %v4205_v21  ;;  %5382 = vrcp.f32 %v4229_v22  ;;  %v4128_v32 = vadd.f32 %v4127_v58, %v4126_v34 }
 0x6ab   :  { %5384 = vrcp.f32 %v4230_v19  ;;  %v4135_v35 = vadd.f32 %v4134_v15, %v4133_v40  ;;  %v4155_v26 = vrot.slane %v4154_v1, 1  ;;  %v4220_v31 = vadd.f32 1e-20, %v4114_v20 }
 0x6ac   :  { %v4234_v57 = vadd.f32 1e-20, %v4212_v2  ;;  %5386 = vrcp.f32 %v4231_v5  ;;  %v4142_v63 = vadd.f32 %v4141_v37, %v4140_v23  ;;  %v4149_v59 = vadd.f32 %v4148_v29, %v4147_v4 }
 0x6ad   :  { %5388 = vrcp.f32 %v4232_v13  ;;  %v4162_v27 = vrot.slane %v4161_v61, 1  ;;  %v4221_v17 = vadd.f32 1e-20, %v4121_v12  ;;  %v4219_v7 = vadd.f32 %v4218_v18, %v4217_v54 }
 0x6ae   :  { %5390 = vrcp.f32 %v4233_v28  ;;  %v4222_v8 = vadd.f32 1e-20, %v4128_v32  ;;  %v4156_v56 = vadd.f32 %v4155_v26, %v4154_v1  ;;  %v4223_v46 = vadd.f32 1e-20, %v4135_v35 }
 0x6af   :  { %5392 = vrcp.f32 %v4220_v31  ;;  %v4224_v10 = vadd.f32 1e-20, %v4142_v63  ;;  %v4163_v51 = vadd.f32 %v4162_v27, %v4161_v61  ;;  %v4225_v34 = vadd.f32 1e-20, %v4149_v59 }
 0x6b0   :  { %5394 = vrcp.f32 %v4234_v57  ;;  %v4235_v24 = vadd.f32 1e-20, %v4219_v7  ;;  %v4226_v40 = vadd.f32 1e-20, %v4156_v56 }
 0x6b1   :  { %5396 = vrcp.f32 %v4221_v17  ;;  %v4227_v39 = vadd.f32 1e-20, %v4163_v51 }
 0x6b2   :  { %v8028_v9 = vpop.eup %5380  ;;  %5398 = vrcp.f32 %v4222_v8 }
 0x6b3   :  { %5400 = vrcp.f32 %v4223_v46 }
 0x6b4   :  { %v8030_v44 = vpop.eup %5382  ;;  %5402 = vrcp.f32 %v4224_v10 }
 0x6b5   :  { %v8032_v11 = vpop.eup %5384  ;;  %5404 = vrcp.f32 %v4225_v34 }
 0x6b6   :  { %v8034_v25 = vpop.eup %5386  ;;  %5406 = vrcp.f32 %v4235_v24 }
 0x6b7   :  { %v8036_v23 = vpop.eup %5388  ;;  %5408 = vrcp.f32 %v4226_v40 }
 0x6b8   :  { %v8038_v48 = vpop.eup %5390  ;;  %5410 = vrcp.f32 %v4227_v39 }
 0x6b9   :  { %v8046_v58 = vpop.eup %5392 }
 0x6cc   :  { %v3977_v42 = vpop.permute.xlu1 %3976 }
 0x6cd   :  { %v3988_v4 = vmul.f32 %v7964_v33, %v3977_v42  ;;  %v3989_v6 = vmul.f32 %v7966_v49, %v3977_v42  ;;  %v3990_v21 = vmul.f32 %v7970_v45, %v3977_v42  ;;  %v3991_v54 = vmul.f32 %v7972_v38, %v3977_v42  ;;  %v8044_v22 = vpop.permute.xlu0 %3974  ;;  %v8053_v33 = vpop.eup %5394 }
 0x6ce   :  { %v3992_v19 = vmul.f32 %v7976_v53, %v3977_v42  ;;  %v3980_v20 = vmul.f32 %v7982_v36, %v8044_v22  ;;  %v3981_v15 = vmul.f32 %v7990_v52, %v8044_v22  ;;  %v8059_v2 = vpop.eup %5396  ;;  %v3993_v52 = vmul.f32 %v7978_v43, %v3977_v42 }
 0x6cf   :  { %v4052_v49 = vsel %vm931_vm7, %v3988_v4, 0.0  ;;  %v4059_v45 = vsel %vm931_vm7, %v3989_v6, 0.0  ;;  %v4066_v38 = vsel %vm931_vm7, %v3990_v21, 0.0  ;;  %v4073_v1 = vsel %vm931_vm7, %v3991_v54, 0.0  ;;  %v8061_v13 = vpop.eup %5398 }
 0x6d0   :  { %v4053_v53 = vrot.slane %v4052_v49, 4  ;;  %v4060_v5 = vrot.slane %v4059_v45, 4  ;;  %v4067_v37 = vrot.slane %v4066_v38, 4  ;;  %v4074_v36 = vrot.slane %v4073_v1, 4  ;;  %v8072_v18 = vpop.eup %5400 }
 0x6d1   :  { %v3982_v12 = vmul.f32 %v7994_v50, %v8044_v22  ;;  %v3983_v29 = vmul.f32 %v7998_v62, %v8044_v22  ;;  %v8070_v61 = vmul.f32 %v8002_v60, %v8044_v22  ;;  %v8074_v31 = vpop.eup %5402  ;;  %v3996_v43 = vsel %vm931_vm7, %v3980_v20, 0.0 }
 0x6d2   :  { %v4054_v28 = vadd.f32 %v4053_v53, %v4052_v49  ;;  %v4061_v32 = vadd.f32 %v4060_v5, %v4059_v45  ;;  %v4068_v35 = vadd.f32 %v4067_v37, %v4066_v38  ;;  %v4075_v26 = vadd.f32 %v4074_v36, %v4073_v1  ;;  %v8080_v63 = vpop.eup %5404 }
 0x6d3   :  { %v4003_v57 = vsel %vm931_vm7, %v3981_v15, 0.0  ;;  %v4010_v50 = vsel %vm931_vm7, %v3982_v12, 0.0  ;;  %v4017_v62 = vsel %vm931_vm7, %v3983_v29, 0.0  ;;  %v3997_v17 = vrot.slane %v3996_v43, 4  ;;  %v8082_v7 = vpop.eup %5406 }
 0x6d4   :  { %v4055_v60 = vrot.slane %v4054_v28, 2  ;;  %v4062_v59 = vrot.slane %v4061_v32, 2  ;;  %v4069_v27 = vrot.slane %v4068_v35, 2  ;;  %v8086_v8 = vmul.f32 %v8006_v30, %v8044_v22  ;;  %v8088_v51 = vpop.eup %5408 }
 0x6d5   :  { %v4004_v56 = vrot.slane %v4003_v57, 4  ;;  %v4011_v46 = vrot.slane %v4010_v50, 4  ;;  %v4018_v10 = vrot.slane %v4017_v62, 4  ;;  %v3998_v40 = vadd.f32 %v3997_v17, %v3996_v43  ;;  %v8092_v20 = vpop.eup %5410 }
 0x6d6   :  { %v4056_v34 = vadd.f32 %v4055_v60, %v4054_v28  ;;  %v4063_v24 = vadd.f32 %v4062_v59, %v4061_v32  ;;  %v3994_v39 = vmul.f32 %v7986_v47, %v3977_v42  ;;  %v3995_v21 = vmul.f32 %v8010_v55, %v3977_v42 }
 0x6d7   :  { %v4005_v4 = vadd.f32 %v4004_v56, %v4003_v57  ;;  %v4012_v6 = vadd.f32 %v4011_v46, %v4010_v50  ;;  %v4070_v54 = vadd.f32 %v4069_v27, %v4068_v35  ;;  %v3999_v15 = vrot.slane %v3998_v40, 2 }
 0x6d8   :  { %v4057_v30 = vrot.slane %v4056_v34, 1  ;;  %v4064_v49 = vrot.slane %v4063_v24, 1  ;;  %v4076_v45 = vrot.slane %v4075_v26, 2  ;;  %v4019_v1 = vadd.f32 %v4018_v10, %v4017_v62 }
 0x6d9   :  { %v4006_v38 = vrot.slane %v4005_v4, 2  ;;  %v4071_v53 = vrot.slane %v4070_v54, 1  ;;  %v4080_v5 = vsel %vm931_vm7, %v3992_v19, 0.0  ;;  %v4000_v37 = vadd.f32 %v3999_v15, %v3998_v40 }
 0x6da   :  { %v4058_v36 = vadd.f32 %v4057_v30, %v4056_v34  ;;  %v4065_v12 = vadd.f32 %v4064_v49, %v4063_v24  ;;  %v4077_v47 = vadd.f32 %v4076_v45, %v4075_v26  ;;  %v4081_v32 = vrot.slane %v4080_v5, 4 }
 0x6db   :  { %v4007_v29 = vadd.f32 %v4006_v38, %v4005_v4  ;;  %v4072_v28 = vadd.f32 %v4071_v53, %v4070_v54  ;;  %v4087_v55 = vsel %vm931_vm7, %v3993_v52, 0.0  ;;  %v4094_v43 = vsel %vm931_vm7, %v3994_v39, 0.0 }
 0x6dc   :  { %v4078_v42 = vrot.slane %v4077_v47, 1  ;;  %v4088_v35 = vrot.slane %v4087_v55, 4  ;;  %v4101_v57 = vsel %vm931_vm7, %v3995_v21, 0.0  ;;  %v4082_v50 = vadd.f32 %v4081_v32, %v4080_v5 }
 0x6dd   :  { %v4095_v62 = vrot.slane %v4094_v43, 4  ;;  %v4102_v60 = vrot.slane %v4101_v57, 4  ;;  %v4260_v19 = vmul.f32 %v8028_v9, %v4058_v36  ;;  %v4261_v26 = vmul.f32 %v8030_v44, %v4065_v12 }
 0x6de   :  { %v4079_v59 = vadd.f32 %v4078_v42, %v4077_v47  ;;  %v4089_v27 = vadd.f32 %v4088_v35, %v4087_v55  ;;  %v4262_v17 = vmul.f32 %v8032_v11, %v4072_v28  ;;  %v4013_v56 = vrot.slane %v4012_v6, 2 }
 0x6df   :  { %v4083_v46 = vrot.slane %v4082_v50, 2  ;;  %v4096_v52 = vadd.f32 %v4095_v62, %v4094_v43  ;;  %v4103_v10 = vadd.f32 %v4102_v60, %v4101_v57  ;;  %v4291_v40 = vsel %vm1835_vm8, %v4261_v26, %v4260_v19 }
 0x6e0   :  { %v4090_v34 = vrot.slane %v4089_v27, 2  ;;  %v4263_v24 = vmul.f32 %v8034_v25, %v4079_v59  ;;  %v3986_v39 = vmul.f32 %v8014_v14, %v8044_v22  ;;  %v4292_v54 = vsel %vm1837_vm9, %v4262_v17, %v4291_v40 }
 0x6e1   :  { %v4084_v4 = vadd.f32 %v4083_v46, %v4082_v50  ;;  %v4097_v9 = vrot.slane %v4096_v52, 2  ;;  %v4104_v21 = vrot.slane %v4103_v10, 2  ;;  %v3987_v11 = vmul.f32 %v8020_v0, %v8044_v22 }
 0x6e2   :  { %v4091_v44 = vadd.f32 %v4090_v34, %v4089_v27  ;;  %v4001_v15 = vrot.slane %v4000_v37, 1  ;;  %v4008_v30 = vrot.slane %v4007_v29, 1  ;;  %v4014_v25 = vadd.f32 %v4013_v56, %v4012_v6 }
 0x6e3   :  { %v4085_v49 = vrot.slane %v4084_v4, 1  ;;  %v4098_v45 = vadd.f32 %v4097_v9, %v4096_v52  ;;  %v4105_v38 = vadd.f32 %v4104_v21, %v4103_v10  ;;  %v4293_v5 = vsel %vm1839_vm10, %v4263_v24, %v4292_v54 }
 0x6e4   :  { %v4092_v53 = vrot.slane %v4091_v44, 1  ;;  %v4002_v36 = vadd.f32 %v4001_v15, %v4000_v37  ;;  %v4020_v14 = vrot.slane %v4019_v1, 2  ;;  %v4015_v32 = vrot.slane %v4014_v25, 1 }
 0x6e5   :  { %v4086_v12 = vadd.f32 %v4085_v49, %v4084_v4  ;;  %v4099_v47 = vrot.slane %v4098_v45, 1  ;;  %v4106_v28 = vrot.slane %v4105_v38, 1  ;;  %v4024_v0 = vsel %vm931_vm7, %v8070_v61, 0.0 }
 0x6e6   :  { %v4093_v55 = vadd.f32 %v4092_v53, %v4091_v44  ;;  %v4021_v42 = vadd.f32 %v4020_v14, %v4019_v1  ;;  %v4031_v22 = vsel %vm931_vm7, %v8086_v8, 0.0  ;;  %v4009_v57 = vadd.f32 %v4008_v30, %v4007_v29 }
 0x6e7   :  { %v4100_v35 = vadd.f32 %v4099_v47, %v4098_v45  ;;  %v4107_v43 = vadd.f32 %v4106_v28, %v4105_v38  ;;  %v4264_v6 = vmul.f32 %v8036_v23, %v4086_v12  ;;  %v4016_v50 = vadd.f32 %v4015_v32, %v4014_v25 }
 0x6e8   :  { %v4265_v37 = vmul.f32 %v8038_v48, %v4093_v55  ;;  %v4025_v62 = vrot.slane %v4024_v0, 4  ;;  %v4032_v60 = vrot.slane %v4031_v22, 4  ;;  %v4022_v59 = vrot.slane %v4021_v42, 1 }
 0x6e9   :  { %v4266_v19 = vmul.f32 %v8053_v33, %v4100_v35  ;;  %v4294_v1 = vsel %vm1841_vm11, %v4264_v6, %v4293_v5  ;;  %v4038_v61 = vsel %vm931_vm7, %v3986_v39, 0.0  ;;  %v4267_v27 = vmul.f32 %v8082_v7, %v4107_v43 }
 0x6ea   :  { %v4295_v8 = vsel %vm1843_vm12, %v4265_v37, %v4294_v1  ;;  %v4026_v26 = vadd.f32 %v4025_v62, %v4024_v0  ;;  %v4033_v17 = vadd.f32 %v4032_v60, %v4031_v22  ;;  %v4039_v29 = vrot.slane %v4038_v61, 4 }
 0x6eb   :  { %v4296_v23 = vsel %vm1845_vm13, %v4266_v19, %v4295_v8  ;;  %v4045_v48 = vsel %vm931_vm7, %v3987_v11, 0.0  ;;  %v4252_v56 = vmul.f32 %v8046_v58, %v4002_v36  ;;  %v4023_v34 = vadd.f32 %v4022_v59, %v4021_v42 }
 0x6ec   :  { %v4297_v33 = vsel %vm8797_vm0, %v4267_v27, %v4296_v23  ;;  %v4027_v46 = vrot.slane %v4026_v26, 2  ;;  %v4034_v52 = vrot.slane %v4033_v17, 2  ;;  %v4046_v10 = vrot.slane %v4045_v48, 4 }
 0x6ed   :  { %4300 = vrot.lane.b32.xlu1 %v4297_v33, %s5426_s23  ;;  %v4040_v7 = vadd.f32 %v4039_v29, %v4038_v61  ;;  %v4253_v24 = vmul.f32 %v8059_v2, %v4009_v57  ;;  %v4254_v40 = vmul.f32 %v8061_v13, %v4016_v50  ;;  %v4255_v49 = vmul.f32 %v8072_v18, %v4023_v34 }
 0x6ee   :  { %v4028_v39 = vadd.f32 %v4027_v46, %v4026_v26  ;;  %v4035_v4 = vadd.f32 %v4034_v52, %v4033_v17  ;;  %v4047_v9 = vadd.f32 %v4046_v10, %v4045_v48 }
 0x6ef   :  { %v4041_v21 = vrot.slane %v4040_v7, 2  ;;  %v4284_v54 = vsel %vm1835_vm8, %v4253_v24, %v4252_v56 }
 0x6f0   :  { %v4029_v58 = vrot.slane %v4028_v39, 1  ;;  %v4036_v44 = vrot.slane %v4035_v4, 1  ;;  %v4048_v11 = vrot.slane %v4047_v9, 2  ;;  %v4285_v15 = vsel %vm1837_vm9, %v4254_v40, %v4284_v54 }
 0x6f1   :  { %v4042_v30 = vadd.f32 %v4041_v21, %v4040_v7  ;;  %v4286_v13 = vsel %vm1839_vm10, %v4255_v49, %v4285_v15 }
 0x6f2   :  { %v4030_v45 = vadd.f32 %v4029_v58, %v4028_v39  ;;  %v4037_v38 = vadd.f32 %v4036_v44, %v4035_v4  ;;  %v4049_v25 = vadd.f32 %v4048_v11, %v4047_v9 }
 0x6f3   :  { %v4043_v2 = vrot.slane %v4042_v30, 1 }
 0x6f4   :  { %v4050_v53 = vrot.slane %v4049_v25, 1  ;;  %v4256_v5 = vmul.f32 %v8074_v31, %v4030_v45  ;;  %v4257_v14 = vmul.f32 %v8080_v63, %v4037_v38 }
 0x6f5   :  { %v4044_v36 = vadd.f32 %v4043_v2, %v4042_v30 }
 0x6f6   :  { %v4051_v12 = vadd.f32 %v4050_v53, %v4049_v25  ;;  %v4287_v47 = vsel %vm1841_vm11, %v4256_v5, %v4286_v13 }
 0x6f7   :  { %v4258_v28 = vmul.f32 %v8088_v51, %v4044_v36  ;;  %v4288_v32 = vsel %vm1843_vm12, %v4257_v14, %v4287_v47  ;;  %v8803_v36 = vld [vmem:[#allocation16_spill] sm:$0xff] }
 0x6f8   :  { %v4259_v18 = vmul.f32 %v8092_v20, %v4051_v12  ;;  %v4307_v14 = vsel %vm931_vm7, %v8803_v36, 0.0  ;;  %v4345_v12 = vmul.f32 %v8803_v36, %v8803_v36  ;;  %v8804_v47 = vld [vmem:[#allocation8_spill] sm:$0xff] }
 0x6f9   :  { %v4289_v55 = vsel %vm1845_vm13, %v4258_v28, %v4288_v32  ;;  %v4306_v28 = vsel %vm931_vm7, %v8804_v47, 0.0  ;;  %v4344_v32 = vmul.f32 %v8804_v47, %v8804_v47 }
 0x6fa   :  { %v4290_v42 = vsel %vm8798_vm1, %v4259_v18, %v4289_v55  ;;  %v4308_v18 = vadd.f32 %v4307_v14, %v4306_v28  ;;  %v4361_v55 = vsel %vm931_vm7, %v4345_v12, 0.0  ;;  %v8813_v28 = vld [vmem:[#allocation12_spill] sm:$0xff]  ;;  %vm8821_vm1 = vmmov %vm8797_vm0 }
 0x6fb   :  { %4298 = vrot.lane.b32.xlu0 %v4290_v42, %s5426_s23  ;;  %v8805_v42 = vld [vmem:[#allocation18_spill] sm:$0xff] }
 0x75f   :  { %v4301_v0 = vpop.permute.xlu1 %4300 }
 0x760   :  { %v4305_v31 = vadd.f32 %v4301_v0, %v7826_v41  ;;  %v4309_v0 = vsel %vm931_vm7, %v8805_v42, 0.0 }
 0x762   :  { %v4420_v22 = vmul.f32 %v4305_v31, %v4305_v31  ;;  %v4410_v35 = vsel %vm8799_vm2, %v4305_v31, 0.0  ;;  %v4838_v43 = vrot.slane %v4305_v31, 7  ;;  %v4859_v6 = vrot.slane %v4305_v31, 3  ;;  %vm8822_vm2 = vmmov %vm8797_vm0 }
 0x763   :  { %v4869_v57 = vrot.slane %v4305_v31, 5  ;;  %v4875_v37 = vrot.slane %v4305_v31, 6  ;;  %v4865_v50 = vrot.slane %v4305_v31, 4  ;;  %v4847_v62 = vrot.slane %v4305_v31, 1 }
 0x764   :  { %v4422_v20 = vsel %vm8800_vm3, %v4420_v22, 0.0  ;;  %v4853_v60 = vrot.slane %v4305_v31, 2  ;;  %v4360_v22 = vsel %vm931_vm7, %v4344_v32, 0.0  ;;  %v4325_v32 = vsel %vm931_vm7, %v8813_v28, 0.0  ;;  %vm8823_vm3 = vmmov %vm8797_vm0 }
 0x76d   :  { %v4299_v63 = vpop.permute.xlu0 %4298 }
 0x76e   :  { %v4304_v51 = vadd.f32 %v4299_v63, %v7828_v3  ;;  %v4310_v63 = vadd.f32 %v4309_v0, %v4308_v18  ;;  %v4354_v18 = vmul.f32 %v8813_v28, %v8813_v28 }
 0x770   :  { %v4409_v19 = vsel %vm8801_vm4, %v4304_v51, 0.0  ;;  %v4419_v1 = vmul.f32 %v4304_v51, %v4304_v51  ;;  %v4858_v59 = vrot.slane %v4304_v51, 4  ;;  %v4868_v41 = vrot.slane %v4304_v51, 6  ;;  %vm8824_vm4 = vmmov %vm8797_vm0 }
 0x771   :  { %v4411_v61 = vadd.f32 %v4410_v35, %v4409_v19  ;;  %v4874_v27 = vrot.slane %v4304_v51, 7  ;;  %v4864_v8 = vrot.slane %v4304_v51, 5  ;;  %v8146_v26 = vsel %vm1835_vm8, %v4838_v43, %v4304_v51  ;;  %v8806_v43 = vld [vmem:[#allocation19_spill] sm:$0xff] }
 0x772   :  { %v4421_v3 = vsel %vm8802_vm5, %v4419_v1, 0.0  ;;  %v8150_v17 = vsel %vm1835_vm8, %v4859_v6, %v4858_v59  ;;  %v8153_v23 = vsel %vm1835_vm8, %v4869_v57, %v4868_v41  ;;  %v4846_v29 = vrot.slane %v4304_v51, 2  ;;  %v8808_v41 = vld [vmem:[#allocation21_spill] sm:$0xff]  ;;  %vm8825_vm5 = vmmov %vm8797_vm0 }
 0x773   :  { %v4412_v48 = vrot.slane %v4411_v61, 4  ;;  %v4423_v56 = vadd.f32 %v4422_v20, %v4421_v3  ;;  %v8156_v33 = vsel %vm1835_vm8, %v4875_v37, %v4874_v27  ;;  %v8159_v46 = vsel %vm1835_vm8, %v4865_v50, %v4864_v8  ;;  %v8807_v50 = vld [vmem:[#allocation20_spill] sm:$0xff] }
 0x774   :  { %v8162_v52 = vsel %vm1835_vm8, %v4847_v62, %v4846_v29  ;;  %v4852_v10 = vrot.slane %v4304_v51, 3  ;;  %v4843_v11 = vrot.slane %v4304_v51, 1  ;;  %v4362_v35 = vadd.f32 %v4361_v55, %v4360_v22  ;;  %v8814_v22 = vld [vmem:[#allocation13_spill] sm:$0xff] }
 0x775   :  { %v4413_v34 = vadd.f32 %v4412_v48, %v4411_v61  ;;  %v4424_v7 = vrot.slane %v4423_v56, 4  ;;  %v4311_v51 = vsel %vm931_vm7, %v8806_v43, 0.0  ;;  %v4347_v6 = vmul.f32 %v8806_v43, %v8806_v43  ;;  %v8809_v48 = vld [vmem:[#allocation23_spill] sm:$0xff] }
 0x776   :  { %v8165_v24 = vsel %vm1835_vm8, %v4853_v60, %v4852_v10  ;;  %v8170_v49 = vsel %vm1835_vm8, %v4305_v31, %v4843_v11  ;;  %v4346_v31 = vmul.f32 %v8805_v42, %v8805_v42  ;;  %v4312_v37 = vadd.f32 %v4311_v51, %v4310_v63 }
 0x777   :  { %v4414_v40 = vrot.slane %v4413_v34, 2  ;;  %v4425_v39 = vadd.f32 %v4424_v7, %v4423_v56  ;;  %v4313_v62 = vsel %vm931_vm7, %v8807_v50, 0.0  ;;  %v4348_v60 = vmul.f32 %v8807_v50, %v8807_v50 }
 0x778   :  { %v4363_v57 = vsel %vm931_vm7, %v4346_v31, 0.0  ;;  %v4365_v19 = vsel %vm931_vm7, %v4347_v6, 0.0  ;;  %v4314_v1 = vadd.f32 %v4313_v62, %v4312_v37  ;;  %v4315_v61 = vsel %vm931_vm7, %v8808_v41, 0.0  ;;  %v8815_v37 = vld [vmem:[#allocation9_spill] sm:$0xff] }
 0x779   :  { %v4415_v4 = vadd.f32 %v4414_v40, %v4413_v34  ;;  %v4426_v9 = vrot.slane %v4425_v39, 2  ;;  %v4364_v20 = vadd.f32 %v4363_v57, %v4362_v35  ;;  %v4349_v27 = vmul.f32 %v8808_v41, %v8808_v41 }
 0x77a   :  { %v4367_v8 = vsel %vm931_vm7, %v4348_v60, 0.0  ;;  %v4316_v3 = vadd.f32 %v4315_v61, %v4314_v1  ;;  %v4317_v56 = vsel %vm931_vm7, %v8809_v48, 0.0  ;;  %v4350_v10 = vmul.f32 %v8809_v48, %v8809_v48 }
 0x77b   :  { %v4416_v21 = vrot.slane %v4415_v4, 1  ;;  %v4427_v54 = vadd.f32 %v4426_v9, %v4425_v39  ;;  %v4366_v59 = vadd.f32 %v4365_v19, %v4364_v20  ;;  %v4369_v34 = vsel %vm931_vm7, %v4349_v27, 0.0  ;;  %v8810_v39 = vld [vmem:[#allocation24_spill] sm:$0xff] }
 0x77c   :  { %v4318_v7 = vadd.f32 %v4317_v56, %v4316_v3  ;;  %v4351_v9 = vmul.f32 %v8810_v39, %v8810_v39  ;;  %v4327_v63 = vsel %vm931_vm7, %v8814_v22, 0.0  ;;  %v4355_v35 = vmul.f32 %v8814_v22, %v8814_v22  ;;  %v8817_v56 = vld [vmem:[#allocation17_spill] sm:$0xff] }
 0x77d   :  { %v4417_v58 = vadd.f32 %v4416_v21, %v4415_v4  ;;  %v4428_v44 = vrot.slane %v4427_v54, 1  ;;  %v4368_v29 = vadd.f32 %v4367_v8, %v4366_v59  ;;  %v4319_v4 = vsel %vm931_vm7, %v8810_v39, 0.0  ;;  %v8816_v59 = vld [vmem:[#allocation2_spill] sm:$0xff] }
 0x77e   :  { %v4371_v21 = vsel %vm931_vm7, %v4350_v10, 0.0  ;;  %v4379_v51 = vsel %vm931_vm7, %v4354_v18, 0.0  ;;  %v4329_v20 = vsel %vm931_vm7, %v8815_v37, 0.0  ;;  %v4356_v62 = vmul.f32 %v8815_v37, %v8815_v37 }
 0x77f   :  { %v8167_v15 = vmul.f32 0.0625, %v4417_v58  ;;  %v4429_v30 = vadd.f32 %v4428_v44, %v4427_v54  ;;  %v4370_v40 = vadd.f32 %v4369_v34, %v4368_v29  ;;  %v4320_v54 = vadd.f32 %v4319_v4, %v4318_v7  ;;  %v8811_v44 = vld [vmem:[#allocation10_spill] sm:$0xff] }
 0x780   :  { %v4321_v11 = vsel %vm931_vm7, %v8811_v44, 0.0  ;;  %v4381_v60 = vsel %vm931_vm7, %v4355_v35, 0.0  ;;  %v4331_v61 = vsel %vm931_vm7, %v8816_v59, 0.0  ;;  %v4357_v27 = vmul.f32 %v8816_v59, %v8816_v59 }
 0x781   :  { %v4430_v45 = vmul.f32 0.0625, %v4429_v30  ;;  %v4431_v38 = vmul.f32 %v8167_v15, %v8167_v15  ;;  %v4372_v58 = vadd.f32 %v4371_v21, %v4370_v40  ;;  %v4352_v30 = vmul.f32 %v8811_v44, %v8811_v44 }
 0x782   :  { %v4383_v8 = vsel %vm931_vm7, %v4356_v62, 0.0  ;;  %v4333_v10 = vsel %vm931_vm7, %v8817_v56, 0.0  ;;  %v4358_v34 = vmul.f32 %v8817_v56, %v8817_v56  ;;  %v4385_v7 = vsel %vm931_vm7, %v4357_v27, 0.0 }
 0x783   :  { %v4432_v25 = vsub.f32 %v4430_v45, %v4431_v38  ;;  %v4373_v45 = vsel %vm931_vm7, %v4351_v9, 0.0  ;;  %v4322_v38 = vadd.f32 %v4321_v11, %v4320_v54  ;;  %v8818_v9 = vld [vmem:[#allocation22_spill] sm:$0xff] }
 0x784   :  { %v4335_v21 = vsel %vm931_vm7, %v8818_v9, 0.0  ;;  %v4359_v54 = vmul.f32 %v8818_v9, %v8818_v9 }
 0x785   :  { %v4435_v2 = vadd.f32 1e-05, %v4432_v25  ;;  %v4374_v25 = vadd.f32 %v4373_v45, %v4372_v58  ;;  %v4387_v58 = vsel %vm931_vm7, %v4358_v34, 0.0 }
 0x786   :  { %v4389_v45 = vsel %vm931_vm7, %v4359_v54, 0.0  ;;  %v4681_v54 = vrot.slane %v8813_v28, 3 }
 0x787   :  { %5412 = vrsqrt.f32 %v4435_v2  ;;  %v8812_v2 = vld [vmem:[#allocation11_spill] sm:$0xff] }
 0x791   :  { %v5413_v13 = vpop.eup %5412 }
 0x792   :  { %v4444_v53 = vrot.slane %v5413_v13, %v8767_v16  ;;  %v4323_v13 = vsel %vm931_vm7, %v8812_v2, 0.0 }
 0x793   :  { %v4324_v14 = vadd.f32 %v4323_v13, %v4322_v38 }
 0x794   :  { %v4451_v5 = vrot.slane %v4444_v53, %v8767_v16  ;;  %v4353_v53 = vmul.f32 %v8812_v2, %v8812_v2 }
 0x795   :  { %v4326_v0 = vadd.f32 %v4325_v32, %v4324_v14 }
 0x796   :  { %4452 = vrot.lane.b32.xlu0 %v4451_v5, %s5425_s22  ;;  %v4375_v5 = vsel %vm931_vm7, %v4352_v30, 0.0  ;;  %v4377_v55 = vsel %vm931_vm7, %v4353_v53, 0.0 }
 0x797   :  { %v4376_v12 = vadd.f32 %v4375_v5, %v4374_v25  ;;  %v4328_v6 = vadd.f32 %v4327_v63, %v4326_v0 }
 0x799   :  { %v4378_v31 = vadd.f32 %v4377_v55, %v4376_v12  ;;  %v4330_v19 = vadd.f32 %v4329_v20, %v4328_v6  ;;  %v5035_v20 = vld [vmem:[%s8693_s8 + $0x1] sm:$0x1] }
 0x79b   :  { %v4380_v57 = vadd.f32 %v4379_v51, %v4378_v31  ;;  %v4332_v3 = vadd.f32 %v4331_v61, %v4330_v19 }
 0x79d   :  { %v4382_v1 = vadd.f32 %v4381_v60, %v4380_v57  ;;  %v4334_v40 = vadd.f32 %v4333_v10, %v4332_v3  ;;  %v4546_v3 = vrot.slane %v8811_v44, 1  ;;  %v4548_v10 = vrot.slane %v8813_v28, 7 }
 0x79f   :  { %v4384_v29 = vadd.f32 %v4383_v8, %v4382_v1  ;;  %v4336_v11 = vadd.f32 %v4335_v21, %v4334_v40  ;;  %v8819_v1 = vld [vmem:[#allocation4_spill] sm:$0xff]  ;;  %v5033_v8 = vld [vmem:[%s8691_s6 + $0x1] sm:$0x1]  ;;  %v4547_v34 = vsel %vm1835_vm8, %v8812_v2, %v4546_v3  ;;  %v4550_v40 = vrot.slane %v8814_v22, 6 }
 0x7a0   :  { %v5034_v3 = vld [vmem:[%s8692_s7 + $0x1] sm:$0x1] }
 0x7a1   :  { %v4386_v4 = vadd.f32 %v4385_v7, %v4384_v29  ;;  %v4337_v38 = vrot.slane %v4336_v11, 4  ;;  %v4679_v7 = vrot.slane %v8812_v2, 4 }
 0x7a3   :  { %v4388_v30 = vadd.f32 %v4387_v58, %v4386_v4  ;;  %v4338_v13 = vadd.f32 %v4337_v38, %v4336_v11  ;;  %v4678_v4 = vrot.slane %v8811_v44, 5  ;;  %v4552_v11 = vrot.slane %v8815_v37, 5 }
 0x7a4   :  { %v4581_v38 = vrot.slane %v8812_v2, 1 }
 0x7a5   :  { %v4390_v25 = vadd.f32 %v4389_v45, %v4388_v30  ;;  %v4339_v5 = vrot.slane %v4338_v13, 2  ;;  %v4680_v58 = vsel %vm1835_vm8, %v4679_v7, %v4678_v4  ;;  %v4683_v30 = vrot.slane %v8814_v22, 2 }
 0x7a6   :  { %v4682_v45 = vsel %vm1837_vm9, %v4681_v54, %v4680_v58  ;;  %v4586_v7 = vrot.slane %v8815_v37, 6  ;;  %v4690_v4 = vrot.slane %v8818_v9, 6  ;;  %v4717_v54 = vrot.slane %v8814_v22, 3 }
 0x7a7   :  { %v4391_v53 = vrot.slane %v4390_v25, 4  ;;  %v4340_v12 = vadd.f32 %v4339_v5, %v4338_v13  ;;  %v4556_v13 = vrot.slane %v8817_v56, 3  ;;  %v4554_v5 = vrot.slane %v8816_v59, 4 }
 0x7a9   :  { %v4392_v14 = vadd.f32 %v4391_v53, %v4390_v25  ;;  %v4341_v18 = vrot.slane %v4340_v12, 1  ;;  %v4685_v53 = vrot.slane %v8815_v37, 1 }
 0x7ab   :  { %v4393_v32 = vrot.slane %v4392_v14, 2  ;;  %v4342_v0 = vadd.f32 %v4341_v18, %v4340_v12  ;;  %v4580_v12 = vrot.slane %v8811_v44, 2 }
 0x7ad   :  { %v4394_v55 = vadd.f32 %v4393_v32, %v4392_v14  ;;  %v4343_v63 = vmul.f32 0.0078125, %v4342_v0  ;;  %v4684_v14 = vsel %vm1839_vm10, %v4683_v30, %v4682_v45  ;;  %v4582_v18 = vsel %vm1835_vm8, %v4581_v38, %v4580_v12 }
 0x7ae   :  { %v4686_v0 = vsel %vm1841_vm11, %v4685_v53, %v4684_v14  ;;  %v4590_v38 = vrot.slane %v8817_v56, 4  ;;  %v4588_v53 = vrot.slane %v8816_v59, 5 }
 0x7af   :  { %v4395_v31 = vrot.slane %v4394_v55, 1  ;;  %v4398_v6 = vmul.f32 %v4343_v63, %v4343_v63 }
 0x7b1   :  { %v4396_v35 = vadd.f32 %v4395_v31, %v4394_v55  ;;  %v4713_v55 = vrot.slane %v8812_v2, 5  ;;  %v4688_v31 = vrot.slane %v8817_v56, 7 }
 0x7b3   :  { %v4397_v51 = vmul.f32 0.0078125, %v4396_v35  ;;  %v4558_v35 = vrot.slane %v8818_v9, 2 }
 0x7b5   :  { %v4399_v57 = vsub.f32 %v4397_v51, %v4398_v6  ;;  %v4584_v51 = vrot.slane %v8814_v22, 7  ;;  %v4712_v6 = vrot.slane %v8811_v44, 6 }
 0x7b7   :  { %v4402_v62 = vadd.f32 1e-05, %v4399_v57  ;;  %v4601_v57 = vrot.slane %v8803_v36, 2 }
 0x7b9   :  { %5414 = vrsqrt.f32 %v4402_v62  ;;  %v4583_v62 = vsel %vm1837_vm9, %v8813_v28, %v4582_v18 }
 0x7c3   :  { %v5415_v27 = vpop.eup %5414 }
 0x7c4   :  { %v8276_v29 = vmul.f32 %v5415_v27, %v5033_v8  ;;  %v4687_v8 = vsel %vm1843_vm12, %v8816_v59, %v4686_v0  ;;  %v4592_v0 = vrot.slane %v8818_v9, 3 }
 0x7c6   :  { %v8288_v21 = vrot.slane %v8276_v29, %v8819_v1 }
 0x808   :  { %v4453_v60 = vpop.permute.xlu0 %4452 }
 0x809   :  { %v8260_v19 = vmul.f32 %v5035_v20, %v4453_v60  ;;  %v4407_v20 = vmul.f32 %v8276_v29, %v4343_v63  ;;  %v4715_v60 = vrot.slane %v8813_v28, 4  ;;  %v4689_v63 = vsel %vm1845_vm13, %v4688_v31, %v4687_v8 }
 0x80a   :  { %v4691_v30 = vsel %vm8797_vm0, %v4690_v4, %v4689_v63  ;;  %v4721_v31 = vrot.slane %v8816_v59, 1  ;;  %v4532_v4 = vrot.slane %v8804_v47, 1 }
 0x80b   :  { %v8264_v61 = vrot.slane %v8260_v19, %v8819_v1 }
 0x80d   :  { %4463 = vrot.lane.b32.xlu1 %v8264_v61, %s5426_s23 }
 0x811   :  { %4886 = vrot.lane.b32.xlu1 %v8264_v61, %s5424_s21 }
 0x815   :  { %4861 = vrot.lane.b32.xlu1 %v8150_v17, %s5425_s22  ;;  %v4549_v17 = vsel %vm1837_vm9, %v4548_v10, %v4547_v34  ;;  %v4714_v10 = vsel %vm1835_vm8, %v4713_v55, %v4712_v6  ;;  %v4600_v34 = vrot.slane %v8804_v47, 3 }
 0x817   :  { %v4602_v58 = vsel %vm1835_vm8, %v4601_v57, %v4600_v34  ;;  %v4724_v57 = vrot.slane %v8818_v9, 7 }
 0x819   :  { %4871 = vrot.lane.b32.xlu1 %v8153_v23, %s5426_s23  ;;  %v4551_v23 = vsel %vm1839_vm10, %v4550_v40, %v4549_v17  ;;  %v4603_v40 = vrot.slane %v8805_v42, 1  ;;  %v4585_v17 = vsel %vm1839_vm10, %v4584_v51, %v4583_v62 }
 0x81a   :  { %v4553_v25 = vsel %vm1841_vm11, %v4552_v11, %v4551_v23  ;;  %v8340_v11 = vsub.f32 %v5034_v3, %v4407_v20  ;;  %v4716_v23 = vsel %vm1837_vm9, %v4715_v60, %v4714_v10  ;;  %v4587_v45 = vsel %vm1841_vm11, %v4586_v7, %v4585_v17 }
 0x81b   :  { %v4555_v32 = vsel %vm1843_vm12, %v4554_v5, %v4553_v25  ;;  %v4719_v25 = vrot.slane %v8815_v37, 2  ;;  %v4718_v5 = vsel %vm1839_vm10, %v4717_v54, %v4716_v23  ;;  %v4589_v12 = vsel %vm1843_vm12, %v4588_v53, %v4587_v45 }
 0x81c   :  { %v8353_v14 = vrot.slane %v8340_v11, %v8819_v1  ;;  %v4591_v18 = vsel %vm1845_vm13, %v4590_v38, %v4589_v12  ;;  %v4608_v20 = vrot.slane %v8808_v41, 6  ;;  %v4612_v10 = vrot.slane %v8810_v39, 4 }
 0x81d   :  { %4783 = vrot.lane.b32.xlu1 %v8288_v21, %s5426_s23  ;;  %v4720_v55 = vsel %vm1841_vm11, %v4719_v25, %v4718_v5  ;;  %v4593_v51 = vsel %vm8821_vm1, %v4592_v0, %v4591_v18  ;;  %v4534_v54 = vrot.slane %v8805_v42, 7  ;;  %v4665_v23 = vrot.slane %v8803_v36, 4  ;;  %vm8827_vm1 = vmmov %vm8797_vm0 }
 0x81e   :  { %v4722_v6 = vsel %vm1843_vm12, %v4721_v31, %v4720_v55  ;;  %v4664_v45 = vrot.slane %v8804_v47, 5  ;;  %v4538_v53 = vrot.slane %v8807_v50, 5  ;;  %v4567_v12 = vrot.slane %v8803_v36, 1 }
 0x81f   :  { %v4723_v62 = vsel %vm1845_vm13, %v8817_v56, %v4722_v6  ;;  %v4566_v55 = vrot.slane %v8804_v47, 2  ;;  %v4699_v31 = vrot.slane %v8803_v36, 5  ;;  %v4570_v6 = vrot.slane %v8806_v43, 7 }
 0x820   :  { %v4725_v8 = vsel %vm8822_vm2, %v4724_v57, %v4723_v62  ;;  %v4666_v38 = vsel %vm1835_vm8, %v4665_v23, %v4664_v45  ;;  %v4698_v57 = vrot.slane %v8804_v47, 6  ;;  %v4701_v62 = vrot.slane %v8805_v42, 4  ;;  %vm8828_vm2 = vmmov %vm8797_vm0 }
 0x821   :  { %4877 = vrot.lane.b32.xlu1 %v8156_v33, %s5424_s21  ;;  %v4557_v33 = vsel %vm1845_vm13, %v4556_v13, %v4555_v32  ;;  %v4604_v13 = vsel %vm1837_vm9, %v4603_v40, %v4602_v58  ;;  %v4533_v58 = vsel %vm1835_vm8, %v8803_v36, %v4532_v4  ;;  %v4568_v0 = vsel %vm1835_vm8, %v4567_v12, %v4566_v55 }
 0x822   :  { %v4559_v27 = vsel %vm8820_vm6, %v4558_v35, %v4557_v33  ;;  %v4605_v32 = vsel %vm1839_vm10, %v8806_v43, %v4604_v13  ;;  %v4606_v33 = vrot.slane %v8807_v50, 7  ;;  %v4669_v13 = vrot.slane %v8806_v43, 2  ;;  %vm8826_vm6 = vmmov %vm8797_vm0 }
 0x823   :  { %v4574_v23 = vrot.slane %v8808_v41, 5  ;;  %v4615_v45 = vrot.slane %v8812_v2, 2 }
 0x824   :  { %v4607_v35 = vsel %vm1841_vm11, %v4606_v33, %v4605_v32  ;;  %v4540_v32 = vrot.slane %v8808_v41, 4  ;;  %v4671_v33 = vrot.slane %v8807_v50, 1 }
 0x825   :  { %4786 = vrot.lane.b32.xlu1 %v8288_v21, %s5424_s21  ;;  %v4609_v60 = vsel %vm1843_vm12, %v4608_v20, %v4607_v35  ;;  %v4542_v35 = vrot.slane %v8809_v48, 3  ;;  %v4569_v20 = vsel %vm1837_vm9, %v8805_v42, %v4568_v0  ;;  %v4620_v0 = vrot.slane %v8815_v37, 7 }
 0x829   :  { %4562 = vrot.lane.b32.xlu1 %v4559_v27, %s5426_s23  ;;  %v4610_v27 = vrot.slane %v8809_v48, 5 }
 0x82b   :  { %v4611_v3 = vsel %vm1845_vm13, %v4610_v27, %v4609_v60  ;;  %v4544_v60 = vrot.slane %v8810_v39, 2 }
 0x82c   :  { %v4613_v34 = vsel %vm8823_vm3, %v4612_v10, %v4611_v3  ;;  %v4674_v3 = vrot.slane %v8809_v48, 7  ;;  %vm8829_vm3 = vmmov %vm8797_vm0 }
 0x82d   :  { %4694 = vrot.lane.b32.xlu1 %v4691_v30, %s5426_s23  ;;  %v4536_v30 = vrot.slane %v8806_v43, 6 }
 0x831   :  { %4800 = vrot.lane.b32.xlu1 %v8353_v14, %s5426_s23 }
 0x835   :  { %4596 = vrot.lane.b32.xlu1 %v4593_v51, %s5424_s21 }
 0x839   :  { %4728 = vrot.lane.b32.xlu1 %v4725_v8, %s5424_s21  ;;  %v4700_v8 = vsel %vm1835_vm8, %v4699_v31, %v4698_v57  ;;  %v4710_v31 = vrot.slane %v8810_v39, 7  ;;  %v4622_v57 = vrot.slane %v8816_v59, 6 }
 0x83a   :  { %v4702_v4 = vsel %vm1837_vm9, %v4701_v62, %v4700_v8  ;;  %v4626_v62 = vrot.slane %v8818_v9, 4  ;;  %v4733_v8 = vrot.slane %v8803_v36, 6 }
 0x83d   :  { %4628 = vrot.lane.b32.xlu1 %v4613_v34, %s5425_s22  ;;  %v4703_v34 = vrot.slane %v8806_v43, 3 }
 0x87f   :  { %v8381_v63 = vpop.permute.xlu1 %4463 }
 0x880   :  { %v4466_v7 = vmul.f32 %v8381_v63, %v8167_v15  ;;  %v4535_v15 = vsel %vm1837_vm9, %v4534_v54, %v4533_v58 }
 0x881   :  { %v4537_v25 = vsel %vm1839_vm10, %v4536_v30, %v4535_v15  ;;  %v4704_v30 = vsel %vm1839_vm10, %v4703_v34, %v4702_v4  ;;  %v4705_v15 = vrot.slane %v8807_v50, 2 }
 0x882   :  { %v4474_v40 = vrot.slane %v4466_v7, %v8767_v16 }
 0x884   :  { %v4481_v17 = vrot.slane %v4474_v40, %v8767_v16  ;;  %v4667_v16 = vrot.slane %v8805_v42, 3  ;;  %v4572_v40 = vrot.slane %v8807_v50, 6 }
 0x886   :  { %4482 = vrot.lane.b32.xlu0 %v4481_v17, %s5425_s22  ;;  %v4668_v5 = vsel %vm1837_vm9, %v4667_v16, %v4666_v38  ;;  %v4676_v17 = vrot.slane %v8810_v39, 6  ;;  %v4614_v38 = vrot.slane %v8811_v44, 3 }
 0x887   :  { %v4670_v18 = vsel %vm1839_vm10, %v4669_v13, %v4668_v5  ;;  %v4706_v13 = vsel %vm1841_vm11, %v4705_v15, %v4704_v30  ;;  %v4707_v5 = vrot.slane %v8808_v41, 1  ;;  %v5036_v15 = vld [vmem:[%s8694_s9 + $0x1] sm:$0x1] }
 0x888   :  { %v4672_v51 = vsel %vm1841_vm11, %v4671_v33, %v4670_v18  ;;  %v4616_v12 = vsel %vm1835_vm8, %v4615_v45, %v4614_v38  ;;  %v4739_v45 = vrot.slane %v8807_v50, 3 }
 0x889   :  { %v4673_v27 = vsel %vm1843_vm12, %v8808_v41, %v4672_v51  ;;  %v4708_v18 = vsel %vm1843_vm12, %v4707_v5, %v4706_v13 }
 0x88a   :  { %4840 = vrot.lane.b32.xlu0 %v8146_v26, %s5425_s22  ;;  %v4539_v26 = vsel %vm1841_vm11, %v4538_v53, %v4537_v25  ;;  %v4675_v7 = vsel %vm1845_vm13, %v4674_v3, %v4673_v27  ;;  %v4576_v25 = vrot.slane %v8809_v48, 4  ;;  %v4617_v53 = vrot.slane %v8813_v28, 1  ;;  %v4887_v27 = vpop.permute.xlu1 %4886 }
 0x88b   :  { %v4677_v58 = vsel %vm8825_vm5, %v4676_v17, %v4675_v7  ;;  %v4732_v3 = vrot.slane %v8804_v47, 7  ;;  %v4737_v7 = vrot.slane %v8806_v43, 4  ;;  %v4746_v17 = vrot.slane %v8811_v44, 7 }
 0x88c   :  { %v4618_v55 = vsel %vm1837_vm9, %v4617_v53, %v4616_v12  ;;  %v4741_v53 = vrot.slane %v8808_v41, 2  ;;  %v4753_v12 = vrot.slane %v8815_v37, 3 }
 0x88d   :  { %v4734_v34 = vsel %vm1835_vm8, %v4733_v8, %v4732_v3 }
 0x88e   :  { %4889 = vrot.lane.b32.xlu0 %v8264_v61, %s5425_s22  ;;  %v4541_v61 = vsel %vm1843_vm12, %v4540_v32, %v4539_v26  ;;  %v4578_v32 = vrot.slane %v8810_v39, 3 }
 0x892   :  { %4849 = vrot.lane.b32.xlu0 %v8162_v52, %s5426_s23  ;;  %v4543_v52 = vsel %vm1845_vm13, %v4542_v35, %v4541_v61  ;;  %v4709_v61 = vsel %vm1845_vm13, %v8809_v48, %v4708_v18 }
 0x893   :  { %v4545_v10 = vsel %vm8824_vm4, %v4544_v60, %v4543_v52  ;;  %v4711_v35 = vsel %vm8797_vm0, %v4710_v31, %v4709_v61 }
 0x896   :  { %4855 = vrot.lane.b32.xlu0 %v8165_v24, %s5424_s21  ;;  %v4571_v24 = vsel %vm1839_vm10, %v4570_v6, %v4569_v20  ;;  %v4624_v6 = vrot.slane %v8817_v56, 5 }
 0x897   :  { %v4573_v54 = vsel %vm1841_vm11, %v4572_v40, %v4571_v24  ;;  %v4862_v24 = vpop.permute.xlu1 %4861  ;;  %v4747_v40 = vrot.slane %v8812_v2, 6 }
 0x898   :  { %v4575_v16 = vsel %vm1843_vm12, %v4574_v23, %v4573_v54  ;;  %v4749_v54 = vrot.slane %v8813_v28, 5 }
 0x899   :  { %v4577_v26 = vsel %vm1845_vm13, %v4576_v25, %v4575_v16  ;;  %v4748_v30 = vsel %vm1835_vm8, %v4747_v40, %v4746_v17  ;;  %v4751_v16 = vrot.slane %v8814_v22, 4 }
 0x89a   :  { %4560 = vrot.lane.b32.xlu0 %v4545_v10, %s5426_s23  ;;  %v4579_v33 = vsel %vm8826_vm6, %v4578_v32, %v4577_v26  ;;  %v4735_v10 = vrot.slane %v8805_v42, 5  ;;  %v4750_v25 = vsel %vm1837_vm9, %v4749_v54, %v4748_v30 }
 0x89b   :  { %v4752_v18 = vsel %vm1839_vm10, %v4751_v16, %v4750_v25  ;;  %v4504_v25 = vrot.slane %v8805_v42, 6 }
 0x89c   :  { %v4736_v4 = vsel %vm1837_vm9, %v4735_v10, %v4734_v34  ;;  %v4754_v31 = vsel %vm1841_vm11, %v4753_v12, %v4752_v18  ;;  %v4649_v12 = vrot.slane %v8812_v2, 3  ;;  %v4518_v18 = vrot.slane %v8813_v28, 6 }
 0x89d   :  { %v4738_v23 = vsel %vm1839_vm10, %v4737_v7, %v4736_v4 }
 0x89e   :  { %4692 = vrot.lane.b32.xlu0 %v4677_v58, %s5426_s23  ;;  %v4872_v58 = vpop.permute.xlu1 %4871  ;;  %v4740_v38 = vsel %vm1841_vm11, %v4739_v45, %v4738_v23 }
 0x89f   :  { %v4742_v32 = vsel %vm1843_vm12, %v4741_v53, %v4740_v38  ;;  %v4516_v38 = vrot.slane %v8812_v2, 7 }
 0x8a2   :  { %4789 = vrot.lane.b32.xlu0 %v8288_v21, %s5425_s22  ;;  %v4619_v21 = vsel %vm1839_vm10, %v8814_v22, %v4618_v55  ;;  %v8502_v26 = vpop.permute.xlu1 %4783 }
 0x8a3   :  { %v4621_v51 = vsel %vm1841_vm11, %v4620_v0, %v4619_v21  ;;  %v4757_v21 = vrot.slane %v8817_v56, 1 }
 0x8a4   :  { %v4623_v52 = vsel %vm1843_vm12, %v4622_v57, %v4621_v51  ;;  %v4892_v51 = vsel %vm931_vm7, %v8260_v19, %v8381_v63 }
 0x8a5   :  { %v4625_v20 = vsel %vm1845_vm13, %v4624_v6, %v4623_v52  ;;  %v4893_v6 = vsel %vm2323_vm15, %v4892_v51, %v4887_v27 }
 0x8a6   :  { %4594 = vrot.lane.b32.xlu0 %v4579_v33, %s5424_s21  ;;  %v4627_v60 = vsel %vm8827_vm1, %v4626_v62, %v4625_v20  ;;  %v4743_v33 = vrot.slane %v8809_v48, 1  ;;  %v4878_v57 = vpop.permute.xlu1 %4877 }
 0x8a8   :  { %v4744_v0 = vsel %vm1845_vm13, %v4743_v33, %v4742_v32  ;;  %v4634_v32 = vrot.slane %v8804_v47, 4  ;;  %v4506_v33 = vrot.slane %v8806_v43, 5 }
 0x8a9   :  { %v4745_v20 = vsel %vm8828_vm2, %v8810_v39, %v4744_v0 }
 0x8aa   :  { %4726 = vrot.lane.b32.xlu0 %v4711_v35, %s5424_s21  ;;  %v4755_v35 = vrot.slane %v8816_v59, 2  ;;  %v8544_v54 = vpop.permute.xlu1 %4786 }
 0x8ac   :  { %v4756_v62 = vsel %vm1843_vm12, %v4755_v35, %v4754_v31  ;;  %v4648_v31 = vrot.slane %v8811_v44, 4  ;;  %v4520_v35 = vrot.slane %v8814_v22, 5 }
 0x8ad   :  { %v4758_v19 = vsel %vm1845_vm13, %v4757_v21, %v4756_v62  ;;  %v4522_v62 = vrot.slane %v8815_v37, 4 }
 0x8ae   :  { %4803 = vrot.lane.b32.xlu0 %v8353_v14, %s5424_s21  ;;  %v8548_v23 = vpop.permute.xlu1 %4562  ;;  %v4650_v51 = vsel %vm1835_vm8, %v4649_v12, %v4648_v31 }
 0x8b2   :  { %4630 = vrot.lane.b32.xlu0 %v4627_v60, %s5425_s22  ;;  %v4883_v60 = vsel %vm931_vm7, %v4862_v24, %v8159_v46  ;;  %v4759_v46 = vsel %vm8829_vm3, %v8818_v9, %v4758_v19  ;;  %v8552_v45 = vpop.permute.xlu1 %4694 }
 0x8b3   :  { %v4884_v63 = vsel %vm2323_vm15, %v4883_v60, %v4872_v58 }
 0x8b4   :  { %v4885_v3 = vsel %vm2326_vm14, %v4884_v63, %v4878_v57 }
 0x8f8   :  { %v4483_v13 = vpop.permute.xlu0 %4482 }
 0x8f9   :  { %v8499_v5 = vsub.f32 %v5036_v15, %v4483_v13  ;;  %v4502_v15 = vrot.slane %v8803_v36, 7  ;;  %v4635_v13 = vrot.slane %v8803_v36, 3  ;;  %v4517_v36 = vsel %vm1835_vm8, %v4516_v38, %v8811_v44 }
 0x8fa   :  { %v4653_v44 = vrot.slane %v8814_v22, 1 }
 0x8fb   :  { %v4899_v55 = vrot.slane %v8499_v5, %v8819_v1  ;;  %v4503_v53 = vsel %vm1835_vm8, %v4502_v15, %v8804_v47  ;;  %v4636_v2 = vsel %vm1835_vm8, %v4635_v13, %v4634_v32  ;;  %v4651_v47 = vrot.slane %v8813_v28, 2  ;;  %vm8830_vm8 = vmmov %vm8797_vm0 }
 0x8fc   :  { %v4841_v61 = vpop.permute.xlu0 %4840  ;;  %v4505_v21 = vsel %vm1837_vm9, %v4504_v25, %v4503_v53  ;;  %v4524_v15 = vrot.slane %v8816_v59, 3  ;;  %v4658_v25 = vrot.slane %v8817_v56, 6 }
 0x8fd   :  { %4903 = vrot.lane.b32.xlu0 %v4899_v55, %s5424_s21  ;;  %4900 = vrot.lane.b32.xlu1 %v4899_v55, %s5426_s23  ;;  %v4880_v24 = vsel %vm931_vm7, %v4841_v61, %v8170_v49  ;;  %v8556_v49 = vpop.permute.xlu1 %4800  ;;  %v4637_v61 = vrot.slane %v8805_v42, 2  ;;  %v4519_v42 = vsel %vm1837_vm9, %v4518_v18, %v4517_v36  ;;  %v4507_v57 = vsel %vm1839_vm10, %v4506_v33, %v4505_v21 }
 0x8fe   :  { %v4652_v28 = vsel %vm1837_vm9, %v4651_v47, %v4650_v51  ;;  %v4521_v19 = vsel %vm1839_vm10, %v4520_v35, %v4519_v42  ;;  %v4514_v18 = vrot.slane %v8810_v39, 1  ;;  %v4644_v33 = vrot.slane %v8809_v48, 6 }
 0x8ff   :  { %v4523_v22 = vsel %vm1841_vm11, %v4522_v62, %v4521_v19  ;;  %v4646_v35 = vrot.slane %v8810_v39, 5  ;;  %v4809_v19 = vsel %vm931_vm7, %v8340_v11, %v8556_v49 }
 0x900   :  { %v4890_v52 = vpop.permute.xlu0 %4889  ;;  %v4525_v32 = vsel %vm1843_vm12, %v4524_v15, %v4523_v22 }
 0x901   :  { %v4894_v8 = vsel %vm2326_vm14, %v4893_v6, %v4890_v52  ;;  %4906 = vrot.lane.b32.xlu0 %v4899_v55, %s5425_s22  ;;  %4760 = vrot.lane.b32.xlu1 %v4745_v20, %s5425_s22  ;;  %v8569_v55 = vpop.permute.xlu1 %4596  ;;  %v4639_v6 = vrot.slane %v8806_v43, 1  ;;  %v4638_v52 = vsel %vm1837_vm9, %v4637_v61, %v4636_v2  ;;  %v4508_v20 = vrot.slane %v8807_v50, 4  ;;  %vm8831_vm9 = vmmov %vm8797_vm0 }
 0x902   :  { %v4915_v27 = vrot.slane %v4894_v8, %v8819_v1  ;;  %v4660_v61 = vrot.slane %v8818_v9, 5 }
 0x903   :  { %v4509_v43 = vsel %vm1841_vm11, %v4508_v20, %v4507_v57  ;;  %v4640_v63 = vsel %vm1839_vm10, %v4639_v6, %v4638_v52 }
 0x904   :  { %v8531_v10 = vmul.f32 %v4915_v27, %v4885_v3  ;;  %v4850_v34 = vpop.permute.xlu0 %4849  ;;  %v4654_v3 = vsel %vm1839_vm10, %v4653_v44, %v4652_v28  ;;  %vm8832_vm10 = vmmov %vm8797_vm0 }
 0x905   :  { %4762 = vrot.lane.b32.xlu0 %v4759_v46, %s5425_s22  ;;  %4806 = vrot.lane.b32.xlu1 %v8353_v14, %s5425_s22  ;;  %v4881_v7 = vsel %vm2323_vm15, %v4880_v24, %v4850_v34  ;;  %v4729_v60 = vpop.permute.xlu1 %4728  ;;  %v4641_v46 = vsel %vm1841_vm11, %v8807_v50, %v4640_v63  ;;  %v4526_v24 = vrot.slane %v8817_v56, 2  ;;  %v4655_v38 = vsel %vm1841_vm11, %v8815_v37, %v4654_v3  ;;  %vm8833_vm11 = vmmov %vm8797_vm0 }
 0x908   :  { %v4856_v40 = vpop.permute.xlu0 %4855 }
 0x909   :  { %v4882_v4 = vsel %vm2326_vm14, %v4881_v7, %v4856_v40  ;;  %v4656_v7 = vrot.slane %v8816_v59, 7  ;;  %v4512_v40 = vrot.slane %v8809_v48, 2  ;;  %v4629_v13 = vpop.permute.xlu1 %4628  ;;  %v4528_v59 = vrot.slane %v8818_v9, 1 }
 0x90a   :  { %v8542_v17 = vmul.f32 %v4915_v27, %v4882_v4  ;;  %v4510_v27 = vrot.slane %v8808_v41, 3  ;;  %v4642_v4 = vrot.slane %v8808_v41, 7  ;;  %v4527_v41 = vsel %vm1845_vm13, %v4526_v24, %v4525_v32  ;;  %v8835_v32 = vld [vmem:[#allocation3_spill] sm:$0xff] }
 0x90b   :  { %v4657_v37 = vsel %vm1843_vm12, %v4656_v7, %v4655_v38  ;;  %v4792_v48 = vsel %vm931_vm7, %v8276_v29, %v8502_v26  ;;  %v4529_v42 = vsel %vm8831_vm9, %v4528_v59, %v4527_v41  ;;  %v8837_v59 = vld [vmem:[#allocation15_spill] sm:$0xff] }
 0x90c   :  { %v8546_v58 = vpop.permute.xlu0 %4560  ;;  %v4511_v34 = vsel %vm1843_vm12, %v4510_v27, %v4509_v43  ;;  %v4643_v50 = vsel %vm1843_vm12, %v4642_v4, %v4641_v46  ;;  %v4659_v56 = vsel %vm1845_vm13, %v4658_v25, %v4657_v37  ;;  %v4793_v9 = vsel %vm2323_vm15, %v4792_v48, %v8544_v54  ;;  %v8834_v25 = vld [vmem:[#allocation5_spill] sm:$0xff] }
 0x90d   :  { %v4513_v12 = vsel %vm1845_vm13, %v4512_v40, %v4511_v34  ;;  %v4645_v31 = vsel %vm1845_vm13, %v4644_v33, %v4643_v50  ;;  %v4661_v57 = vsel %vm8832_vm10, %v4660_v61, %v4659_v56  ;;  %v4767_v39 = vsel %vm931_vm7, %v4529_v42, %v8548_v23  ;;  %v8836_v33 = vld [vmem:[#allocation14_spill] sm:$0xff] }
 0x90e   :  { %v4515_v36 = vsel %vm8830_vm8, %v4514_v18, %v4513_v12  ;;  %v4647_v29 = vsel %vm8833_vm11, %v4646_v35, %v4645_v31  ;;  %v4769_v44 = vsel %vm2323_vm15, %v4767_v39, %v8569_v55  ;;  %v8838_v56 = vld [vmem:[#allocation6_spill] sm:$0xff] }
 0x90f   :  { %v4766_v47 = vsel %vm931_vm7, %v4515_v36, %v8546_v58 }
 0x910   :  { %v8550_v30 = vpop.permute.xlu0 %4692 }
 0x911   :  { %v4772_v54 = vsel %vm931_vm7, %v4647_v29, %v8550_v30 }
 0x914   :  { %v8554_v14 = vpop.permute.xlu0 %4789 }
 0x915   :  { %v4794_v26 = vsel %vm2326_vm14, %v4793_v9, %v8554_v14 }
 0x916   :  { %v4815_v62 = vrot.slane %v4794_v26, %v8819_v1 }
 0x918   :  { %v8559_v16 = vpop.permute.xlu0 %4594 }
 0x919   :  { %v4768_v6 = vsel %vm2323_vm15, %v4766_v47, %v8559_v16 }
 0x91a   :  { %v4770_v20 = vsel %vm2326_vm14, %v4768_v6, %v4629_v13 }
 0x91b   :  { %v4816_v43 = vmul.f32 %v4815_v62, %v4770_v20 }
 0x91c   :  { %v8573_v0 = vpop.permute.xlu0 %4726 }
 0x91d   :  { %v4774_v14 = vsel %vm2323_vm15, %v4772_v54, %v8573_v0 }
 0x920   :  { %v4804_v8 = vpop.permute.xlu0 %4803 }
 0x921   :  { %v4810_v63 = vsel %vm2323_vm15, %v4809_v19, %v4804_v8 }
 0x924   :  { %v4631_v53 = vpop.permute.xlu0 %4630 }
 0x96f   :  { %v4904_v21 = vpop.permute.xlu0 %4903  ;;  %v4901_v2 = vpop.permute.xlu1 %4900 }
 0x970   :  { %v4909_v51 = vsel %vm931_vm7, %v8499_v5, %v4901_v2  ;;  %v4773_v5 = vsel %vm931_vm7, %v4661_v57, %v8552_v45  ;;  %v4771_v45 = vsel %vm2326_vm14, %v4769_v44, %v4631_v53 }
 0x971   :  { %v4910_v16 = vsel %vm2323_vm15, %v4909_v51, %v4904_v21  ;;  %v4775_v55 = vsel %vm2323_vm15, %v4773_v5, %v4729_v60  ;;  %v4818_v34 = vmul.f32 %v4815_v62, %v4771_v45 }
 0x973   :  { %v4907_v58 = vpop.permute.xlu0 %4906  ;;  %v4761_v52 = vpop.permute.xlu1 %4760 }
 0x974   :  { %v4911_v23 = vsel %vm2326_vm14, %v4910_v16, %v4907_v58  ;;  %v4776_v28 = vsel %vm2326_vm14, %v4774_v14, %v4761_v52 }
 0x975   :  { %v4921_v30 = vrot.slane %v4911_v23, %v8819_v1  ;;  %v4817_v46 = vmul.f32 %v4815_v62, %v4776_v28 }
 0x977   :  { %v4922_v0 = vadd.f32 %v4921_v30, %v8542_v17  ;;  %v4923_v27 = vadd.f32 %v4921_v30, %v8531_v10  ;;  %v4763_v3 = vpop.permute.xlu0 %4762  ;;  %v4807_v22 = vpop.permute.xlu1 %4806 }
 0x978   :  { %v4777_v24 = vsel %vm2326_vm14, %v4775_v55, %v4763_v3  ;;  %v4811_v7 = vsel %vm2326_vm14, %v4810_v63, %v4807_v22 }
 0x979   :  { %v4924_v40 = vmax.f32 %v4922_v0, 0.0  ;;  %v4925_v4 = vmax.f32 %v4923_v27, 0.0  ;;  %v4819_v11 = vmul.f32 %v4815_v62, %v4777_v24  ;;  %v4823_v49 = vrot.slane %v4811_v7, %v8819_v1  ;;  %v8839_v1 = vld [vmem:[#allocation7_spill] sm:$0xff] }
 0x97b   :  { %v4928_v60 = vcombine.low %v4924_v40, %v4925_v4  ;;  %v4824_v15 = vadd.f32 %v4823_v49, %v4816_v43  ;;  %v4825_v8 = vadd.f32 %v4823_v49, %v4817_v46  ;;  %v4826_v38 = vadd.f32 %v4823_v49, %v4818_v34 }
 0x97c   :  { %v4827_v17 = vadd.f32 %v4823_v49, %v4819_v11 }
 0x97d   :  { %v4935_v10 = vrot.slane %v4928_v60, %v8834_v25  ;;  %v4828_v13 = vmax.f32 %v4824_v15, 0.0  ;;  %v4829_v53 = vmax.f32 %v4825_v8, 0.0  ;;  %v4830_v12 = vmax.f32 %v4826_v38, 0.0 }
 0x97e   :  { %v4831_v50 = vmax.f32 %v4827_v17, 0.0 }
 0x97f   :  { %v4937_v18 = vadd.f32 %v4935_v10, %v8835_v32  ;;  %v4832_v41 = vadd.f32 %v4828_v13, %v8836_v33  ;;  %v4833_v37 = vadd.f32 %v4829_v53, %v8837_v59  ;;  %v4834_v61 = vadd.f32 %v4830_v12, %v8838_v56 }
 0x980   :  { %v4835_v36 = vadd.f32 %v4831_v50, %v8839_v1 }
 0x981   :  { %4938 = vst [vmem:[%s8695_s10] sm:$0xf] %v4937_v18  ;;  %4939 = vst [vmem:[%s8696_s11] sm:$0xff] %v4832_v41 }
 0x982   :  { %4940 = vst [vmem:[%s8696_s11 + $0x8] sm:$0xff] %v4833_v37  ;;  %4941 = vst [vmem:[%s8696_s11 + $0x10] sm:$0xff] %v4834_v61 }
 0x983   :  { %4942 = vst [vmem:[%s8696_s11 + $0x18] sm:$0xff] %v4835_v36 }

</bundles_post_ra>
